<compile_context>
chip_gen: v7x
topology: tpu7x:2x2x1
jax: 0.10.0
libtpu: 0.0.40
codegen_flags: <defaults>
</compile_context>

<pallas_src>
import functools

import jax
import jax.numpy as jnp
from jax.experimental import pallas as pl
from jax.experimental.pallas import tpu as pltpu


_MXU_DTYPE = jnp.bfloat16          # MXU operands; f32 accumulate everywhere
_MIB = 1024 * 1024


# ------------------------------------------------------------------ helpers ---

def _round_up(x, m):
    return -(-x // m) * m


def _mdot(a, b):
    return jnp.dot(a.astype(_MXU_DTYPE), b.astype(_MXU_DTYPE),
                   preferred_element_type=jnp.float32)


def _layernorm(x, g, b, eps=1e-5):
    mu = jnp.mean(x, axis=-1, keepdims=True)
    var = jnp.mean((x - mu) ** 2, axis=-1, keepdims=True)
    return (x - mu) * jax.lax.rsqrt(var + eps) * g + b


def _erf(x):
    # Abramowitz & Stegun 7.1.26 rational approximation (|err| < 1.5e-7), built
    # only from ops with guaranteed Mosaic lowerings (exp / div / select).
    p = 0.3275911
    a1, a2, a3, a4, a5 = (0.254829592, -0.284496736, 1.421413741,
                          -1.453152027, 1.061405429)
    sgn = jnp.where(x < 0.0, -1.0, 1.0)
    ax = jnp.abs(x)
    t = 1.0 / (1.0 + p * ax)
    poly = ((((a5 * t + a4) * t + a3) * t + a2) * t + a1) * t
    return sgn * (1.0 - poly * jnp.exp(-ax * ax))


def _gelu(x):
    # PyTorch F.gelu default (erf form), f32.
    return 0.5 * x * (1.0 + _erf(x * 0.7071067811865476))


def _softmax_lastdim(s):
    s = s - jnp.max(s, axis=-1, keepdims=True)
    e = jnp.exp(s)
    return e * pl.reciprocal(jnp.sum(e, axis=-1, keepdims=True), approx=True)


def _attention(y, wqkv, wproj, bproj, num_heads, tb, n):
    """MHSA on flattened (tb*n, D) tokens.

    One big QKV matmul; then an unrolled per-head loop accumulating the
    per-head projection into a single (tb*n, D) f32 accumulator (no head
    stacking, no lane re-concatenation).
    """
    d = y.shape[-1]
    dh = d // num_heads
    scale = dh ** -0.5
    qkv = _mdot(y, wqkv)                               # (tb*n, 3D), one MXU push
    qkvb = qkv.reshape(tb, n, 3 * d)                   # small leading-dim relayout
    acc = jnp.zeros((tb * n, d), jnp.float32)
    for h in range(num_heads):                         # unrolled (static)
        q = qkvb[:, :, h * dh:(h + 1) * dh]
        k = qkvb[:, :, d + h * dh: d + (h + 1) * dh]
        v = qkvb[:, :, 2 * d + h * dh: 2 * d + (h + 1) * dh]
        s = jnp.einsum('bqc,bkc->bqk', q.astype(_MXU_DTYPE), k.astype(_MXU_DTYPE),
                       preferred_element_type=jnp.float32) * scale   # (tb, n, n)
        p = _softmax_lastdim(s)
        ctx = jnp.einsum('bqk,bkc->bqc', p.astype(_MXU_DTYPE), v.astype(_MXU_DTYPE),
                         preferred_element_type=jnp.float32)         # (tb, n, dh)
        acc = acc + _mdot(ctx.reshape(tb * n, dh), wproj[h])         # (tb*n, D)
    return acc + bproj


# ------------------------------------------------------------------ kernels ---

def conv_mm_relu_kernel(w_ref, p_ref, o_ref):
    # (Cout, Kpad) @ (Kpad, TILE_M) -> (Cout, TILE_M), fused ReLU; bf16 operands,
    # f32 accumulate, lane-dense output tile.
    o_ref[...] = jnp.maximum(_mdot(w_ref[...], p_ref[...]), 0.0)


def transformer_kernel(tok_ref, pos_ref,
                       ln0g_ref, ln0b_ref, wqkv_ref, wproj_ref, bproj_ref,
                       ln1g_ref, ln1b_ref, w1_ref, b1_ref, w2_ref, b2_ref,
                       lng_ref, lnb_ref, wpool_ref, bpool_ref, wfc_ref, bfc_ref,
                       o_ref, x_scr, *, num_heads):
    """Grid = (batch_tiles, layers).  Per-layer weights are streamed along the
    layer axis; the (TB*N, D) activations are carried in VMEM scratch."""
    tb, n, d = tok_ref.shape
    l = pl.program_id(1)
    n_layers = pl.num_programs(1)

    # -- first layer step of this batch tile: pos-emb add (dropout(p)=identity) --
    @pl.when(l == 0)
    def _():
        x_scr[...] = (tok_ref[...] + pos_ref[...]).reshape(tb * n, d)

    x = x_scr[...]                                      # (tb*n, D) f32

    # -- encoder layer `l` (its weights were DMA'd for this grid step) --
    # drop_path / dropouts are identities in eval mode.
    y = _layernorm(x, ln0g_ref[0], ln0b_ref[0])
    x = x + _attention(y, wqkv_ref[0], wproj_ref[0], bproj_ref[0],
                       num_heads, tb, n)
    x = _layernorm(x, ln1g_ref[0], ln1b_ref[0])
    hmid = _gelu(_mdot(x, w1_ref[0]) + b1_ref[0])
    x = x + _mdot(hmid, w2_ref[0]) + b2_ref[0]
    x_scr[...] = x

    # -- classifier head on the last layer step: LN -> seq-pool -> fc --
    @pl.when(l == n_layers - 1)
    def _():
        xn = _layernorm(x, lng_ref[...], lnb_ref[...])            # (tb*n, D)
        xb = xn.reshape(tb, n, d)
        # attention_pool: Linear(D,1) as a VPU multiply + lane reduce.
        scores = jnp.sum(xb * wpool_ref[...], axis=-1) + bpool_ref[...]   # (tb, n)
        scores = scores - jnp.max(scores, axis=-1, keepdims=True)
        e = jnp.exp(scores)
        pw = e * pl.reciprocal(jnp.sum(e, axis=-1, keepdims=True), approx=True)
        # seq-pool p @ x through the MXU (no sublane reduction).
        pooled = jnp.einsum('bqn,bnd->bqd',
                            pw.reshape(tb, 1, n).astype(_MXU_DTYPE),
                            xb.astype(_MXU_DTYPE),
                            preferred_element_type=jnp.float32)   # (tb, 1, D)
        pooled = pooled.reshape(tb, d)
        o_ref[...] = _mdot(pooled, wfc_ref[...]) + bfc_ref[...]   # (tb, Cpad)


# ----------------------------------------------------------------- wrappers ---

def tokenizer_forward(x, conv_w, *, kernel_size=3, stride=1, padding=3,
                      pool_k=3, pool_s=2, pool_p=1):
    """Conv2d(no bias) + ReLU + MaxPool2d + flatten/transpose -> (B, N, D)."""
    B, Cin, H, W = x.shape
    Cout = conv_w.shape[0]
    Ho = (H + 2 * padding - kernel_size) // stride + 1
    Wo = (W + 2 * padding - kernel_size) // stride + 1
    K = Cin * kernel_size * kernel_size
    M = B * Ho * Wo

    # --- im2col in (K, M) orientation (lane-dense kernel operands/output) ---
    # TODO(synk): for large resolutions, build the conv as shifted accumulating
    # matmuls inside the kernel (and fuse ReLU + 3x3 maxpool) instead of
    # materializing the K-expanded im2col in HBM.
    xpad = jnp.pad(x, ((0, 0), (0, 0), (padding, padding), (padding, padding)))
    cols = jnp.stack(
        [xpad[:, c, di:di + stride * Ho:stride, dj:dj + stride * Wo:stride]
         for c in range(Cin)
         for di in range(kernel_size) for dj in range(kernel_size)], axis=0)
    cols = cols.reshape(K, M)

    Kpad = _round_up(K, 8)                                  # 27 -> 32
    TILE_M = min(512, _round_up(M, 128))                    # lane-dense M tiles
    Mpad = _round_up(M, TILE_M)
    cols = jnp.pad(cols, ((0, Kpad - K), (0, Mpad - M))).astype(_MXU_DTYPE)
    wmat = jnp.pad(conv_w.reshape(Cout, K),
                   ((0, 0), (0, Kpad - K))).astype(_MXU_DTYPE)

    conv_vmem = int(min(100 * _MIB,
                        max(32 * _MIB,
                            4 * (Cout * Kpad * 2
                                 + 2 * Kpad * TILE_M * 2
                                 + 2 * Cout * TILE_M * 4))))
    conv_out = pl.pallas_call(
        conv_mm_relu_kernel,
        out_shape=jax.ShapeDtypeStruct((Cout, Mpad), jnp.float32),
        grid=(Mpad // TILE_M,),
        in_specs=[pl.BlockSpec((Cout, Kpad), lambda m: (0, 0)),
                  pl.BlockSpec((Kpad, TILE_M), lambda m: (0, m))],
        out_specs=pl.BlockSpec((Cout, TILE_M), lambda m: (0, m)),
        compiler_params=pltpu.CompilerParams(
            dimension_semantics=("parallel",),
            vmem_limit_bytes=conv_vmem),
    )(wmat, cols)
    feat = conv_out[:, :M].reshape(Cout, B, Ho, Wo)

    # --- MaxPool2d: chained maximum over the 9 taps in XLA glue ---
    Hp = (Ho + 2 * pool_p - pool_k) // pool_s + 1
    Wp = (Wo + 2 * pool_p - pool_k) // pool_s + 1
    fpad = jnp.pad(feat, ((0, 0), (0, 0), (pool_p, pool_p), (pool_p, pool_p)),
                   constant_values=-jnp.inf)
    pooled = None
    for di in range(pool_k):
        for dj in range(pool_k):
            tap = fpad[:, :, di:di + pool_s * Hp:pool_s, dj:dj + pool_s * Wp:pool_s]
            pooled = tap if pooled is None else jnp.maximum(pooled, tap)

    # (Cout, B, Hp, Wp) -> (B, Hp*Wp, Cout) == (B, N, D)
    return jnp.transpose(pooled, (1, 2, 3, 0)).reshape(B, Hp * Wp, Cout)


def transformer_forward(tokens, p, *, num_heads):
    B, N, D = tokens.shape
    L = p['wqkv'].shape[0]
    Fdim = p['w1'].shape[-1]
    Cpad = p['wfc'].shape[-1]
    dh = D // num_heads

    # Batch tiling: fold the whole (small) batch into one grid step; for larger
    # batches use TB=8 tiles (divisible by 8 -> legal output block sublane dim).
    # TODO(synk): for very large N*D, shrink TB so per-step temps fit VMEM.
    TB = B if B <= 8 else 8
    Bpad = _round_up(B, TB)
    if Bpad != B:
        tokens = jnp.pad(tokens, ((0, Bpad - B), (0, 0), (0, 0)))
    num_bt = Bpad // TB

    def const_spec(shape):
        return pl.BlockSpec(shape, lambda b, l, _n=len(shape): (0,) * _n)

    def layer_spec(shape):                      # stacked (L, ...) -> streamed by l
        return pl.BlockSpec((1,) + shape,
                            lambda b, l, _n=len(shape): (l,) + (0,) * _n)

    # --- scoped-VMEM budget: streamed (double-buffered) layer weights + resident
    #     tokens/head/scratch + compute temps, with 2x headroom ---
    wb = 2  # bf16 bytes
    per_layer = (4 * D * 4 + D * 3 * D * wb + D * D * wb
                 + D * Fdim * wb + Fdim * D * wb + (Fdim + 2 * D) * 4)
    head_bytes = (3 * D + 1) * 4 + D * Cpad * wb + Cpad * 4
    io_bytes = 2 * TB * N * D * 4 + N * D * 4 + 2 * TB * Cpad * 4
    scratch_bytes = TB * N * D * 4
    temp_bytes = 8 * TB * N * max(3 * D, Fdim) * 4
    vmem_limit = int(min(100 * _MIB,
                         max(32 * _MIB,
                             2 * (2 * per_layer + head_bytes + io_bytes
                                  + scratch_bytes + temp_bytes))))

    kern = functools.partial(transformer_kernel, num_heads=num_heads)
    out = pl.pallas_call(
        kern,
        out_shape=jax.ShapeDtypeStruct((Bpad, Cpad), jnp.float32),
        grid=(num_bt, L),
        in_specs=[
            pl.BlockSpec((TB, N, D), lambda b, l: (b, 0, 0)),   # tokens (per tile)
            const_spec((1, N, D)),                              # pos_emb
            layer_spec((1, D)), layer_spec((1, D)),             # pre_norm g/b
            layer_spec((D, 3 * D)),                             # qkv W^T (bf16)
            layer_spec((num_heads, dh, D)),                     # proj W^T head-split
            layer_spec((1, D)),                                 # proj bias
            layer_spec((1, D)), layer_spec((1, D)),             # norm1 g/b
            layer_spec((D, Fdim)), layer_spec((1, Fdim)),       # linear1 W^T, b
            layer_spec((Fdim, D)), layer_spec((1, D)),          # linear2 W^T, b
            const_spec((1, D)), const_spec((1, D)),             # head LN g/b
            const_spec((1, D)), const_spec((1, 1)),             # attention_pool w,b
            const_spec((D, Cpad)), const_spec((1, Cpad)),       # fc W^T (padded), b
        ],
        out_specs=pl.BlockSpec((TB, Cpad), lambda b, l: (b, 0)),
        scratch_shapes=[pltpu.VMEM((TB * N, D), jnp.float32)],  # carried activations
        compiler_params=pltpu.CompilerParams(
            dimension_semantics=("parallel", "arbitrary"),
            vmem_limit_bytes=vmem_limit),
    )(tokens, p['pos_emb'],
      p['ln0g'], p['ln0b'], p['wqkv'], p['wproj'], p['bproj'],
      p['ln1g'], p['ln1b'], p['w1'], p['b1'], p['w2'], p['b2'],
      p['lng'], p['lnb'], p['wpool'], p['bpool'], p['wfc'], p['bfc'])
    return out[:B]


def cct_forward(params, x, *, num_heads, num_classes):
    tokens = tokenizer_forward(x, params['conv_w'])
    logits = transformer_forward(tokens, params, num_heads=num_heads)
    return logits[:, :num_classes]


# ------------------------------------------------------------ param builders ---

def init_params(key, *, cin, D, num_layers, num_heads, mlp_ratio, num_classes,
                N, ksize):
    keys = jax.random.split(key, 4 + num_layers)
    fan_in = cin * ksize * ksize
    # Conv2d: kaiming_normal_, fan_in mode, relu gain
    conv_w = (jax.random.normal(keys[0], (D, cin, ksize, ksize), jnp.float32)
              * jnp.sqrt(2.0 / fan_in))
    # positional embedding: trunc_normal_(std=0.2) (truncation at +/-2 ~ no-op)
    pos_emb = jax.random.normal(keys[1], (1, N, D), jnp.float32) * 0.2
    Fdim = int(D * mlp_ratio)
    dh = D // num_heads
    std = 0.02            # Linear weights: trunc_normal_(std=0.02); biases: 0
    Cpad = max(128, _round_up(num_classes, 128))
    L = num_layers

    lkeys = [jax.random.split(keys[4 + i], 4) for i in range(L)]
    stack = lambda fn: jnp.stack([fn(i) for i in range(L)], axis=0)

    params = dict(
        conv_w=conv_w, pos_emb=pos_emb,
        # per-layer weights stacked along a leading L axis (streamed per layer);
        # matmul operands stored pre-cast to bf16, LN params / biases stay f32.
        ln0g=jnp.ones((L, 1, D), jnp.float32),
        ln0b=jnp.zeros((L, 1, D), jnp.float32),
        wqkv=stack(lambda i: (jax.random.normal(lkeys[i][0], (3 * D, D),
                                                jnp.float32) * std).T
                   ).astype(_MXU_DTYPE),
        wproj=stack(lambda i: (jax.random.normal(lkeys[i][1], (D, D),
                                                 jnp.float32) * std)
                    .T.reshape(num_heads, dh, D)).astype(_MXU_DTYPE),
        bproj=jnp.zeros((L, 1, D), jnp.float32),
        ln1g=jnp.ones((L, 1, D), jnp.float32),
        ln1b=jnp.zeros((L, 1, D), jnp.float32),
        w1=stack(lambda i: (jax.random.normal(lkeys[i][2], (Fdim, D),
                                              jnp.float32) * std).T
                 ).astype(_MXU_DTYPE),
        b1=jnp.zeros((L, 1, Fdim), jnp.float32),
        w2=stack(lambda i: (jax.random.normal(lkeys[i][3], (D, Fdim),
                                              jnp.float32) * std).T
                 ).astype(_MXU_DTYPE),
        b2=jnp.zeros((L, 1, D), jnp.float32),
        # head
        lng=jnp.ones((1, D), jnp.float32), lnb=jnp.zeros((1, D), jnp.float32),
        wpool=jax.random.normal(keys[2], (1, D), jnp.float32) * std,
        bpool=jnp.zeros((1, 1), jnp.float32),
        wfc=jnp.pad((jax.random.normal(keys[3], (num_classes, D),
                                       jnp.float32) * std).T,
                    ((0, 0), (0, Cpad - num_classes))).astype(_MXU_DTYPE),
        bfc=jnp.zeros((1, Cpad), jnp.float32),
    )
    return params


# ---------------------------------------------------------------------- main ---

if __name__ == "__main__":
    # Small CCT config: img 8x8, 3 input channels, embed_dim 32, 4 heads, 2 layers.
    B, Cin, H = 2, 3, 8
    D, num_heads, num_layers, mlp_ratio, num_classes = 32, 4, 2, 4.0, 10
    ksize, stride, pad = 3, 1, 3
    pool_k, pool_s, pool_p = 3, 2, 1

    # Tokenizer output spatial size -> sequence length
    Ho = (H + 2 * pad - ksize) // stride + 1
    Hp = (Ho + 2 * pool_p - pool_k) // pool_s + 1
    N = Hp * Hp

    key = jax.random.PRNGKey(0)
    kx, kp = jax.random.split(key)
    x = jax.random.normal(kx, (B, Cin, H, H), jnp.float32)
    params = init_params(kp, cin=Cin, D=D, num_layers=num_layers,
                         num_heads=num_heads, mlp_ratio=mlp_ratio,
                         num_classes=num_classes, N=N, ksize=ksize)

    fwd = jax.jit(functools.partial(cct_forward, num_heads=num_heads,
                                    num_classes=num_classes))
    out = fwd(params, x)
    jax.block_until_ready(out)
    assert out.shape == (B, num_classes), out.shape
    assert bool(jnp.all(jnp.isfinite(out)))
    print("KERNEL_OK")
</pallas_src>

<mosaic_0001>
module attributes {stable_mosaic.version = 11 : i64} {
  func.func @conv_mm_relu_kernel(%arg0: i32, %arg1: memref<32x32xbf16, #tpu.memory_space<vmem>>, %arg2: memref<32x384xbf16, #tpu.memory_space<vmem>>, %arg3: memref<32x384xf32, #tpu.memory_space<vmem>>) attributes {dimension_semantics = [#tpu.dimension_semantics<parallel>], iteration_bounds = array<i64: 1>, scalar_prefetch = 0 : i64, scratch_operands = 0 : i64, tpu.core_type = #tpu.core_type<tc>, window_params = [{pipeline_mode = #tpu.pipeline_mode<synchronous>, transform_indices = @transform_0, window_bounds = array<i64: 32, 32>}, {transform_indices = @transform_1, window_bounds = array<i64: 32, 384>}, {transform_indices = @transform_2, window_bounds = array<i64: 32, 384>}]} {
    %c0 = arith.constant 0 : index
    %c0_0 = arith.constant 0 : index
    %0 = vector.load %arg1[%c0, %c0_0] : memref<32x32xbf16, #tpu.memory_space<vmem>>, vector<32x32xbf16>
    %c0_1 = arith.constant 0 : index
    %c0_2 = arith.constant 0 : index
    %1 = vector.load %arg2[%c0_1, %c0_2] : memref<32x384xbf16, #tpu.memory_space<vmem>>, vector<32x384xbf16>
    %cst = arith.constant dense<0.000000e+00> : vector<32x384xf32>
    %2 = tpu.matmul %0, %1, %cst {dimension_numbers = #tpu.dot_dimension_numbers<[1], [0], [0], [1], [0, 0, 1, 1], [], []>} : vector<32x32xbf16>, vector<32x384xbf16>, vector<32x384xf32> -> vector<32x384xf32>
    %cst_3 = arith.constant 0.000000e+00 : f32
    %3 = vector.broadcast %cst_3 : f32 to vector<32x384xf32>
    %4 = arith.maximumf %2, %3 : vector<32x384xf32>
    %c0_4 = arith.constant 0 : index
    %c0_5 = arith.constant 0 : index
    %5 = vector.load %arg3[%c0_4, %c0_5] : memref<32x384xf32, #tpu.memory_space<vmem>>, vector<32x384xf32>
    tpu.vector_store %arg3[%c0_4, %c0_5], %4 {strides = array<i32>} : memref<32x384xf32, #tpu.memory_space<vmem>>, vector<32x384xf32>,
    return
  }
  func.func @transform_0(%arg0: i32) -> (i32, i32) {
    %c0_i32 = arith.constant 0 : i32
    %c0_i32_0 = arith.constant 0 : i32
    %c0_i32_1 = arith.constant 0 : i32
    return %c0_i32, %c0_i32_0 : i32, i32
  }
  func.func @transform_1(%arg0: i32) -> (i32, i32) {
    %c0_i32 = arith.constant 0 : i32
    %c0_i32_0 = arith.constant 0 : i32
    return %c0_i32, %arg0 : i32, i32
  }
  func.func @transform_2(%arg0: i32) -> (i32, i32) {
    %c0_i32 = arith.constant 0 : i32
    %c0_i32_0 = arith.constant 0 : i32
    return %c0_i32, %arg0 : i32, i32
  }
}

module attributes {stable_mosaic.version = 11 : i64} {
  func.func @transformer_kernel(%arg0: i32, %arg1: i32, %arg2: memref<2x36x32xf32, #tpu.memory_space<vmem>>, %arg3: memref<1x36x32xf32, #tpu.memory_space<vmem>>, %arg4: memref<1x1x32xf32, #tpu.memory_space<vmem>>, %arg5: memref<1x1x32xf32, #tpu.memory_space<vmem>>, %arg6: memref<1x32x96xbf16, #tpu.memory_space<vmem>>, %arg7: memref<1x4x8x32xbf16, #tpu.memory_space<vmem>>, %arg8: memref<1x1x32xf32, #tpu.memory_space<vmem>>, %arg9: memref<1x1x32xf32, #tpu.memory_space<vmem>>, %arg10: memref<1x1x32xf32, #tpu.memory_space<vmem>>, %arg11: memref<1x32x128xbf16, #tpu.memory_space<vmem>>, %arg12: memref<1x1x128xf32, #tpu.memory_space<vmem>>, %arg13: memref<1x128x32xbf16, #tpu.memory_space<vmem>>, %arg14: memref<1x1x32xf32, #tpu.memory_space<vmem>>, %arg15: memref<1x32xf32, #tpu.memory_space<vmem>>, %arg16: memref<1x32xf32, #tpu.memory_space<vmem>>, %arg17: memref<1x32xf32, #tpu.memory_space<vmem>>, %arg18: memref<1x1xf32, #tpu.memory_space<vmem>>, %arg19: memref<32x128xbf16, #tpu.memory_space<vmem>>, %arg20: memref<1x128xf32, #tpu.memory_space<vmem>>, %arg21: memref<2x128xf32, #tpu.memory_space<vmem>>, %arg22: memref<72x32xf32, #tpu.memory_space<vmem>>) attributes {dimension_semantics = [#tpu.dimension_semantics<parallel>, #tpu.dimension_semantics<arbitrary>], iteration_bounds = array<i64: 1, 2>, scalar_prefetch = 0 : i64, scratch_operands = 1 : i64, tpu.core_type = #tpu.core_type<tc>, window_params = [{transform_indices = @transform_0, window_bounds = array<i64: 2, 36, 32>}, {pipeline_mode = #tpu.pipeline_mode<synchronous>, transform_indices = @transform_1, window_bounds = array<i64: 1, 36, 32>}, {transform_indices = @transform_2, window_bounds = array<i64: 1, 1, 32>}, {transform_indices = @transform_3, window_bounds = array<i64: 1, 1, 32>}, {transform_indices = @transform_4, window_bounds = array<i64: 1, 32, 96>}, {transform_indices = @transform_5, window_bounds = array<i64: 1, 4, 8, 32>}, {transform_indices = @transform_6, window_bounds = array<i64: 1, 1, 32>}, {transform_indices = @transform_7, window_bounds = array<i64: 1, 1, 32>}, {transform_indices = @transform_8, window_bounds = array<i64: 1, 1, 32>}, {transform_indices = @transform_9, window_bounds = array<i64: 1, 32, 128>}, {transform_indices = @transform_10, window_bounds = array<i64: 1, 1, 128>}, {transform_indices = @transform_11, window_bounds = array<i64: 1, 128, 32>}, {transform_indices = @transform_12, window_bounds = array<i64: 1, 1, 32>}, {pipeline_mode = #tpu.pipeline_mode<synchronous>, transform_indices = @transform_13, window_bounds = array<i64: 1, 32>}, {pipeline_mode = #tpu.pipeline_mode<synchronous>, transform_indices = @transform_14, window_bounds = array<i64: 1, 32>}, {pipeline_mode = #tpu.pipeline_mode<synchronous>, transform_indices = @transform_15, window_bounds = array<i64: 1, 32>}, {pipeline_mode = #tpu.pipeline_mode<synchronous>, transform_indices = @transform_16, window_bounds = array<i64: 1, 1>}, {pipeline_mode = #tpu.pipeline_mode<synchronous>, transform_indices = @transform_17, window_bounds = array<i64: 32, 128>}, {pipeline_mode = #tpu.pipeline_mode<synchronous>, transform_indices = @transform_18, window_bounds = array<i64: 1, 128>}, {transform_indices = @transform_19, window_bounds = array<i64: 2, 128>}]} {
    %c0_i32 = arith.constant 0 : i32
    %0 = arith.cmpi eq, %arg1, %c0_i32 : i32
    %1 = arith.extui %0 : i1 to i32
    %c0_i32_0 = arith.constant 0 : i32
    %2 = arith.cmpi ne, %1, %c0_i32_0 : i32
    scf.if %2 {
      %c0_92 = arith.constant 0 : index
      %c0_93 = arith.constant 0 : index
      %c0_94 = arith.constant 0 : index
      %239 = vector.load %arg2[%c0_92, %c0_93, %c0_94] : memref<2x36x32xf32, #tpu.memory_space<vmem>>, vector<2x36x32xf32>
      %c0_95 = arith.constant 0 : index
      %c0_96 = arith.constant 0 : index
      %c0_97 = arith.constant 0 : index
      %240 = vector.load %arg3[%c0_95, %c0_96, %c0_97] : memref<1x36x32xf32, #tpu.memory_space<vmem>>, vector<1x36x32xf32>
      %241 = vector.broadcast %240 : vector<1x36x32xf32> to vector<2x36x32xf32>
      %242 = arith.addf %239, %241 : vector<2x36x32xf32>
      %243 = vector.shape_cast %242 : vector<2x36x32xf32> to vector<72x32xf32>
      %c0_98 = arith.constant 0 : index
      %c0_99 = arith.constant 0 : index
      %244 = vector.load %arg22[%c0_98, %c0_99] : memref<72x32xf32, #tpu.memory_space<vmem>>, vector<72x32xf32>
      tpu.vector_store %arg22[%c0_98, %c0_99], %243 {strides = array<i32>} : memref<72x32xf32, #tpu.memory_space<vmem>>, vector<72x32xf32>,
    } else {
    }
    %c0 = arith.constant 0 : index
    %c0_1 = arith.constant 0 : index
    %3 = vector.load %arg22[%c0, %c0_1] : memref<72x32xf32, #tpu.memory_space<vmem>>, vector<72x32xf32>
    %c0_2 = arith.constant 0 : index
    %c0_3 = arith.constant 0 : index
    %c0_4 = arith.constant 0 : index
    %4 = vector.load %arg4[%c0_2, %c0_3, %c0_4] : memref<1x1x32xf32, #tpu.memory_space<vmem>>, vector<1x1x32xf32>
    %5 = vector.shape_cast %4 : vector<1x1x32xf32> to vector<1x32xf32>
    %c0_5 = arith.constant 0 : index
    %c0_6 = arith.constant 0 : index
    %c0_7 = arith.constant 0 : index
    %6 = vector.load %arg5[%c0_5, %c0_6, %c0_7] : memref<1x1x32xf32, #tpu.memory_space<vmem>>, vector<1x1x32xf32>
    %7 = vector.shape_cast %6 : vector<1x1x32xf32> to vector<1x32xf32>
    %cst = arith.constant dense<0.000000e+00> : vector<72xf32>
    %8 = vector.multi_reduction <add>, %3, %cst [1] : vector<72x32xf32> to vector<72xf32>
    %9 = vector.shape_cast %8 : vector<72xf32> to vector<72x1xf32>
    %cst_8 = arith.constant 3.200000e+01 : f32
    %10 = vector.broadcast %cst_8 : f32 to vector<72x1xf32>
    %11 = arith.divf %9, %10 : vector<72x1xf32>
    %12 = vector.broadcast %11 : vector<72x1xf32> to vector<72x32xf32>
    %13 = arith.subf %3, %12 : vector<72x32xf32>
    %14 = arith.mulf %13, %13 : vector<72x32xf32>
    %cst_9 = arith.constant dense<0.000000e+00> : vector<72xf32>
    %15 = vector.multi_reduction <add>, %14, %cst_9 [1] : vector<72x32xf32> to vector<72xf32>
    %16 = vector.shape_cast %15 : vector<72xf32> to vector<72x1xf32>
    %cst_10 = arith.constant 3.200000e+01 : f32
    %17 = vector.broadcast %cst_10 : f32 to vector<72x1xf32>
    %18 = arith.divf %16, %17 : vector<72x1xf32>
    %19 = vector.broadcast %11 : vector<72x1xf32> to vector<72x32xf32>
    %20 = arith.subf %3, %19 : vector<72x32xf32>
    %cst_11 = arith.constant 9.99999974E-6 : f32
    %21 = vector.broadcast %cst_11 : f32 to vector<72x1xf32>
    %22 = arith.addf %18, %21 : vector<72x1xf32>
    %23 = math.rsqrt %22 : vector<72x1xf32>
    %24 = vector.broadcast %23 : vector<72x1xf32> to vector<72x32xf32>
    %25 = arith.mulf %20, %24 : vector<72x32xf32>
    %26 = vector.broadcast %5 : vector<1x32xf32> to vector<72x32xf32>
    %27 = arith.mulf %25, %26 : vector<72x32xf32>
    %28 = vector.broadcast %7 : vector<1x32xf32> to vector<72x32xf32>
    %29 = arith.addf %27, %28 : vector<72x32xf32>
    %c0_12 = arith.constant 0 : index
    %c0_13 = arith.constant 0 : index
    %c0_14 = arith.constant 0 : index
    %30 = vector.load %arg6[%c0_12, %c0_13, %c0_14] : memref<1x32x96xbf16, #tpu.memory_space<vmem>>, vector<1x32x96xbf16>
    %31 = vector.shape_cast %30 : vector<1x32x96xbf16> to vector<32x96xbf16>
    %c0_15 = arith.constant 0 : index
    %c0_16 = arith.constant 0 : index
    %c0_17 = arith.constant 0 : index
    %c0_18 = arith.constant 0 : index
    %32 = vector.load %arg7[%c0_15, %c0_16, %c0_17, %c0_18] : memref<1x4x8x32xbf16, #tpu.memory_space<vmem>>, vector<1x4x8x32xbf16>
    %33 = vector.shape_cast %32 : vector<1x4x8x32xbf16> to vector<4x8x32xbf16>
    %c0_19 = arith.constant 0 : index
    %c0_20 = arith.constant 0 : index
    %c0_21 = arith.constant 0 : index
    %34 = vector.load %arg8[%c0_19, %c0_20, %c0_21] : memref<1x1x32xf32, #tpu.memory_space<vmem>>, vector<1x1x32xf32>
    %35 = vector.shape_cast %34 : vector<1x1x32xf32> to vector<1x32xf32>
    %36 = arith.truncf %29 : vector<72x32xf32> to vector<72x32xbf16>
    %cst_22 = arith.constant dense<0.000000e+00> : vector<72x96xf32>
    %37 = tpu.matmul %36, %31, %cst_22 {dimension_numbers = #tpu.dot_dimension_numbers<[1], [0], [0], [1], [0, 0, 1, 1], [], []>} : vector<72x32xbf16>, vector<32x96xbf16>, vector<72x96xf32> -> vector<72x96xf32>
    %38 = vector.shape_cast %37 : vector<72x96xf32> to vector<2x36x96xf32>
    %cst_23 = arith.constant 0.000000e+00 : f32
    %39 = vector.broadcast %cst_23 : f32 to vector<72x32xf32>
    %40 = vector.extract_strided_slice %38 {offsets = [0, 0, 0], sizes = [2, 36, 8], strides = [1, 1, 1]} : vector<2x36x96xf32> to vector<2x36x8xf32>
    %41 = vector.extract_strided_slice %38 {offsets = [0, 0, 32], sizes = [2, 36, 8], strides = [1, 1, 1]} : vector<2x36x96xf32> to vector<2x36x8xf32>
    %42 = vector.extract_strided_slice %38 {offsets = [0, 0, 64], sizes = [2, 36, 8], strides = [1, 1, 1]} : vector<2x36x96xf32> to vector<2x36x8xf32>
    %43 = arith.truncf %40 : vector<2x36x8xf32> to vector<2x36x8xbf16>
    %44 = arith.truncf %41 : vector<2x36x8xf32> to vector<2x36x8xbf16>
    "tpu.trace_start"() <{level = 10 : i32, message = "bqc,bkc->bqk"}> : () -> ()
    %cst_24 = arith.constant dense<0.000000e+00> : vector<2x36x36xf32>
    %45 = tpu.matmul %43, %44, %cst_24 {dimension_numbers = #tpu.dot_dimension_numbers<[2], [2], [1], [1], [0, 0, 0, 1, 1, 1], [0], [0]>} : vector<2x36x8xbf16>, vector<2x36x8xbf16>, vector<2x36x36xf32> -> vector<2x36x36xf32>
    "tpu.trace_stop"() : () -> ()
    %cst_25 = arith.constant 0.353553385 : f32
    %46 = vector.broadcast %cst_25 : f32 to vector<2x36x36xf32>
    %47 = arith.mulf %45, %46 : vector<2x36x36xf32>
    %cst_26 = arith.constant dense<0xFF800000> : vector<2x36xf32>
    %48 = vector.multi_reduction <maximumf>, %47, %cst_26 [2] : vector<2x36x36xf32> to vector<2x36xf32>
    %49 = vector.shape_cast %48 : vector<2x36xf32> to vector<2x36x1xf32>
    %50 = vector.broadcast %49 : vector<2x36x1xf32> to vector<2x36x36xf32>
    %51 = arith.subf %47, %50 : vector<2x36x36xf32>
    %52 = math.exp %51 : vector<2x36x36xf32>
    %cst_27 = arith.constant dense<0.000000e+00> : vector<2x36xf32>
    %53 = vector.multi_reduction <add>, %52, %cst_27 [2] : vector<2x36x36xf32> to vector<2x36xf32>
    %54 = vector.shape_cast %53 : vector<2x36xf32> to vector<2x36x1xf32>
    %55 = tpu.reciprocal %54 {approx = true} : vector<2x36x1xf32> -> vector<2x36x1xf32>
    %56 = vector.broadcast %55 : vector<2x36x1xf32> to vector<2x36x36xf32>
    %57 = arith.mulf %52, %56 : vector<2x36x36xf32>
    %58 = arith.truncf %57 : vector<2x36x36xf32> to vector<2x36x36xbf16>
    %59 = arith.truncf %42 : vector<2x36x8xf32> to vector<2x36x8xbf16>
    "tpu.trace_start"() <{level = 10 : i32, message = "bqk,bkc->bqc"}> : () -> ()
    %cst_28 = arith.constant dense<0.000000e+00> : vector<2x36x8xf32>
    %60 = tpu.matmul %58, %59, %cst_28 {dimension_numbers = #tpu.dot_dimension_numbers<[2], [1], [1], [2], [0, 0, 0, 1, 1, 2], [0], [0]>} : vector<2x36x36xbf16>, vector<2x36x8xbf16>, vector<2x36x8xf32> -> vector<2x36x8xf32>
    "tpu.trace_stop"() : () -> ()
    %61 = vector.shape_cast %60 : vector<2x36x8xf32> to vector<72x8xf32>
    %62 = vector.extract_strided_slice %33 {offsets = [0, 0, 0], sizes = [1, 8, 32], strides = [1, 1, 1]} : vector<4x8x32xbf16> to vector<1x8x32xbf16>
    %63 = vector.shape_cast %62 : vector<1x8x32xbf16> to vector<8x32xbf16>
    %64 = arith.truncf %61 : vector<72x8xf32> to vector<72x8xbf16>
    %cst_29 = arith.constant dense<0.000000e+00> : vector<72x32xf32>
    %65 = tpu.matmul %64, %63, %cst_29 {dimension_numbers = #tpu.dot_dimension_numbers<[1], [0], [0], [1], [0, 0, 1, 1], [], []>} : vector<72x8xbf16>, vector<8x32xbf16>, vector<72x32xf32> -> vector<72x32xf32>
    %66 = arith.addf %39, %65 : vector<72x32xf32>
    %67 = vector.extract_strided_slice %38 {offsets = [0, 0, 8], sizes = [2, 36, 8], strides = [1, 1, 1]} : vector<2x36x96xf32> to vector<2x36x8xf32>
    %68 = vector.extract_strided_slice %38 {offsets = [0, 0, 40], sizes = [2, 36, 8], strides = [1, 1, 1]} : vector<2x36x96xf32> to vector<2x36x8xf32>
    %69 = vector.extract_strided_slice %38 {offsets = [0, 0, 72], sizes = [2, 36, 8], strides = [1, 1, 1]} : vector<2x36x96xf32> to vector<2x36x8xf32>
    %70 = arith.truncf %67 : vector<2x36x8xf32> to vector<2x36x8xbf16>
    %71 = arith.truncf %68 : vector<2x36x8xf32> to vector<2x36x8xbf16>
    "tpu.trace_start"() <{level = 10 : i32, message = "bqc,bkc->bqk"}> : () -> ()
    %cst_30 = arith.constant dense<0.000000e+00> : vector<2x36x36xf32>
    %72 = tpu.matmul %70, %71, %cst_30 {dimension_numbers = #tpu.dot_dimension_numbers<[2], [2], [1], [1], [0, 0, 0, 1, 1, 1], [0], [0]>} : vector<2x36x8xbf16>, vector<2x36x8xbf16>, vector<2x36x36xf32> -> vector<2x36x36xf32>
    "tpu.trace_stop"() : () -> ()
    %cst_31 = arith.constant 0.353553385 : f32
    %73 = vector.broadcast %cst_31 : f32 to vector<2x36x36xf32>
    %74 = arith.mulf %72, %73 : vector<2x36x36xf32>
    %cst_32 = arith.constant dense<0xFF800000> : vector<2x36xf32>
    %75 = vector.multi_reduction <maximumf>, %74, %cst_32 [2] : vector<2x36x36xf32> to vector<2x36xf32>
    %76 = vector.shape_cast %75 : vector<2x36xf32> to vector<2x36x1xf32>
    %77 = vector.broadcast %76 : vector<2x36x1xf32> to vector<2x36x36xf32>
    %78 = arith.subf %74, %77 : vector<2x36x36xf32>
    %79 = math.exp %78 : vector<2x36x36xf32>
    %cst_33 = arith.constant dense<0.000000e+00> : vector<2x36xf32>
    %80 = vector.multi_reduction <add>, %79, %cst_33 [2] : vector<2x36x36xf32> to vector<2x36xf32>
    %81 = vector.shape_cast %80 : vector<2x36xf32> to vector<2x36x1xf32>
    %82 = tpu.reciprocal %81 {approx = true} : vector<2x36x1xf32> -> vector<2x36x1xf32>
    %83 = vector.broadcast %82 : vector<2x36x1xf32> to vector<2x36x36xf32>
    %84 = arith.mulf %79, %83 : vector<2x36x36xf32>
    %85 = arith.truncf %84 : vector<2x36x36xf32> to vector<2x36x36xbf16>
    %86 = arith.truncf %69 : vector<2x36x8xf32> to vector<2x36x8xbf16>
    "tpu.trace_start"() <{level = 10 : i32, message = "bqk,bkc->bqc"}> : () -> ()
    %cst_34 = arith.constant dense<0.000000e+00> : vector<2x36x8xf32>
    %87 = tpu.matmul %85, %86, %cst_34 {dimension_numbers = #tpu.dot_dimension_numbers<[2], [1], [1], [2], [0, 0, 0, 1, 1, 2], [0], [0]>} : vector<2x36x36xbf16>, vector<2x36x8xbf16>, vector<2x36x8xf32> -> vector<2x36x8xf32>
    "tpu.trace_stop"() : () -> ()
    %88 = vector.shape_cast %87 : vector<2x36x8xf32> to vector<72x8xf32>
    %89 = vector.extract_strided_slice %33 {offsets = [1, 0, 0], sizes = [1, 8, 32], strides = [1, 1, 1]} : vector<4x8x32xbf16> to vector<1x8x32xbf16>
    %90 = vector.shape_cast %89 : vector<1x8x32xbf16> to vector<8x32xbf16>
    %91 = arith.truncf %88 : vector<72x8xf32> to vector<72x8xbf16>
    %cst_35 = arith.constant dense<0.000000e+00> : vector<72x32xf32>
    %92 = tpu.matmul %91, %90, %cst_35 {dimension_numbers = #tpu.dot_dimension_numbers<[1], [0], [0], [1], [0, 0, 1, 1], [], []>} : vector<72x8xbf16>, vector<8x32xbf16>, vector<72x32xf32> -> vector<72x32xf32>
    %93 = arith.addf %66, %92 : vector<72x32xf32>
    %94 = vector.extract_strided_slice %38 {offsets = [0, 0, 16], sizes = [2, 36, 8], strides = [1, 1, 1]} : vector<2x36x96xf32> to vector<2x36x8xf32>
    %95 = vector.extract_strided_slice %38 {offsets = [0, 0, 48], sizes = [2, 36, 8], strides = [1, 1, 1]} : vector<2x36x96xf32> to vector<2x36x8xf32>
    %96 = vector.extract_strided_slice %38 {offsets = [0, 0, 80], sizes = [2, 36, 8], strides = [1, 1, 1]} : vector<2x36x96xf32> to vector<2x36x8xf32>
    %97 = arith.truncf %94 : vector<2x36x8xf32> to vector<2x36x8xbf16>
    %98 = arith.truncf %95 : vector<2x36x8xf32> to vector<2x36x8xbf16>
    "tpu.trace_start"() <{level = 10 : i32, message = "bqc,bkc->bqk"}> : () -> ()
    %cst_36 = arith.constant dense<0.000000e+00> : vector<2x36x36xf32>
    %99 = tpu.matmul %97, %98, %cst_36 {dimension_numbers = #tpu.dot_dimension_numbers<[2], [2], [1], [1], [0, 0, 0, 1, 1, 1], [0], [0]>} : vector<2x36x8xbf16>, vector<2x36x8xbf16>, vector<2x36x36xf32> -> vector<2x36x36xf32>
    "tpu.trace_stop"() : () -> ()
    %cst_37 = arith.constant 0.353553385 : f32
    %100 = vector.broadcast %cst_37 : f32 to vector<2x36x36xf32>
    %101 = arith.mulf %99, %100 : vector<2x36x36xf32>
    %cst_38 = arith.constant dense<0xFF800000> : vector<2x36xf32>
    %102 = vector.multi_reduction <maximumf>, %101, %cst_38 [2] : vector<2x36x36xf32> to vector<2x36xf32>
    %103 = vector.shape_cast %102 : vector<2x36xf32> to vector<2x36x1xf32>
    %104 = vector.broadcast %103 : vector<2x36x1xf32> to vector<2x36x36xf32>
    %105 = arith.subf %101, %104 : vector<2x36x36xf32>
    %106 = math.exp %105 : vector<2x36x36xf32>
    %cst_39 = arith.constant dense<0.000000e+00> : vector<2x36xf32>
    %107 = vector.multi_reduction <add>, %106, %cst_39 [2] : vector<2x36x36xf32> to vector<2x36xf32>
    %108 = vector.shape_cast %107 : vector<2x36xf32> to vector<2x36x1xf32>
    %109 = tpu.reciprocal %108 {approx = true} : vector<2x36x1xf32> -> vector<2x36x1xf32>
    %110 = vector.broadcast %109 : vector<2x36x1xf32> to vector<2x36x36xf32>
    %111 = arith.mulf %106, %110 : vector<2x36x36xf32>
    %112 = arith.truncf %111 : vector<2x36x36xf32> to vector<2x36x36xbf16>
    %113 = arith.truncf %96 : vector<2x36x8xf32> to vector<2x36x8xbf16>
    "tpu.trace_start"() <{level = 10 : i32, message = "bqk,bkc->bqc"}> : () -> ()
    %cst_40 = arith.constant dense<0.000000e+00> : vector<2x36x8xf32>
    %114 = tpu.matmul %112, %113, %cst_40 {dimension_numbers = #tpu.dot_dimension_numbers<[2], [1], [1], [2], [0, 0, 0, 1, 1, 2], [0], [0]>} : vector<2x36x36xbf16>, vector<2x36x8xbf16>, vector<2x36x8xf32> -> vector<2x36x8xf32>
    "tpu.trace_stop"() : () -> ()
    %115 = vector.shape_cast %114 : vector<2x36x8xf32> to vector<72x8xf32>
    %116 = vector.extract_strided_slice %33 {offsets = [2, 0, 0], sizes = [1, 8, 32], strides = [1, 1, 1]} : vector<4x8x32xbf16> to vector<1x8x32xbf16>
    %117 = vector.shape_cast %116 : vector<1x8x32xbf16> to vector<8x32xbf16>
    %118 = arith.truncf %115 : vector<72x8xf32> to vector<72x8xbf16>
    %cst_41 = arith.constant dense<0.000000e+00> : vector<72x32xf32>
    %119 = tpu.matmul %118, %117, %cst_41 {dimension_numbers = #tpu.dot_dimension_numbers<[1], [0], [0], [1], [0, 0, 1, 1], [], []>} : vector<72x8xbf16>, vector<8x32xbf16>, vector<72x32xf32> -> vector<72x32xf32>
    %120 = arith.addf %93, %119 : vector<72x32xf32>
    %121 = vector.extract_strided_slice %38 {offsets = [0, 0, 24], sizes = [2, 36, 8], strides = [1, 1, 1]} : vector<2x36x96xf32> to vector<2x36x8xf32>
    %122 = vector.extract_strided_slice %38 {offsets = [0, 0, 56], sizes = [2, 36, 8], strides = [1, 1, 1]} : vector<2x36x96xf32> to vector<2x36x8xf32>
    %123 = vector.extract_strided_slice %38 {offsets = [0, 0, 88], sizes = [2, 36, 8], strides = [1, 1, 1]} : vector<2x36x96xf32> to vector<2x36x8xf32>
    %124 = arith.truncf %121 : vector<2x36x8xf32> to vector<2x36x8xbf16>
    %125 = arith.truncf %122 : vector<2x36x8xf32> to vector<2x36x8xbf16>
    "tpu.trace_start"() <{level = 10 : i32, message = "bqc,bkc->bqk"}> : () -> ()
    %cst_42 = arith.constant dense<0.000000e+00> : vector<2x36x36xf32>
    %126 = tpu.matmul %124, %125, %cst_42 {dimension_numbers = #tpu.dot_dimension_numbers<[2], [2], [1], [1], [0, 0, 0, 1, 1, 1], [0], [0]>} : vector<2x36x8xbf16>, vector<2x36x8xbf16>, vector<2x36x36xf32> -> vector<2x36x36xf32>
    "tpu.trace_stop"() : () -> ()
    %cst_43 = arith.constant 0.353553385 : f32
    %127 = vector.broadcast %cst_43 : f32 to vector<2x36x36xf32>
    %128 = arith.mulf %126, %127 : vector<2x36x36xf32>
    %cst_44 = arith.constant dense<0xFF800000> : vector<2x36xf32>
    %129 = vector.multi_reduction <maximumf>, %128, %cst_44 [2] : vector<2x36x36xf32> to vector<2x36xf32>
    %130 = vector.shape_cast %129 : vector<2x36xf32> to vector<2x36x1xf32>
    %131 = vector.broadcast %130 : vector<2x36x1xf32> to vector<2x36x36xf32>
    %132 = arith.subf %128, %131 : vector<2x36x36xf32>
    %133 = math.exp %132 : vector<2x36x36xf32>
    %cst_45 = arith.constant dense<0.000000e+00> : vector<2x36xf32>
    %134 = vector.multi_reduction <add>, %133, %cst_45 [2] : vector<2x36x36xf32> to vector<2x36xf32>
    %135 = vector.shape_cast %134 : vector<2x36xf32> to vector<2x36x1xf32>
    %136 = tpu.reciprocal %135 {approx = true} : vector<2x36x1xf32> -> vector<2x36x1xf32>
    %137 = vector.broadcast %136 : vector<2x36x1xf32> to vector<2x36x36xf32>
    %138 = arith.mulf %133, %137 : vector<2x36x36xf32>
    %139 = arith.truncf %138 : vector<2x36x36xf32> to vector<2x36x36xbf16>
    %140 = arith.truncf %123 : vector<2x36x8xf32> to vector<2x36x8xbf16>
    "tpu.trace_start"() <{level = 10 : i32, message = "bqk,bkc->bqc"}> : () -> ()
    %cst_46 = arith.constant dense<0.000000e+00> : vector<2x36x8xf32>
    %141 = tpu.matmul %139, %140, %cst_46 {dimension_numbers = #tpu.dot_dimension_numbers<[2], [1], [1], [2], [0, 0, 0, 1, 1, 2], [0], [0]>} : vector<2x36x36xbf16>, vector<2x36x8xbf16>, vector<2x36x8xf32> -> vector<2x36x8xf32>
    "tpu.trace_stop"() : () -> ()
    %142 = vector.shape_cast %141 : vector<2x36x8xf32> to vector<72x8xf32>
    %143 = vector.extract_strided_slice %33 {offsets = [3, 0, 0], sizes = [1, 8, 32], strides = [1, 1, 1]} : vector<4x8x32xbf16> to vector<1x8x32xbf16>
    %144 = vector.shape_cast %143 : vector<1x8x32xbf16> to vector<8x32xbf16>
    %145 = arith.truncf %142 : vector<72x8xf32> to vector<72x8xbf16>
    %cst_47 = arith.constant dense<0.000000e+00> : vector<72x32xf32>
    %146 = tpu.matmul %145, %144, %cst_47 {dimension_numbers = #tpu.dot_dimension_numbers<[1], [0], [0], [1], [0, 0, 1, 1], [], []>} : vector<72x8xbf16>, vector<8x32xbf16>, vector<72x32xf32> -> vector<72x32xf32>
    %147 = arith.addf %120, %146 : vector<72x32xf32>
    %148 = vector.broadcast %35 : vector<1x32xf32> to vector<72x32xf32>
    %149 = arith.addf %147, %148 : vector<72x32xf32>
    %150 = arith.addf %3, %149 : vector<72x32xf32>
    %c0_48 = arith.constant 0 : index
    %c0_49 = arith.constant 0 : index
    %c0_50 = arith.constant 0 : index
    %151 = vector.load %arg9[%c0_48, %c0_49, %c0_50] : memref<1x1x32xf32, #tpu.memory_space<vmem>>, vector<1x1x32xf32>
    %152 = vector.shape_cast %151 : vector<1x1x32xf32> to vector<1x32xf32>
    %c0_51 = arith.constant 0 : index
    %c0_52 = arith.constant 0 : index
    %c0_53 = arith.constant 0 : index
    %153 = vector.load %arg10[%c0_51, %c0_52, %c0_53] : memref<1x1x32xf32, #tpu.memory_space<vmem>>, vector<1x1x32xf32>
    %154 = vector.shape_cast %153 : vector<1x1x32xf32> to vector<1x32xf32>
    %cst_54 = arith.constant dense<0.000000e+00> : vector<72xf32>
    %155 = vector.multi_reduction <add>, %150, %cst_54 [1] : vector<72x32xf32> to vector<72xf32>
    %156 = vector.shape_cast %155 : vector<72xf32> to vector<72x1xf32>
    %cst_55 = arith.constant 3.200000e+01 : f32
    %157 = vector.broadcast %cst_55 : f32 to vector<72x1xf32>
    %158 = arith.divf %156, %157 : vector<72x1xf32>
    %159 = vector.broadcast %158 : vector<72x1xf32> to vector<72x32xf32>
    %160 = arith.subf %150, %159 : vector<72x32xf32>
    %161 = arith.mulf %160, %160 : vector<72x32xf32>
    %cst_56 = arith.constant dense<0.000000e+00> : vector<72xf32>
    %162 = vector.multi_reduction <add>, %161, %cst_56 [1] : vector<72x32xf32> to vector<72xf32>
    %163 = vector.shape_cast %162 : vector<72xf32> to vector<72x1xf32>
    %cst_57 = arith.constant 3.200000e+01 : f32
    %164 = vector.broadcast %cst_57 : f32 to vector<72x1xf32>
    %165 = arith.divf %163, %164 : vector<72x1xf32>
    %166 = vector.broadcast %158 : vector<72x1xf32> to vector<72x32xf32>
    %167 = arith.subf %150, %166 : vector<72x32xf32>
    %cst_58 = arith.constant 9.99999974E-6 : f32
    %168 = vector.broadcast %cst_58 : f32 to vector<72x1xf32>
    %169 = arith.addf %165, %168 : vector<72x1xf32>
    %170 = math.rsqrt %169 : vector<72x1xf32>
    %171 = vector.broadcast %170 : vector<72x1xf32> to vector<72x32xf32>
    %172 = arith.mulf %167, %171 : vector<72x32xf32>
    %173 = vector.broadcast %152 : vector<1x32xf32> to vector<72x32xf32>
    %174 = arith.mulf %172, %173 : vector<72x32xf32>
    %175 = vector.broadcast %154 : vector<1x32xf32> to vector<72x32xf32>
    %176 = arith.addf %174, %175 : vector<72x32xf32>
    %c0_59 = arith.constant 0 : index
    %c0_60 = arith.constant 0 : index
    %c0_61 = arith.constant 0 : index
    %177 = vector.load %arg11[%c0_59, %c0_60, %c0_61] : memref<1x32x128xbf16, #tpu.memory_space<vmem>>, vector<1x32x128xbf16>
    %178 = vector.shape_cast %177 : vector<1x32x128xbf16> to vector<32x128xbf16>
    %179 = arith.truncf %176 : vector<72x32xf32> to vector<72x32xbf16>
    %cst_62 = arith.constant dense<0.000000e+00> : vector<72x128xf32>
    %180 = tpu.matmul %179, %178, %cst_62 {dimension_numbers = #tpu.dot_dimension_numbers<[1], [0], [0], [1], [0, 0, 1, 1], [], []>} : vector<72x32xbf16>, vector<32x128xbf16>, vector<72x128xf32> -> vector<72x128xf32>
    %c0_63 = arith.constant 0 : index
    %c0_64 = arith.constant 0 : index
    %c0_65 = arith.constant 0 : index
    %181 = vector.load %arg12[%c0_63, %c0_64, %c0_65] : memref<1x1x128xf32, #tpu.memory_space<vmem>>, vector<1x1x128xf32>
    %182 = vector.shape_cast %181 : vector<1x1x128xf32> to vector<1x128xf32>
    %183 = vector.broadcast %182 : vector<1x128xf32> to vector<72x128xf32>
    %184 = arith.addf %180, %183 : vector<72x128xf32>
    %cst_66 = arith.constant 5.000000e-01 : f32
    %185 = vector.broadcast %cst_66 : f32 to vector<72x128xf32>
    %186 = arith.mulf %185, %184 : vector<72x128xf32>
    %cst_67 = arith.constant 0.707106769 : f32
    %187 = vector.broadcast %cst_67 : f32 to vector<72x128xf32>
    %188 = arith.mulf %184, %187 : vector<72x128xf32>
    %cst_68 = arith.constant 0.000000e+00 : f32
    %189 = vector.broadcast %cst_68 : f32 to vector<72x128xf32>
    %190 = arith.cmpf olt, %188, %189 : vector<72x128xf32>
    %cst_69 = arith.constant -1.000000e+00 : f32
    %cst_70 = arith.constant 1.000000e+00 : f32
    %191 = vector.broadcast %cst_69 : f32 to vector<72x128xf32>
    %192 = vector.broadcast %cst_70 : f32 to vector<72x128xf32>
    %193 = arith.select %190, %191, %192 : vector<72x128xi1>, vector<72x128xf32>
    %194 = math.absf %188 : vector<72x128xf32>
    %cst_71 = arith.constant 0.327591091 : f32
    %195 = vector.broadcast %cst_71 : f32 to vector<72x128xf32>
    %196 = arith.mulf %195, %194 : vector<72x128xf32>
    %cst_72 = arith.constant 1.000000e+00 : f32
    %197 = vector.broadcast %cst_72 : f32 to vector<72x128xf32>
    %198 = arith.addf %197, %196 : vector<72x128xf32>
    %cst_73 = arith.constant 1.000000e+00 : f32
    %199 = vector.broadcast %cst_73 : f32 to vector<72x128xf32>
    %200 = arith.divf %199, %198 : vector<72x128xf32>
    %cst_74 = arith.constant 1.06140542 : f32
    %201 = vector.broadcast %cst_74 : f32 to vector<72x128xf32>
    %202 = arith.mulf %201, %200 : vector<72x128xf32>
    %cst_75 = arith.constant -1.45315206 : f32
    %203 = vector.broadcast %cst_75 : f32 to vector<72x128xf32>
    %204 = arith.addf %202, %203 : vector<72x128xf32>
    %205 = arith.mulf %204, %200 : vector<72x128xf32>
    %cst_76 = arith.constant 1.42141378 : f32
    %206 = vector.broadcast %cst_76 : f32 to vector<72x128xf32>
    %207 = arith.addf %205, %206 : vector<72x128xf32>
    %208 = arith.mulf %207, %200 : vector<72x128xf32>
    %cst_77 = arith.constant -0.284496725 : f32
    %209 = vector.broadcast %cst_77 : f32 to vector<72x128xf32>
    %210 = arith.addf %208, %209 : vector<72x128xf32>
    %211 = arith.mulf %210, %200 : vector<72x128xf32>
    %cst_78 = arith.constant 0.254829586 : f32
    %212 = vector.broadcast %cst_78 : f32 to vector<72x128xf32>
    %213 = arith.addf %211, %212 : vector<72x128xf32>
    %214 = arith.mulf %213, %200 : vector<72x128xf32>
    %cst_79 = arith.constant 0.000000e+00 : f32
    %215 = vector.broadcast %cst_79 : f32 to vector<72x128xf32>
    %216 = arith.subf %215, %194 : vector<72x128xf32>
    %217 = arith.mulf %216, %194 : vector<72x128xf32>
    %218 = math.exp %217 : vector<72x128xf32>
    %219 = arith.mulf %214, %218 : vector<72x128xf32>
    %cst_80 = arith.constant 1.000000e+00 : f32
    %220 = vector.broadcast %cst_80 : f32 to vector<72x128xf32>
    %221 = arith.subf %220, %219 : vector<72x128xf32>
    %222 = arith.mulf %193, %221 : vector<72x128xf32>
    %cst_81 = arith.constant 1.000000e+00 : f32
    %223 = vector.broadcast %cst_81 : f32 to vector<72x128xf32>
    %224 = arith.addf %223, %222 : vector<72x128xf32>
    %225 = arith.mulf %186, %224 : vector<72x128xf32>
    %c0_82 = arith.constant 0 : index
    %c0_83 = arith.constant 0 : index
    %c0_84 = arith.constant 0 : index
    %226 = vector.load %arg13[%c0_82, %c0_83, %c0_84] : memref<1x128x32xbf16, #tpu.memory_space<vmem>>, vector<1x128x32xbf16>
    %227 = vector.shape_cast %226 : vector<1x128x32xbf16> to vector<128x32xbf16>
    %228 = arith.truncf %225 : vector<72x128xf32> to vector<72x128xbf16>
    %cst_85 = arith.constant dense<0.000000e+00> : vector<72x32xf32>
    %229 = tpu.matmul %228, %227, %cst_85 {dimension_numbers = #tpu.dot_dimension_numbers<[1], [0], [0], [1], [0, 0, 1, 1], [], []>} : vector<72x128xbf16>, vector<128x32xbf16>, vector<72x32xf32> -> vector<72x32xf32>
    %230 = arith.addf %176, %229 : vector<72x32xf32>
    %c0_86 = arith.constant 0 : index
    %c0_87 = arith.constant 0 : index
    %c0_88 = arith.constant 0 : index
    %231 = vector.load %arg14[%c0_86, %c0_87, %c0_88] : memref<1x1x32xf32, #tpu.memory_space<vmem>>, vector<1x1x32xf32>
    %232 = vector.shape_cast %231 : vector<1x1x32xf32> to vector<1x32xf32>
    %233 = vector.broadcast %232 : vector<1x32xf32> to vector<72x32xf32>
    %234 = arith.addf %230, %233 : vector<72x32xf32>
    %c0_89 = arith.constant 0 : index
    %c0_90 = arith.constant 0 : index
    %235 = vector.load %arg22[%c0_89, %c0_90] : memref<72x32xf32, #tpu.memory_space<vmem>>, vector<72x32xf32>
    tpu.vector_store %arg22[%c0_89, %c0_90], %234 {strides = array<i32>} : memref<72x32xf32, #tpu.memory_space<vmem>>, vector<72x32xf32>,
    %c1_i32 = arith.constant 1 : i32
    %236 = arith.cmpi eq, %arg1, %c1_i32 : i32
    %237 = arith.extui %236 : i1 to i32
    %c0_i32_91 = arith.constant 0 : i32
    %238 = arith.cmpi ne, %237, %c0_i32_91 : i32
    scf.if %238 {
      %c0_92 = arith.constant 0 : index
      %c0_93 = arith.constant 0 : index
      %239 = vector.load %arg15[%c0_92, %c0_93] : memref<1x32xf32, #tpu.memory_space<vmem>>, vector<1x32xf32>
      %c0_94 = arith.constant 0 : index
      %c0_95 = arith.constant 0 : index
      %240 = vector.load %arg16[%c0_94, %c0_95] : memref<1x32xf32, #tpu.memory_space<vmem>>, vector<1x32xf32>
      %cst_96 = arith.constant dense<0.000000e+00> : vector<72xf32>
      %241 = vector.multi_reduction <add>, %234, %cst_96 [1] : vector<72x32xf32> to vector<72xf32>
      %242 = vector.shape_cast %241 : vector<72xf32> to vector<72x1xf32>
      %cst_97 = arith.constant 3.200000e+01 : f32
      %243 = vector.broadcast %cst_97 : f32 to vector<72x1xf32>
      %244 = arith.divf %242, %243 : vector<72x1xf32>
      %245 = vector.broadcast %244 : vector<72x1xf32> to vector<72x32xf32>
      %246 = arith.subf %234, %245 : vector<72x32xf32>
      %247 = arith.mulf %246, %246 : vector<72x32xf32>
      %cst_98 = arith.constant dense<0.000000e+00> : vector<72xf32>
      %248 = vector.multi_reduction <add>, %247, %cst_98 [1] : vector<72x32xf32> to vector<72xf32>
      %249 = vector.shape_cast %248 : vector<72xf32> to vector<72x1xf32>
      %cst_99 = arith.constant 3.200000e+01 : f32
      %250 = vector.broadcast %cst_99 : f32 to vector<72x1xf32>
      %251 = arith.divf %249, %250 : vector<72x1xf32>
      %252 = vector.broadcast %244 : vector<72x1xf32> to vector<72x32xf32>
      %253 = arith.subf %234, %252 : vector<72x32xf32>
      %cst_100 = arith.constant 9.99999974E-6 : f32
      %254 = vector.broadcast %cst_100 : f32 to vector<72x1xf32>
      %255 = arith.addf %251, %254 : vector<72x1xf32>
      %256 = math.rsqrt %255 : vector<72x1xf32>
      %257 = vector.broadcast %256 : vector<72x1xf32> to vector<72x32xf32>
      %258 = arith.mulf %253, %257 : vector<72x32xf32>
      %259 = vector.broadcast %239 : vector<1x32xf32> to vector<72x32xf32>
      %260 = arith.mulf %258, %259 : vector<72x32xf32>
      %261 = vector.broadcast %240 : vector<1x32xf32> to vector<72x32xf32>
      %262 = arith.addf %260, %261 : vector<72x32xf32>
      %263 = vector.shape_cast %262 : vector<72x32xf32> to vector<2x36x32xf32>
      %c0_101 = arith.constant 0 : index
      %c0_102 = arith.constant 0 : index
      %264 = vector.load %arg17[%c0_101, %c0_102] : memref<1x32xf32, #tpu.memory_space<vmem>>, vector<1x32xf32>
      %265 = vector.shape_cast %264 : vector<1x32xf32> to vector<1x1x32xf32>
      %266 = vector.broadcast %265 : vector<1x1x32xf32> to vector<2x36x32xf32>
      %267 = arith.mulf %263, %266 : vector<2x36x32xf32>
      %cst_103 = arith.constant dense<0.000000e+00> : vector<2x36xf32>
      %268 = vector.multi_reduction <add>, %267, %cst_103 [2] : vector<2x36x32xf32> to vector<2x36xf32>
      %c0_104 = arith.constant 0 : index
      %c0_105 = arith.constant 0 : index
      %269 = vector.load %arg18[%c0_104, %c0_105] : memref<1x1xf32, #tpu.memory_space<vmem>>, vector<1x1xf32>
      %270 = vector.broadcast %269 : vector<1x1xf32> to vector<2x36xf32>
      %271 = arith.addf %268, %270 : vector<2x36xf32>
      %cst_106 = arith.constant dense<0xFF800000> : vector<2xf32>
      %272 = vector.multi_reduction <maximumf>, %271, %cst_106 [1] : vector<2x36xf32> to vector<2xf32>
      %273 = vector.shape_cast %272 : vector<2xf32> to vector<2x1xf32>
      %274 = vector.broadcast %273 : vector<2x1xf32> to vector<2x36xf32>
      %275 = arith.subf %271, %274 : vector<2x36xf32>
      %276 = math.exp %275 : vector<2x36xf32>
      %cst_107 = arith.constant dense<0.000000e+00> : vector<2xf32>
      %277 = vector.multi_reduction <add>, %276, %cst_107 [1] : vector<2x36xf32> to vector<2xf32>
      %278 = vector.shape_cast %277 : vector<2xf32> to vector<2x1xf32>
      %279 = tpu.reciprocal %278 {approx = true} : vector<2x1xf32> -> vector<2x1xf32>
      %280 = vector.broadcast %279 : vector<2x1xf32> to vector<2x36xf32>
      %281 = arith.mulf %276, %280 : vector<2x36xf32>
      %282 = vector.shape_cast %281 : vector<2x36xf32> to vector<2x1x36xf32>
      %283 = arith.truncf %282 : vector<2x1x36xf32> to vector<2x1x36xbf16>
      %284 = arith.truncf %263 : vector<2x36x32xf32> to vector<2x36x32xbf16>
      "tpu.trace_start"() <{level = 10 : i32, message = "bqn,bnd->bqd"}> : () -> ()
      %cst_108 = arith.constant dense<0.000000e+00> : vector<2x1x32xf32>
      %285 = tpu.matmul %283, %284, %cst_108 {dimension_numbers = #tpu.dot_dimension_numbers<[2], [1], [1], [2], [0, 0, 0, 1, 1, 2], [0], [0]>} : vector<2x1x36xbf16>, vector<2x36x32xbf16>, vector<2x1x32xf32> -> vector<2x1x32xf32>
      "tpu.trace_stop"() : () -> ()
      %286 = vector.shape_cast %285 : vector<2x1x32xf32> to vector<2x32xf32>
      %c0_109 = arith.constant 0 : index
      %c0_110 = arith.constant 0 : index
      %287 = vector.load %arg19[%c0_109, %c0_110] : memref<32x128xbf16, #tpu.memory_space<vmem>>, vector<32x128xbf16>
      %288 = arith.truncf %286 : vector<2x32xf32> to vector<2x32xbf16>
      %cst_111 = arith.constant dense<0.000000e+00> : vector<2x128xf32>
      %289 = tpu.matmul %288, %287, %cst_111 {dimension_numbers = #tpu.dot_dimension_numbers<[1], [0], [0], [1], [0, 0, 1, 1], [], []>} : vector<2x32xbf16>, vector<32x128xbf16>, vector<2x128xf32> -> vector<2x128xf32>
      %c0_112 = arith.constant 0 : index
      %c0_113 = arith.constant 0 : index
      %290 = vector.load %arg20[%c0_112, %c0_113] : memref<1x128xf32, #tpu.memory_space<vmem>>, vector<1x128xf32>
      %291 = vector.broadcast %290 : vector<1x128xf32> to vector<2x128xf32>
      %292 = arith.addf %289, %291 : vector<2x128xf32>
      %c0_114 = arith.constant 0 : index
      %c0_115 = arith.constant 0 : index
      %293 = vector.load %arg21[%c0_114, %c0_115] : memref<2x128xf32, #tpu.memory_space<vmem>>, vector<2x128xf32>
      tpu.vector_store %arg21[%c0_114, %c0_115], %292 {strides = array<i32>} : memref<2x128xf32, #tpu.memory_space<vmem>>, vector<2x128xf32>,
    } else {
    }
    return
  }
  func.func @transform_0(%arg0: i32, %arg1: i32) -> (i32, i32, i32) {
    %c0_i32 = arith.constant 0 : i32
    %c0_i32_0 = arith.constant 0 : i32
    %c0_i32_1 = arith.constant 0 : i32
    return %arg0, %c0_i32, %c0_i32_0 : i32, i32, i32
  }
  func.func @transform_1(%arg0: i32, %arg1: i32) -> (i32, i32, i32) {
    %c0_i32 = arith.constant 0 : i32
    %c0_i32_0 = arith.constant 0 : i32
    %c0_i32_1 = arith.constant 0 : i32
    %c0_i32_2 = arith.constant 0 : i32
    return %c0_i32, %c0_i32_0, %c0_i32_1 : i32, i32, i32
  }
  func.func @transform_2(%arg0: i32, %arg1: i32) -> (i32, i32, i32) {
    %c0_i32 = arith.constant 0 : i32
    %c0_i32_0 = arith.constant 0 : i32
    %c0_i32_1 = arith.constant 0 : i32
    return %arg1, %c0_i32, %c0_i32_0 : i32, i32, i32
  }
  func.func @transform_3(%arg0: i32, %arg1: i32) -> (i32, i32, i32) {
    %c0_i32 = arith.constant 0 : i32
    %c0_i32_0 = arith.constant 0 : i32
    %c0_i32_1 = arith.constant 0 : i32
    return %arg1, %c0_i32, %c0_i32_0 : i32, i32, i32
  }
  func.func @transform_4(%arg0: i32, %arg1: i32) -> (i32, i32, i32) {
    %c0_i32 = arith.constant 0 : i32
    %c0_i32_0 = arith.constant 0 : i32
    %c0_i32_1 = arith.constant 0 : i32
    return %arg1, %c0_i32, %c0_i32_0 : i32, i32, i32
  }
  func.func @transform_5(%arg0: i32, %arg1: i32) -> (i32, i32, i32, i32) {
    %c0_i32 = arith.constant 0 : i32
    %c0_i32_0 = arith.constant 0 : i32
    %c0_i32_1 = arith.constant 0 : i32
    %c0_i32_2 = arith.constant 0 : i32
    return %arg1, %c0_i32, %c0_i32_0, %c0_i32_1 : i32, i32, i32, i32
  }
  func.func @transform_6(%arg0: i32, %arg1: i32) -> (i32, i32, i32) {
    %c0_i32 = arith.constant 0 : i32
    %c0_i32_0 = arith.constant 0 : i32
    %c0_i32_1 = arith.constant 0 : i32
    return %arg1, %c0_i32, %c0_i32_0 : i32, i32, i32
  }
  func.func @transform_7(%arg0: i32, %arg1: i32) -> (i32, i32, i32) {
    %c0_i32 = arith.constant 0 : i32
    %c0_i32_0 = arith.constant 0 : i32
    %c0_i32_1 = arith.constant 0 : i32
    return %arg1, %c0_i32, %c0_i32_0 : i32, i32, i32
  }
  func.func @transform_8(%arg0: i32, %arg1: i32) -> (i32, i32, i32) {
    %c0_i32 = arith.constant 0 : i32
    %c0_i32_0 = arith.constant 0 : i32
    %c0_i32_1 = arith.constant 0 : i32
    return %arg1, %c0_i32, %c0_i32_0 : i32, i32, i32
  }
  func.func @transform_9(%arg0: i32, %arg1: i32) -> (i32, i32, i32) {
    %c0_i32 = arith.constant 0 : i32
    %c0_i32_0 = arith.constant 0 : i32
    %c0_i32_1 = arith.constant 0 : i32
    return %arg1, %c0_i32, %c0_i32_0 : i32, i32, i32
  }
  func.func @transform_10(%arg0: i32, %arg1: i32) -> (i32, i32, i32) {
    %c0_i32 = arith.constant 0 : i32
    %c0_i32_0 = arith.constant 0 : i32
    %c0_i32_1 = arith.constant 0 : i32
    return %arg1, %c0_i32, %c0_i32_0 : i32, i32, i32
  }
  func.func @transform_11(%arg0: i32, %arg1: i32) -> (i32, i32, i32) {
    %c0_i32 = arith.constant 0 : i32
    %c0_i32_0 = arith.constant 0 : i32
    %c0_i32_1 = arith.constant 0 : i32
    return %arg1, %c0_i32, %c0_i32_0 : i32, i32, i32
  }
  func.func @transform_12(%arg0: i32, %arg1: i32) -> (i32, i32, i32) {
    %c0_i32 = arith.constant 0 : i32
    %c0_i32_0 = arith.constant 0 : i32
    %c0_i32_1 = arith.constant 0 : i32
    return %arg1, %c0_i32, %c0_i32_0 : i32, i32, i32
  }
  func.func @transform_13(%arg0: i32, %arg1: i32) -> (i32, i32) {
    %c0_i32 = arith.constant 0 : i32
    %c0_i32_0 = arith.constant 0 : i32
    %c0_i32_1 = arith.constant 0 : i32
    return %c0_i32, %c0_i32_0 : i32, i32
  }
  func.func @transform_14(%arg0: i32, %arg1: i32) -> (i32, i32) {
    %c0_i32 = arith.constant 0 : i32
    %c0_i32_0 = arith.constant 0 : i32
    %c0_i32_1 = arith.constant 0 : i32
    return %c0_i32, %c0_i32_0 : i32, i32
  }
  func.func @transform_15(%arg0: i32, %arg1: i32) -> (i32, i32) {
    %c0_i32 = arith.constant 0 : i32
    %c0_i32_0 = arith.constant 0 : i32
    %c0_i32_1 = arith.constant 0 : i32
    return %c0_i32, %c0_i32_0 : i32, i32
  }
  func.func @transform_16(%arg0: i32, %arg1: i32) -> (i32, i32) {
    %c0_i32 = arith.constant 0 : i32
    %c0_i32_0 = arith.constant 0 : i32
    %c0_i32_1 = arith.constant 0 : i32
    return %c0_i32, %c0_i32_0 : i32, i32
  }
  func.func @transform_17(%arg0: i32, %arg1: i32) -> (i32, i32) {
    %c0_i32 = arith.constant 0 : i32
    %c0_i32_0 = arith.constant 0 : i32
    %c0_i32_1 = arith.constant 0 : i32
    return %c0_i32, %c0_i32_0 : i32, i32
  }
  func.func @transform_18(%arg0: i32, %arg1: i32) -> (i32, i32) {
    %c0_i32 = arith.constant 0 : i32
    %c0_i32_0 = arith.constant 0 : i32
    %c0_i32_1 = arith.constant 0 : i32
    return %c0_i32, %c0_i32_0 : i32, i32
  }
  func.func @transform_19(%arg0: i32, %arg1: i32) -> (i32, i32) {
    %c0_i32 = arith.constant 0 : i32
    %c0_i32_0 = arith.constant 0 : i32
    return %arg0, %c0_i32 : i32, i32
  }
}

</mosaic_0001>

<bundles_post_ra>
// kernel: cct_forward.2
= control target key start
LH: loop header
LB: loop body
LE: loop exit
PB: predicated region body
PF: predicated region fallthrough
CT: control target
= control target key end

     0   :  { %v238_v1 = vmov 0   ;;  %vm66_vm0 = vcmask 261120   ;;  %s314_s1 = inlined_call_operand.vmem [shape: bf16[32,384], index: 1, kind: input, shape index: {}]   ;;  %s315_s0 = inlined_call_operand.vmem [shape: bf16[32,32], index: 0, kind: input, shape index: {}]   ;;  %s316_s2 = inlined_call_operand.vmem [shape: f32[32,384], index: 2, kind: output, shape index: {}]  }
   0x1   :  { %v228_v0 = vld [vmem:[%s314_s1 + $0x4] ss:$12 sps:$4 sm:$0xff]   ;;  %105 = vmatprep.mubr.bf16.mxu0 %v238_v1  ;;  %v230_v2 = vld [vmem:[%s314_s1] ss:$12 sps:$4 sm:$0xff]   ;;  %v231_v3 = vld [vmem:[%s314_s1 + $0x1c] ss:$12 sps:$4 sm:$0xff]  }
   0x2   :  { %73 = vmatprep.subr.bf16.mxu0 %v228_v0  ;;  %v233_v4 = vld [vmem:[%s314_s1 + $0x18] ss:$12 sps:$4 sm:$0xff]   ;;  %v234_v5 = vld [vmem:[%s314_s1 + $0x8] ss:$12 sps:$4 sm:$0xff]   ;;  %v236_v7 = vld [vmem:[%s314_s1 + $0x20] ss:$12 sps:$4 sm:$0xff]  }
   0x3   :  { %74 = vmatpush1.bf16.msra.mxu0 %v230_v2  ;;  %v235_v6 = vld [vmem:[%s315_s0] sm:$0xff]   ;;  %219 = vmatprep.subr.bf16.mxu1 %v234_v5  ;;  %v237_v8 = vld [vmem:[%s315_s0 + $0x8] sm:$0xff]  }
   0x4   :  { %75 = vmatprep.subr.bf16.mxu0 %v231_v3  ;;  %220 = vmatpush3.bf16.msra.mxu1 %v234_v5 }
   0x5   :  { %223 = vmatprep.mubr.msk.bf16.mxu1 %vm66_vm0, %v235_v6  ;;  %221 = vmatprep.subr.bf16.mxu1 %v236_v7 }
   0x7   :  { %76 = vmatpush1.bf16.msra.mxu0 %v233_v4 }
   0x8   :  { %222 = vmatpush3.bf16.msra.mxu1 %v236_v7 }
   0xa   :  { %211 = vmatmul.mubr.msk.bf16.vlgmr.msra.gmra.mrb[0].mxu0 %vm66_vm0, %v235_v6 }
   0xb   :  { %115 = vmatprep.mubr.bf16.mxu0 %v238_v1  ;;  %224 = vmatmul.mubr.msk.bf16.vlgmr.msra.gmra.mrb[0].mxu1 %vm66_vm0, %v237_v8 }
  0x12   :  { %212 = vmatmul.mubr.msk.bf16.gmra.mrb[4].mxu0 %vm66_vm0, %v237_v8 }
  0xdd   :  { %v107_v9 = vpop.f32.mrb[0].mxu0 }
  0xde   :  { %v175_v10 = vmax.f32 %v107_v9, 0.0  ;;  %v109_v11 = vpop.f32.mrb[1].mxu0  ;;  %v225_v16 = vpop.f32.mrb[0].mxu1 }
  0xdf   :  { %v176_v12 = vmax.f32 %v109_v11, 0.0  ;;  %v111_v13 = vpop.f32.mrb[2].mxu0  ;;  %v183_v18 = vmax.f32 %v225_v16, 0.0  ;;  %v160_v19 = vpop.f32.mrb[1].mxu1 }
  0xe0   :  { %187 = vst [vmem:[%s316_s2] sm:$0xff] %v175_v10  ;;  %v178_v14 = vmax.f32 %v111_v13, 0.0  ;;  %v113_v15 = vpop.f32.mrb[3].mxu0  ;;  %v177_v20 = vmax.f32 %v160_v19, 0.0  ;;  %v226_v21 = vpop.f32.mrb[2].mxu1 }
  0xe1   :  { %188 = vst [vmem:[%s316_s2 + $0x8] sm:$0xff] %v176_v12  ;;  %v179_v17 = vmax.f32 %v113_v15, 0.0  ;;  %195 = vst [vmem:[%s316_s2 + $0x40] sm:$0xff] %v183_v18  ;;  %v186_v22 = vmax.f32 %v226_v21, 0.0  ;;  %v163_v23 = vpop.f32.mrb[3].mxu1 }
  0xe2   :  { %190 = vst [vmem:[%s316_s2 + $0x18] sm:$0xff] %v178_v14  ;;  %189 = vst [vmem:[%s316_s2 + $0x10] sm:$0xff] %v177_v20  ;;  %v180_v24 = vmax.f32 %v163_v23, 0.0 }
  0xe3   :  { %191 = vst [vmem:[%s316_s2 + $0x20] sm:$0xff] %v179_v17  ;;  %198 = vst [vmem:[%s316_s2 + $0x58] sm:$0xff] %v186_v22 }
  0xe4   :  { %192 = vst [vmem:[%s316_s2 + $0x28] sm:$0xff] %v180_v24 }
  0xe5   :  { %v117_v25 = vpop.f32.mrb[4].mxu0 }
  0xe6   :  { %v181_v26 = vmax.f32 %v117_v25, 0.0  ;;  %v119_v27 = vpop.f32.mrb[5].mxu0 }
  0xe7   :  { %v182_v28 = vmax.f32 %v119_v27, 0.0  ;;  %v121_v29 = vpop.f32.mrb[6].mxu0 }
  0xe8   :  { %193 = vst [vmem:[%s316_s2 + $0x30] sm:$0xff] %v181_v26  ;;  %v184_v30 = vmax.f32 %v121_v29, 0.0  ;;  %v123_v31 = vpop.f32.mrb[7].mxu0 }
  0xe9   :  { %194 = vst [vmem:[%s316_s2 + $0x38] sm:$0xff] %v182_v28  ;;  %v185_v32 = vmax.f32 %v123_v31, 0.0 }
  0xea   :  { %196 = vst [vmem:[%s316_s2 + $0x48] sm:$0xff] %v184_v30 }
  0xeb   :  { %197 = vst [vmem:[%s316_s2 + $0x50] sm:$0xff] %v185_v32 }

// kernel: cct_forward.3
= control target key start
LH: loop header
LB: loop body
LE: loop exit
PB: predicated region body
PF: predicated region fallthrough
CT: control target
= control target key end

     0   :  { %s8246_s0 = inlined_call_operand.vmem [shape: f32[2,36,32], index: 0, kind: input, shape index: {}]   ;;  %s8247_s1 = inlined_call_operand.vmem [shape: f32[1,36,32], index: 1, kind: input, shape index: {}]   ;;  %s8248_s2 = inlined_call_operand.vmem [shape: f32[2,1,32], index: 2, kind: input, shape index: {}]   ;;  %s8249_s3 = inlined_call_operand.vmem [shape: f32[2,1,32], index: 3, kind: input, shape index: {}]   ;;  %s8250_s4 = inlined_call_operand.vmem [shape: bf16[2,32,96], index: 4, kind: input, shape index: {}]   ;;  %s8251_s5 = inlined_call_operand.vmem [shape: bf16[2,4,8,32], index: 5, kind: input, shape index: {}]   ;;  %s8252_s6 = inlined_call_operand.vmem [shape: f32[2,1,32], index: 6, kind: input, shape index: {}]   ;;  %s8253_s7 = inlined_call_operand.vmem [shape: f32[2,1,32], index: 7, kind: input, shape index: {}]   ;;  %s8254_s8 = inlined_call_operand.vmem [shape: f32[2,1,32], index: 8, kind: input, shape index: {}]   ;;  %s8255_s9 = inlined_call_operand.vmem [shape: bf16[2,32,128], index: 9, kind: input, shape index: {}]   ;;  %s8256_s10 = inlined_call_operand.vmem [shape: f32[2,1,128], index: 10, kind: input, shape index: {}]   ;;  %s8257_s11 = inlined_call_operand.vmem [shape: bf16[2,128,32], index: 11, kind: input, shape index: {}]   ;;  %s8258_s12 = inlined_call_operand.vmem [shape: f32[2,1,32], index: 12, kind: input, shape index: {}]   ;;  %s8259_s13 = inlined_call_operand.vmem [shape: f32[1,32], index: 13, kind: input, shape index: {}]   ;;  %s8260_s14 = inlined_call_operand.vmem [shape: f32[1,32], index: 14, kind: input, shape index: {}]   ;;  %s8261_s15 = inlined_call_operand.vmem [shape: f32[1,32], index: 15, kind: input, shape index: {}]   ;;  %s8262_s16 = inlined_call_operand.<no memory space> [shape: f32[1,1], index: 16, kind: input, shape index: {}]   ;;  %s8263_s17 = inlined_call_operand.vmem [shape: bf16[32,128], index: 17, kind: input, shape index: {}]   ;;  %s8264_s18 = inlined_call_operand.vmem [shape: f32[1,128], index: 18, kind: input, shape index: {}]   ;;  %s8265_s19 = inlined_call_operand.hbm [shape: f32[2,128], index: 19, kind: output, shape index: {}]  }
   0x1   :  { %8272 = sst [smem:[#allocation10_spill]] %s8246_s0  ;;  %v24_v0 = vstv %s8262_s16 }
   0x2   :  { %8273 = sst [smem:[#allocation11_spill]] %s8247_s1  ;;  %25 = vst [vmem:[#allocation3] sm:$0x1] %v24_v0 }
   0x3   :  { %8274 = sst [smem:[#allocation12_spill]] %s8248_s2 }
   0x4   :  { %8275 = sst [smem:[#allocation13_spill]] %s8249_s3 }
   0x5   :  { %8276 = sst [smem:[#allocation14_spill]] %s8250_s4 }
   0x6   :  { %8277 = sst [smem:[#allocation15_spill]] %s8251_s5 }
   0x7   :  { %8278 = sst [smem:[#allocation16_spill]] %s8263_s17 }
   0x8   :  { %8279 = sst [smem:[#allocation17_spill]] %s8264_s18 }
   0x9   :  { %8280 = sst [smem:[#allocation18_spill]] %s8265_s19 }
   0xa   :  { %26 = vsyncpa [#allocation5], 0  ;;  %s6514_s20 = smov 0   ;;  %s6516_s21 = smov 0  }
   0xb   :  { %s6518_s1 = smov 0  }
   0xc LB: > { %8281 = sst [smem:[#allocation7_spill]] %s6387_s21  ;;  %s41_s22 = sadd.s32 1, %s6387_s21  ;;  %s6391_s1 = sphi %s6518_s1, %s32_s1   ;;  %s6387_s21 = sphi %s6516_s21, %s8307_s21   ;;  %s6383_s20 = sphi %s6514_s20, %s8306_s20  }
   0xd   : > { %8282 = sst [smem:[#allocation8_spill]] %s6391_s1  ;;  %p42_p0 = scmp.ge.s32.totalorder %s41_s22, 2 }
   0xe   : > { %p5218_p1 = scmp.ge.s32.totalorder %s6391_s1, 1  ;;  %p650_p2 = scmp.lt.s32.totalorder %s6391_s1, 3 }
   0xf   : > { %s8309_s22 = smov (%p42_p0, %s41_s22), 0 }
  0x10   : > { %8283 = sst [smem:[#allocation9_spill]] %s8309_s22  ;;  %p651_p3 = pnand %p5218_p1, %p650_p2 }
  0x11   : > { %p750_p4 = scmp.lt.s32.totalorder (!%p651_p3), %s6383_s20, 1  ;;  %s8286_s4 = sld [smem:[#allocation14_spill]] (!%p651_p3) }
  0x12   : > { %654 = sbr.rel (%p651_p3) target bundleno = 6645 (0x19f5), region = 96  ;;  %s8287_s5 = sld [smem:[#allocation15_spill]] (!%p651_p3) }
  0x13   : > { %p5227_p5 = scmp.ne.s32.totalorder (!%p651_p3), %s6383_s20, 0 }
  0x19   : > { %s6537_s2 = scalar_select %p750_p4, %s6383_s20, 1 }
  0x1a   : > { %795 = sbr.rel (%p5227_p5) target bundleno = 49 (0x31), region = 100  ;;  %s8288_s28 = sld [smem:[#allocation10_spill]] (!%p5227_p5)  ;;  %vm857_vm0 = vcmask (!%p5227_p5), 261120  }
  0x1b   : > { %s5340_s0 = sshll.u32 %s6537_s2, 4  ;;  %s5343_s19 = sshll.u32 %s6537_s2, 6 }
  0x1c   : > { %s6555_s24 = scalar_lea.vmem %s8286_s4, %s5340_s0  ;;  %s6560_s18 = scalar_lea.vmem %s8287_s5, %s5340_s0 }
  0x1d   : > { %s6573_s22 = scalar_lea.vmem %s8255_s9, %s5340_s0  ;;  %s790_s17 = scalar_lea.vmem %s8258_s12, %s6537_s2 }
  0x1e   : > { %s6587_s26 = scalar_lea.vmem %s8257_s11, %s5343_s19  ;;  %s8289_s21 = sld [smem:[#allocation11_spill]] (!%p5227_p5) }
  0x20   : > { %v796_v1 = vld [vmem:[%s8288_s28] sm:$0xff] (!%p5227_p5)  ;;  %v797_v3 = vld [vmem:[%s8288_s28 + $0x8] sm:$0xff] (!%p5227_p5)  ;;  %v798_v6 = vld [vmem:[%s8288_s28 + $0x10] sm:$0xff] (!%p5227_p5) }
  0x21   : > { %v799_v10 = vld [vmem:[%s8288_s28 + $0x18] sm:$0xff]  ;;  %v800_v12 = vld [vmem:[%s8288_s28 + $0x20] sm:$0xf]  ;;  %v801_v15 = vld [vmem:[%s8288_s28 + $0x28] sm:$0xff] }
  0x22   : > { %v802_v17 = vld [vmem:[%s8288_s28 + $0x30] sm:$0xff]  ;;  %v803_v22 = vld [vmem:[%s8288_s28 + $0x38] sm:$0xff]  ;;  %v804_v23 = vld [vmem:[%s8288_s28 + $0x40] sm:$0xff] }
  0x23   : > { %v805_v28 = vld [vmem:[%s8288_s28 + $0x48] sm:$0xf] }
  0x24   : > { %s8290_s23 = smov %s8289_s21  ;;  %v806_v2 = vld [vmem:[%s8289_s21] sm:$0xff] }
  0x25   : > { %v811_v4 = vadd.f32 %v806_v2, %v796_v1  ;;  %v807_v5 = vld [vmem:[%s8290_s23 + $0x8] sm:$0xff]  ;;  %v808_v7 = vld [vmem:[%s8290_s23 + $0x10] sm:$0xff]  ;;  %v809_v11 = vld [vmem:[%s8290_s23 + $0x18] sm:$0xff]  ;;  %v816_v21 = vadd.f32 %v806_v2, %v801_v15 }
  0x26   : > { %v812_v8 = vadd.f32 %v807_v5, %v797_v3  ;;  %v813_v9 = vadd.f32 %v808_v7, %v798_v6  ;;  %v814_v14 = vadd.f32 %v809_v11, %v799_v10  ;;  %v810_v16 = vld [vmem:[%s8290_s23 + $0x20] sm:$0xf]  ;;  %v817_v26 = vadd.f32 %v807_v5, %v802_v17 }
  0x27   : > { %v831_v13 = vcombine.high %v811_v4, %v811_v4  ;;  %v815_v20 = vadd.f32 %v810_v16, %v800_v12  ;;  %v818_v27 = vadd.f32 %v808_v7, %v803_v22  ;;  %v835_v32 = vcombine.high %v816_v21, %v816_v21 }
  0x28   : > { %v832_v18 = vcombine.high %v812_v8, %v812_v8  ;;  %v833_v19 = vcombine.high %v813_v9, %v813_v9  ;;  %v834_v25 = vcombine.high %v814_v14, %v814_v14  ;;  %v836_v34 = vcombine.high %v817_v26, %v817_v26 }
  0x29   : > { %v839_v24 = vcombine.low %v811_v4, %v831_v13  ;;  %v843_v31 = vcombine.low %v815_v20, %v816_v21  ;;  %v819_v35 = vadd.f32 %v809_v11, %v804_v23  ;;  %v837_v36 = vcombine.high %v818_v27, %v818_v27 }
  0x2a   : > { %v840_v29 = vcombine.low %v812_v8, %v832_v18  ;;  %v841_v30 = vcombine.low %v813_v9, %v833_v19  ;;  %v842_v33 = vcombine.low %v814_v14, %v834_v25  ;;  %v844_v37 = vcombine.low %v835_v32, %v817_v26 }
  0x2b   : > { %858 = vst.msk [vmem:[#allocation2] sm:$0xff] %vm857_vm0, %v839_v24  ;;  %862 = vst.msk [vmem:[#allocation2 + $0x20] sm:$0xff] %vm857_vm0, %v843_v31  ;;  %v820_v38 = vadd.f32 %v810_v16, %v805_v28  ;;  %v845_v39 = vcombine.low %v836_v34, %v818_v27  ;;  %v846_v40 = vcombine.low %v837_v36, %v819_v35 }
  0x2c   : > { %859 = vst.msk [vmem:[#allocation2 + $0x8] sm:$0xff] %vm857_vm0, %v840_v29  ;;  %860 = vst.msk [vmem:[#allocation2 + $0x10] sm:$0xff] %vm857_vm0, %v841_v30  ;;  %v838_v41 = vcombine.high %v819_v35, %v819_v35 }
  0x2d   : > { %861 = vst.msk [vmem:[#allocation2 + $0x18] sm:$0xff] %vm857_vm0, %v842_v33  ;;  %863 = vst.msk [vmem:[#allocation2 + $0x28] sm:$0xff] %vm857_vm0, %v844_v37 }
  0x2e   : > { %864 = vst.msk [vmem:[#allocation2 + $0x30] sm:$0xff] %vm857_vm0, %v845_v39  ;;  %865 = vst.msk [vmem:[#allocation2 + $0x38] sm:$0xff] %vm857_vm0, %v846_v40  ;;  %v847_v42 = vcombine.low %v838_v41, %v820_v38 }
  0x30   : > { %866 = vst.msk [vmem:[#allocation2 + $0x40] sm:$0xff] %vm857_vm0, %v847_v42 }
  0x31 PF: > { %vm878_vm1 = vcmask 261120   ;;  %v6042_v42 = vld [vmem:[%s6555_s24] sm:$0xff]   ;;  %vm6394_vm2 = vmmov 0   ;;  %s8291_s1 = sld [smem:[#allocation12_spill]]  ;;  %s8293_s27 = sld [smem:[#allocation13_spill]]  ;;  %vm1190_vm3 = vcmask 64512  }
  0x32   : > { %v867_v43 = vld [vmem:[#allocation2] sm:$0xff]  ;;  %s6395_s16 = smov 96   ;;  %s6396_s4 = smov 64   ;;  %vm1358_vm4 = vcmask 293888   ;;  %vm1371_vm5 = vcmask 289792   ;;  %vm1493_vm6 = vcmask 1041408  }
  0x33   : > { %v869_v44 = vld [vmem:[#allocation2 + $0x10] sm:$0xff]  ;;  %v868_v45 = vld [vmem:[#allocation2 + $0x8] sm:$0xff]  ;;  %v879_v46 = vsel %vm878_vm1, %v867_v43, 0.0  ;;  %v871_v49 = vld [vmem:[#allocation2 + $0x20] sm:$0xff]  ;;  %s6397_s29 = smov 88   ;;  %s6398_s30 = smov 120  }
  0x34   : > { %v885_v47 = vsel %vm878_vm1, %v869_v44, 0.0  ;;  %v870_v48 = vld [vmem:[#allocation2 + $0x18] sm:$0xff]  ;;  %v872_v50 = vld [vmem:[#allocation2 + $0x28] sm:$0xff]  ;;  %880 = vadd.xlane.f32.xlu0 %v879_v46  ;;  %v882_v51 = vsel %vm878_vm1, %v868_v45, 0.0  ;;  %v891_v53 = vsel %vm878_vm1, %v871_v49, 0.0  ;;  %s6399_s21 = smov 56  }
  0x35   : > { %886 = vadd.xlane.f32.xlu1 %v885_v47  ;;  %v888_v52 = vsel %vm878_vm1, %v870_v48, 0.0  ;;  %v894_v54 = vsel %vm878_vm1, %v872_v50, 0.0  ;;  %v873_v55 = vld [vmem:[#allocation2 + $0x30] sm:$0xff]  ;;  %v874_v56 = vld [vmem:[#allocation2 + $0x38] sm:$0xff]  ;;  %s6401_s5 = smov 112   ;;  %vm2176_vm7 = vcmask 1043456  }
  0x36   : > { %v897_v57 = vsel %vm878_vm1, %v873_v55, 0.0  ;;  %v900_v58 = vsel %vm878_vm1, %v874_v56, 0.0  ;;  %s6404_s3 = smov 104   ;;  %s6405_s25 = smov 40  }
  0x37   : > { %v875_v59 = vld [vmem:[#allocation2 + $0x40] sm:$0xff]  ;;  %s8292_s19 = scalar_lea.vmem %s8291_s1, %s6537_s2  ;;  %s8294_s0 = scalar_lea.vmem %s8293_s27, %s6537_s2 }
  0x38   : > { %883 = vadd.xlane.f32.xlu0 %v882_v51  ;;  %v903_v60 = vsel %vm878_vm1, %v875_v59, 0.0  ;;  %s6402_s1 = smov 48   ;;  %p5325_p6 = scmp.ne.s32.totalorder %s6383_s20, 1 }
  0x39   : > { %889 = vadd.xlane.f32.xlu1 %v888_v52 }
  0x3c   : > { %892 = vadd.xlane.f32.xlu0 %v891_v53 }
  0x3d   : > { %895 = vadd.xlane.f32.xlu1 %v894_v54 }
  0x40   : > { %898 = vadd.xlane.f32.xlu0 %v897_v57 }
  0x41   : > { %901 = vadd.xlane.f32.xlu1 %v900_v58 }
  0x44   : > { %904 = vadd.xlane.f32.xlu0 %v903_v60 }
  0xc1   : > { %v881_v61 = vpop.xlane.xlu0 %880 }
  0xc2   : > { %v887_v62 = vpop.xlane.xlu1 %886  ;;  %v907_v63 = vmul.f32 0.03125, %v881_v61 }
  0xc3   : > { %v909_v0 = vmul.f32 0.03125, %v887_v62 }
  0xc4   : > { %v6653_v1 = vsub.f32 %v867_v43, %v907_v63  ;;  %v6393_v43 = vmov 0.0  }
  0xc5   : > { %v6655_v2 = vsub.f32 %v869_v44, %v909_v0  ;;  %v884_v3 = vpop.xlane.xlu0 %883  ;;  %5502 = vmatprep.subr.bf16.mxu0 %v6393_v43  ;;  %5990 = vmatprep.subr.bf16.mxu1 %v6393_v43  ;;  %v6043_v44 = vld [vmem:[%s6555_s24 + $0x8] sm:$0xff]   ;;  %s6400_s24 = smov 80  }
  0xc6   : > { %v890_v4 = vpop.xlane.xlu1 %889  ;;  %v908_v5 = vmul.f32 0.03125, %v884_v3  ;;  %v925_v7 = vmul.f32 %v6653_v1, %v6653_v1  ;;  %5503 = vmatpush3.bf16.msra.mxu0 %v6042_v42  ;;  %5992 = vmatpush3.bf16.msra.mxu1 %v6042_v42 }
  0xc7   : > { %v910_v6 = vmul.f32 0.03125, %v890_v4  ;;  %v927_v8 = vmul.f32 %v6655_v2, %v6655_v2  ;;  %5504 = vmatprep.subr.bf16.mxu0 %v6393_v43  ;;  %5506 = vmatprep.mubr.msk.bf16.mxu0 %vm6394_vm2, %v6393_v43 }
  0xc8   : > { %v6661_v9 = vsub.f32 %v868_v45, %v908_v5  ;;  %v934_v11 = vsel %vm878_vm1, %v925_v7, 0.0  ;;  %5991 = vmatprep.subr.bf16.mxu1 %v6393_v43  ;;  %5518 = vmatprep.mubr.msk.bf16.mxu1 %vm6394_vm2, %v6393_v43 }
  0xc9   : > { %v6663_v10 = vsub.f32 %v870_v48, %v910_v6  ;;  %935 = vadd.xlane.f32.xlu1 %v934_v11  ;;  %v893_v12 = vpop.xlane.xlu0 %892  ;;  %v940_v14 = vsel %vm878_vm1, %v927_v8, 0.0 }
  0xca   : > { %v896_v13 = vpop.xlane.xlu1 %895  ;;  %v911_v15 = vmul.f32 0.03125, %v893_v12  ;;  %v926_v17 = vmul.f32 %v6661_v9, %v6661_v9  ;;  %5505 = vmatpush3.bf16.msra.mxu0 %v6043_v44  ;;  %5993 = vmatpush3.bf16.msra.mxu1 %v6043_v44  ;;  %v5228_v12 = vld [vmem:[%s8292_s19] ss:$0 sm:$0xff]  ;;  %s6403_s19 = smov 72  }
  0xcb   : > { %v912_v16 = vmul.f32 0.03125, %v896_v13  ;;  %v928_v18 = vmul.f32 %v6663_v10, %v6663_v10  ;;  %5526 = vmatprep.subr.bf16.mxu1 %v6393_v43  ;;  %5544 = vmatprep.subr.bf16.mxu0 %v6393_v43 }
  0xcc   : > { %v6671_v19 = vsub.f32 %v871_v49, %v911_v15  ;;  %v937_v21 = vsel %vm878_vm1, %v926_v17, 0.0 }
  0xcd   : > { %v6673_v20 = vsub.f32 %v872_v50, %v912_v16  ;;  %941 = vadd.xlane.f32.xlu1 %v940_v14  ;;  %938 = vadd.xlane.f32.xlu0 %v937_v21  ;;  %v899_v22 = vpop.xlane.xlu0 %898  ;;  %v943_v24 = vsel %vm878_vm1, %v928_v18, 0.0 }
  0xce   : > { %v902_v23 = vpop.xlane.xlu1 %901  ;;  %v913_v25 = vmul.f32 0.03125, %v899_v22  ;;  %v929_v27 = vmul.f32 %v6671_v19, %v6671_v19 }
  0xcf   : > { %v914_v26 = vmul.f32 0.03125, %v902_v23  ;;  %v930_v28 = vmul.f32 %v6673_v20, %v6673_v20 }
  0xd0   : > { %v6681_v29 = vsub.f32 %v873_v55, %v913_v25  ;;  %v946_v31 = vsel %vm878_vm1, %v929_v27, 0.0 }
  0xd1   : > { %v6683_v30 = vsub.f32 %v874_v56, %v914_v26  ;;  %944 = vadd.xlane.f32.xlu0 %v943_v24  ;;  %947 = vadd.xlane.f32.xlu1 %v946_v31  ;;  %v905_v32 = vpop.xlane.xlu0 %904  ;;  %v949_v34 = vsel %vm878_vm1, %v930_v28, 0.0 }
  0xd2   : > { %v915_v33 = vmul.f32 0.03125, %v905_v32  ;;  %v931_v35 = vmul.f32 %v6681_v29, %v6681_v29 }
  0xd3   : > { %v932_v36 = vmul.f32 %v6683_v30, %v6683_v30 }
  0xd4   : > { %v6691_v37 = vsub.f32 %v875_v59, %v915_v33  ;;  %v952_v38 = vsel %vm878_vm1, %v931_v35, 0.0 }
  0xd5   : > { %950 = vadd.xlane.f32.xlu0 %v949_v34  ;;  %953 = vadd.xlane.f32.xlu1 %v952_v38  ;;  %v955_v39 = vsel %vm878_vm1, %v932_v36, 0.0 }
  0xd6   : > { %v933_v40 = vmul.f32 %v6691_v37, %v6691_v37 }
  0xd8   : > { %v958_v41 = vsel %vm878_vm1, %v933_v40, 0.0 }
  0xd9   : > { %956 = vadd.xlane.f32.xlu0 %v955_v39  ;;  %959 = vadd.xlane.f32.xlu1 %v958_v41 }
 0x156   : > { %v936_v45 = vpop.xlane.xlu1 %935 }
 0x157   : > { %v961_v46 = vmul.f32 0.03125, %v936_v45 }
 0x159   : > { %v970_v47 = vadd.f32 1e-05, %v961_v46 }
 0x15a   : > { %v942_v48 = vpop.xlane.xlu1 %941  ;;  %v939_v49 = vpop.xlane.xlu0 %938 }
 0x15b   : > { %6054 = vrsqrt.f32 %v970_v47  ;;  %v963_v50 = vmul.f32 0.03125, %v942_v48  ;;  %v962_v51 = vmul.f32 0.03125, %v939_v49 }
 0x15d   : > { %v971_v52 = vadd.f32 1e-05, %v962_v51  ;;  %v972_v53 = vadd.f32 1e-05, %v963_v50 }
 0x15e   : > { %v948_v54 = vpop.xlane.xlu1 %947  ;;  %v945_v55 = vpop.xlane.xlu0 %944 }
 0x15f   : > { %v964_v56 = vmul.f32 0.03125, %v945_v55  ;;  %6056 = vrsqrt.f32 %v971_v52  ;;  %v965_v58 = vmul.f32 0.03125, %v948_v54 }
 0x160   : > { %6058 = vrsqrt.f32 %v972_v53 }
 0x161   : > { %v973_v57 = vadd.f32 1e-05, %v964_v56  ;;  %v974_v4 = vadd.f32 1e-05, %v965_v58 }
 0x162   : > { %v954_v59 = vpop.xlane.xlu1 %953  ;;  %v951_v60 = vpop.xlane.xlu0 %950 }
 0x163   : > { %v967_v61 = vmul.f32 0.03125, %v954_v59  ;;  %v966_v62 = vmul.f32 0.03125, %v951_v60  ;;  %6060 = vrsqrt.f32 %v973_v57 }
 0x165   : > { %v6055_v63 = vpop.eup %6054  ;;  %v976_v0 = vadd.f32 1e-05, %v967_v61  ;;  %v975_v3 = vadd.f32 1e-05, %v966_v62 }
 0x166   : > { %v960_v5 = vpop.xlane.xlu1 %959  ;;  %v957_v6 = vpop.xlane.xlu0 %956  ;;  %v988_v11 = vmul.f32 %v6055_v63, %v6653_v1  ;;  %v5229_v1 = vld [vmem:[%s8294_s0] ss:$0 sm:$0xff]  ;;  %s8295_s0 = scalar_lea.vmem %s8252_s6, %s6537_s2 }
 0x167   : > { %6062 = vrsqrt.f32 %v976_v0  ;;  %v969_v7 = vmul.f32 0.03125, %v960_v5  ;;  %v968_v8 = vmul.f32 0.03125, %v957_v6 }
 0x168   : > { %6064 = vrsqrt.f32 %v975_v3  ;;  %v1003_v17 = vmul.f32 %v5228_v12, %v988_v11 }
 0x169   : > { %v978_v13 = vadd.f32 1e-05, %v969_v7  ;;  %v977_v14 = vadd.f32 1e-05, %v968_v8  ;;  %v6057_v15 = vpop.eup %6056  ;;  %6066 = vrsqrt.f32 %v974_v4 }
 0x16a   : > { %v989_v16 = vmul.f32 %v6057_v15, %v6661_v9  ;;  %v6059_v18 = vpop.eup %6058  ;;  %v1018_v23 = vadd.f32 %v5229_v1, %v1003_v17 }
 0x16b   : > { %6068 = vrsqrt.f32 %v978_v13  ;;  %v990_v25 = vmul.f32 %v6059_v18, %v6655_v2 }
 0x16c   : > { %6070 = vrsqrt.f32 %v977_v14  ;;  %v1004_v21 = vmul.f32 %v5228_v12, %v989_v16 }
 0x16d   : > { %v6061_v22 = vpop.eup %6060  ;;  %v1005_v32 = vmul.f32 %v5228_v12, %v990_v25 }
 0x16e   : > { %v1019_v24 = vadd.f32 %v5229_v1, %v1004_v21  ;;  %v991_v26 = vmul.f32 %v6061_v22, %v6663_v10 }
 0x16f   : > { %v1020_v39 = vadd.f32 %v5229_v1, %v1005_v32 }
 0x170   : > { %v1036_v28 = vpack.c.bf16 %v1019_v24, %v1018_v23  ;;  %v1006_v31 = vmul.f32 %v5228_v12, %v991_v26 }
 0x171   : > { %v6063_v27 = vpop.eup %6062 }
 0x172   : > { %v6065_v9 = vpop.eup %6064  ;;  %5507 = vmatmul.mubr.msk.bf16.vlgmr.msra.gmra.mrb[0].mxu0 %vm878_vm1, %v1036_v28  ;;  %v994_v33 = vmul.f32 %v6063_v27, %v6681_v29  ;;  %v1021_v36 = vadd.f32 %v5229_v1, %v1006_v31 }
 0x173   : > { %v6067_v34 = vpop.eup %6066  ;;  %5510 = vmatprep.mubr.msk.bf16.mxu0 %vm6394_vm2, %v6393_v43  ;;  %v993_v38 = vmul.f32 %v6065_v9, %v6673_v20 }
 0x174   : > { %v1009_v40 = vmul.f32 %v5228_v12, %v994_v33  ;;  %v992_v41 = vmul.f32 %v6067_v34, %v6671_v19  ;;  %v1037_v42 = vpack.c.bf16 %v1021_v36, %v1020_v39 }
 0x175   : > { %v6069_v35 = vpop.eup %6068  ;;  %v1008_v45 = vmul.f32 %v5228_v12, %v993_v38 }
 0x176   : > { %v6071_v2 = vpop.eup %6070  ;;  %v996_v29 = vmul.f32 %v6069_v35, %v6691_v37  ;;  %v1024_v46 = vadd.f32 %v5229_v1, %v1009_v40  ;;  %v1007_v48 = vmul.f32 %v5228_v12, %v992_v41 }
 0x177   : > { %v995_v10 = vmul.f32 %v6071_v2, %v6683_v30  ;;  %v1023_v49 = vadd.f32 %v5229_v1, %v1008_v45 }
 0x178   : > { %v1011_v50 = vmul.f32 %v5228_v12, %v996_v29  ;;  %v1022_v30 = vadd.f32 %v5229_v1, %v1007_v48 }
 0x179   : > { %v1010_v44 = vmul.f32 %v5228_v12, %v995_v10 }
 0x17a   : > { %5511 = vmatmul.mubr.msk.bf16.gmra.mrb[4].mxu0 %vm878_vm1, %v1037_v42  ;;  %v1038_v19 = vpack.c.bf16 %v1023_v49, %v1022_v30  ;;  %v1026_v51 = vadd.f32 %v5229_v1, %v1011_v50 }
 0x17b   : > { %v1025_v47 = vadd.f32 %v5229_v1, %v1010_v44  ;;  %5514 = vmatprep.mubr.msk.bf16.mxu0 %vm6394_vm2, %v6393_v43 }
 0x17c   : > { %v1040_v37 = vpack.c.bf16 %v1026_v51, %v1026_v51 }
 0x17d   : > { %v1039_v20 = vpack.c.bf16 %v1025_v47, %v1024_v46 }
 0x17f   : > { %5519 = vmatmul.mubr.msk.bf16.vlgmr.msra.gmra.mrb[0].mxu1 %vm878_vm1, %v1039_v20 }
 0x180   : > { %5522 = vmatprep.mubr.msk.bf16.mxu1 %vm6394_vm2, %v6393_v43 }
 0x182   : > { %5515 = vmatmul.mubr.msk.bf16.gmra.mrb[8].mxu0 %vm878_vm1, %v1038_v19 }
 0x183   : > { %5550 = vmatprep.mubr.msk.bf16.mxu0 %vm6394_vm2, %v6393_v43 }
 0x187   : > { %5523 = vmatmul.mubr.msk.bf16.gmra.mrb[4].mxu1 %vm878_vm1, %v1040_v37 }
 0x188   : > { %5532 = vmatprep.mubr.msk.bf16.mxu1 %vm6394_vm2, %v6393_v43 }
 0x245   : > { %v1102_v52 = vpop.f32.mrb[0].mxu0 }
 0x246   : > { %v1149_v53 = vcombine.high %v1102_v52, %v1102_v52  ;;  %v5508_v54 = vpop.f32.mrb[1].mxu0 }
 0x247   : > { %v1105_v55 = vpop.f32.mrb[2].mxu0 }
 0x248   : > { %v1150_v56 = vcombine.high %v1105_v55, %v1105_v55  ;;  %v5509_v57 = vpop.f32.mrb[3].mxu0  ;;  %v1159_v58 = vcombine.low %v1102_v52, %v1149_v53 }
 0x24a   : > { %v1160_v59 = vcombine.low %v1105_v55, %v1150_v56 }
 0x24c   : > { %v6744_v60 = vpack.c.bf16 %v1160_v59, %v1159_v58 }
 0x24d   : > { %v1110_v61 = vpop.f32.mrb[4].mxu0 }
 0x24e   : > { %v1151_v62 = vcombine.high %v1110_v61, %v1110_v61  ;;  %1184 = vrot.lane.b32.xlu0 %v6744_v60, %s6395_s16  ;;  %v5512_v63 = vpop.f32.mrb[5].mxu0 }
 0x24f   : > { %v1113_v0 = vpop.f32.mrb[6].mxu0 }
 0x250   : > { %v1152_v3 = vcombine.high %v1113_v0, %v1113_v0  ;;  %v5513_v4 = vpop.f32.mrb[7].mxu0  ;;  %v1161_v6 = vcombine.low %v1110_v61, %v1151_v62 }
 0x252   : > { %v1126_v5 = vpop.f32.mrb[0].mxu1  ;;  %v1162_v7 = vcombine.low %v1113_v0, %v1152_v3 }
 0x253   : > { %v1155_v8 = vcombine.high %v1126_v5, %v1126_v5  ;;  %v5520_v11 = vpop.f32.mrb[1].mxu1 }
 0x254   : > { %v1129_v12 = vpop.f32.mrb[2].mxu1  ;;  %v6748_v13 = vpack.c.bf16 %v1162_v7, %v1161_v6 }
 0x255   : > { %v1165_v14 = vcombine.low %v1155_v8, %v1129_v12  ;;  %v5521_v15 = vpop.f32.mrb[3].mxu1  ;;  %v1118_v16 = vpop.f32.mrb[8].mxu0  ;;  %v1156_v21 = vcombine.high %v1129_v12, %v1129_v12 }
 0x256   : > { %v1153_v17 = vcombine.high %v1118_v16, %v1118_v16  ;;  %1186 = vrot.lane.b32.xlu1 %v6748_v13, %s6395_s16  ;;  %v5516_v18 = vpop.f32.mrb[9].mxu0  ;;  %v6752_v22 = vpack.c.bf16 %v1118_v16, %v1118_v16 }
 0x257   : > { %v1121_v1 = vpop.f32.mrb[10].mxu0 }
 0x258   : > { %v1154_v23 = vcombine.high %v1121_v1, %v1121_v1  ;;  %v1163_v24 = vcombine.low %v1153_v17, %v1121_v1  ;;  %v5517_v25 = vpop.f32.mrb[11].mxu0 }
 0x25a   : > { %v1134_v26 = vpop.f32.mrb[4].mxu1  ;;  %v1164_v27 = vcombine.low %v1154_v23, %v1126_v5  ;;  %1188 = vrot.lane.b32.xlu1 %v6752_v22, %s6395_s16 }
 0x25b   : > { %v1166_v28 = vcombine.low %v1156_v21, %v1134_v26  ;;  %v5524_v31 = vpop.f32.mrb[5].mxu1  ;;  %v1157_v33 = vcombine.high %v1134_v26, %v1134_v26 }
 0x25c   : > { %v1137_v9 = vpop.f32.mrb[6].mxu1  ;;  %v6756_v32 = vpack.c.bf16 %v1164_v27, %v1163_v24 }
 0x25d   : > { %v6758_v34 = vpack.c.bf16 %v1166_v28, %v1165_v14  ;;  %v5525_v35 = vpop.f32.mrb[7].mxu1  ;;  %v6764_v36 = vpack.c.bf16 %v1157_v33, %v1157_v33 }
 0x25e   : > { %1268 = vrot.lane.b32.xlu1 %v6756_v32, %s6395_s16 }
 0x25f   : > { %1270 = vrot.lane.b32.xlu0 %v6758_v34, %s6395_s16 }
 0x262   : > { %1272 = vrot.lane.b32.xlu1 %v6764_v36, %s6395_s16 }
 0x263   : > { %1476 = vrot.lane.b32.xlu0 %v6744_v60, %s6396_s4 }
 0x266   : > { %1478 = vrot.lane.b32.xlu1 %v6748_v13, %s6396_s4 }
 0x2c0   : > { %v1185_v38 = vpop.permute.xlu0 %1184 }
 0x2c1   : > { %v1201_v2 = vsel %vm1190_vm3, %v1185_v38, 0 }
 0x2c2   : > { %5527 = vmatpush3.bf16.xpose.msra.mxu1 %v1201_v2 }
 0x2c3   : > { %5528 = vmatprep.subr.bf16.mxu1 %v6393_v43 }
 0x2c8   : > { %v1187_v39 = vpop.permute.xlu1 %1186 }
 0x2c9   : > { %v1204_v10 = vsel %vm1190_vm3, %v1187_v39, 0 }
 0x2ca   : > { %5529 = vmatpush3.bf16.xpose.msra.mxu1 %v1204_v10 }
 0x2cb   : > { %5530 = vmatprep.subr.bf16.mxu1 %v6393_v43 }
 0x2cc   : > { %v1189_v40 = vpop.permute.xlu1 %1188 }
 0x2cd   : > { %v1207_v42 = vsel %vm1190_vm3, %v1189_v40, 0 }
 0x2d0   : > { %v1269_v41 = vpop.permute.xlu1 %1268 }
 0x2d1   : > { %v1284_v44 = vsel %vm1190_vm3, %v1269_v41, 0  ;;  %v1271_v45 = vpop.permute.xlu0 %1270 }
 0x2d2   : > { %5531 = vmatpush3.bf16.xpose.msra.mxu1 %v1207_v42  ;;  %5545 = vmatpush3.bf16.xpose.msra.mxu0 %v1284_v44  ;;  %v1287_v46 = vsel %vm1190_vm3, %v1271_v45, 0 }
 0x2d3   : > { %5546 = vmatprep.subr.bf16.mxu0 %v6393_v43  ;;  %5562 = vmatprep.subr.bf16.mxu1 %v6393_v43 }
 0x2d4   : > { %v1273_v29 = vpop.permute.xlu1 %1272 }
 0x2d5   : > { %v1477_v47 = vpop.permute.xlu0 %1476  ;;  %v1290_v20 = vsel %vm1190_vm3, %v1273_v29, 0 }
 0x2d8   : > { %v1479_v48 = vpop.permute.xlu1 %1478 }
 0x2d9   : > { %5533 = vmatmul.mubr.msk.bf16.vlgmr.msra.gmra.mrb[8].mxu1 %vm1190_vm3, %v6744_v60 }
 0x2da   : > { %5547 = vmatpush3.bf16.xpose.msra.mxu0 %v1287_v46  ;;  %5563 = vmatpush3.bf16.msra.mxu1 %v1477_v47 }
 0x2db   : > { %5564 = vmatprep.subr.bf16.mxu1 %v6393_v43  ;;  %5536 = vmatprep.mubr.msk.bf16.mxu1 %vm6394_vm2, %v6393_v43 }
 0x2dc   : > { %5548 = vmatprep.subr.bf16.mxu0 %v6393_v43 }
 0x2de   : > { %5565 = vmatpush3.bf16.msra.mxu1 %v1479_v48 }
 0x2df   : > { %5566 = vmatprep.subr.bf16.mxu1 %v6393_v43 }
 0x2e1   : > { %5537 = vmatmul.mubr.msk.bf16.gmra.mrb[12].mxu1 %vm1190_vm3, %v6748_v13 }
 0x2e2   : > { %5549 = vmatpush3.bf16.xpose.msra.mxu0 %v1290_v20  ;;  %5540 = vmatprep.mubr.msk.bf16.mxu1 %vm6394_vm2, %v6393_v43 }
 0x2e3   : > { %5580 = vmatprep.subr.bf16.mxu0 %v6393_v43 }
 0x2e9   : > { %5541 = vmatmul.mubr.msk.bf16.gmra.mrb[16].mxu1 %vm1190_vm3, %v6752_v22  ;;  %5551 = vmatmul.mubr.msk.bf16.vlgmr.msra.gmra.mrb[12].mxu0 %vm1190_vm3, %v6756_v32 }
 0x2ea   : > { %5554 = vmatprep.mubr.msk.bf16.mxu0 %vm6394_vm2, %v6393_v43  ;;  %5568 = vmatprep.mubr.msk.bf16.mxu1 %vm6394_vm2, %v6393_v43 }
 0x2f1   : > { %5555 = vmatmul.mubr.msk.bf16.gmra.mrb[16].mxu0 %vm1190_vm3, %v6758_v34 }
 0x2f2   : > { %5558 = vmatprep.mubr.msk.bf16.mxu0 %vm6394_vm2, %v6393_v43 }
 0x2f9   : > { %5559 = vmatmul.mubr.msk.bf16.gmra.mrb[20].mxu0 %vm1190_vm3, %v6764_v36 }
 0x2fa   : > { %5586 = vmatprep.mubr.msk.bf16.mxu0 %vm6394_vm2, %v6393_v43 }
 0x3ac   : > { %v1243_v49 = vpop.f32.mrb[8].mxu1 }
 0x3ad   : > { %v1348_v50 = vmul.f32 0.35355338, %v1243_v49  ;;  %v5534_v30 = vpop.f32.mrb[9].mxu1 }
 0x3ae   : > { %v1246_v19 = vpop.f32.mrb[10].mxu1 }
 0x3af   : > { %v1349_v51 = vmul.f32 0.35355338, %v1246_v19  ;;  %v5535_v37 = vpop.f32.mrb[11].mxu1  ;;  %v1359_v52 = vsel %vm1358_vm4, %v1348_v50, -inf }
 0x3b0   : > { %1360 = vmax.xlane.f32.xlu0 %v1359_v52 }
 0x3b1   : > { %v1362_v53 = vsel %vm1358_vm4, %v1349_v51, -inf }
 0x3b2   : > { %1363 = vmax.xlane.f32.xlu1 %v1362_v53 }
 0x3b4   : > { %v1251_v54 = vpop.f32.mrb[12].mxu1 }
 0x3b5   : > { %v1350_v55 = vmul.f32 0.35355338, %v1251_v54  ;;  %v5538_v56 = vpop.f32.mrb[13].mxu1 }
 0x3b6   : > { %v1254_v57 = vpop.f32.mrb[14].mxu1 }
 0x3b7   : > { %v1351_v58 = vmul.f32 0.35355338, %v1254_v57  ;;  %v5539_v59 = vpop.f32.mrb[15].mxu1  ;;  %v1365_v61 = vsel %vm1358_vm4, %v1350_v55, -inf }
 0x3b8   : > { %1366 = vmax.xlane.f32.xlu0 %v1365_v61 }
 0x3b9   : > { %v1368_v62 = vsel %vm1358_vm4, %v1351_v58, -inf }
 0x3bc   : > { %1369 = vmax.xlane.f32.xlu0 %v1368_v62  ;;  %v1259_v63 = vpop.f32.mrb[16].mxu1  ;;  %v1326_v0 = vpop.f32.mrb[12].mxu0 }
 0x3bd   : > { %v1352_v3 = vmul.f32 0.35355338, %v1259_v63  ;;  %v1353_v4 = vmul.f32 0.35355338, %v1326_v0  ;;  %v5542_v5 = vpop.f32.mrb[17].mxu1  ;;  %v5552_v6 = vpop.f32.mrb[13].mxu0 }
 0x3be   : > { %v1262_v7 = vpop.f32.mrb[18].mxu1  ;;  %v1329_v8 = vpop.f32.mrb[14].mxu0 }
 0x3bf   : > { %v1354_v11 = vmul.f32 0.35355338, %v1329_v8  ;;  %v5543_v12 = vpop.f32.mrb[19].mxu1  ;;  %v5553_v14 = vpop.f32.mrb[15].mxu0  ;;  %v1372_v15 = vsel %vm1371_vm5, %v1352_v3, -inf  ;;  %v1375_v16 = vsel %vm1358_vm4, %v1353_v4, -inf }
 0x3c0   : > { %1373 = vmax.xlane.f32.xlu0 %v1372_v15  ;;  %1376 = vmax.xlane.f32.xlu1 %v1375_v16 }
 0x3c1   : > { %v1378_v17 = vsel %vm1358_vm4, %v1354_v11, -inf }
 0x3c4   : > { %1379 = vmax.xlane.f32.xlu0 %v1378_v17  ;;  %v1334_v18 = vpop.f32.mrb[16].mxu0 }
 0x3c5   : > { %v6817_v1 = vmul.f32 0.35355338, %v1334_v18  ;;  %v5556_v21 = vpop.f32.mrb[17].mxu0 }
 0x3c6   : > { %v1337_v23 = vpop.f32.mrb[18].mxu0 }
 0x3c7   : > { %v6819_v24 = vmul.f32 0.35355338, %v1337_v23  ;;  %v5557_v25 = vpop.f32.mrb[19].mxu0  ;;  %v1381_v26 = vsel %vm1358_vm4, %v6817_v1, -inf }
 0x3c8   : > { %1382 = vmax.xlane.f32.xlu1 %v1381_v26 }
 0x3c9   : > { %v1384_v27 = vsel %vm1358_vm4, %v6819_v24, -inf }
 0x3ca   : > { %1385 = vmax.xlane.f32.xlu0 %v1384_v27 }
 0x3cc   : > { %v1342_v28 = vpop.f32.mrb[20].mxu0 }
 0x3cd   : > { %v5560_v31 = vpop.f32.mrb[21].mxu0  ;;  %v6829_v35 = vmul.f32 0.35355338, %v1342_v28 }
 0x3ce   : > { %v1345_v9 = vpop.f32.mrb[22].mxu0 }
 0x3cf   : > { %v5561_v33 = vpop.f32.mrb[23].mxu0  ;;  %v1387_v38 = vsel %vm1371_vm5, %v6829_v35, -inf }
 0x3d9   : > { %1676 = vrot.lane.b32.xlu1 %v6744_v60, %s6397_s29 }
 0x3e0   : > { %1480 = vrot.lane.b32.xlu0 %v6752_v22, %s6396_s4 }
 0x3fd   : > { %1388 = vmax.xlane.f32.xlu1 %v1387_v38 }
 0x43d   : > { %v1361_v2 = vpop.xlane.xlu0 %1360 }
 0x43e   : > { %v1390_v39 = vsub.f32 %v1348_v50, %v1361_v2 }
 0x43f   : > { %v1364_v10 = vpop.xlane.xlu1 %1363 }
 0x440   : > { %v1400_v40 = vmul.f32 1.442695, %v1390_v39  ;;  %v1391_v41 = vsub.f32 %v1349_v51, %v1364_v10 }
 0x442   : > { %6072 = vpow2.f32 %v1400_v40  ;;  %v1402_v42 = vmul.f32 1.442695, %v1391_v41 }
 0x444   : > { %6074 = vpow2.f32 %v1402_v42 }
 0x445   : > { %v1367_v44 = vpop.xlane.xlu0 %1366 }
 0x446   : > { %v1392_v45 = vsub.f32 %v1350_v55, %v1367_v44 }
 0x448   : > { %v1404_v29 = vmul.f32 1.442695, %v1392_v45 }
 0x449   : > { %v1370_v46 = vpop.xlane.xlu0 %1369 }
 0x44a   : > { %6076 = vpow2.f32 %v1404_v29  ;;  %v1393_v47 = vsub.f32 %v1351_v58, %v1370_v46 }
 0x44c   : > { %v6833_v48 = vpop.eup %6072  ;;  %v1406_v20 = vmul.f32 1.442695, %v1393_v47 }
 0x44d   : > { %v1377_v49 = vpop.xlane.xlu1 %1376  ;;  %v1374_v30 = vpop.xlane.xlu0 %1373  ;;  %v1420_v50 = vsel %vm1358_vm4, %v6833_v48, 0.0 }
 0x44e   : > { %v6837_v19 = vpop.eup %6074  ;;  %6078 = vpow2.f32 %v1406_v20  ;;  %v1395_v51 = vsub.f32 %v1353_v4, %v1377_v49  ;;  %v1394_v37 = vsub.f32 %v1352_v3, %v1374_v30  ;;  %1421 = vadd.xlane.f32.xlu0 %v1420_v50 }
 0x44f   : > { %v1423_v52 = vsel %vm1358_vm4, %v6837_v19, 0.0 }
 0x450   : > { %v1408_v53 = vmul.f32 1.442695, %v1394_v37  ;;  %1424 = vadd.xlane.f32.xlu1 %v1423_v52  ;;  %v1410_v54 = vmul.f32 1.442695, %v1395_v51 }
 0x451   : > { %v1380_v55 = vpop.xlane.xlu0 %1379 }
 0x452   : > { %v1396_v56 = vsub.f32 %v1354_v11, %v1380_v55  ;;  %6080 = vpow2.f32 %v1408_v53 }
 0x453   : > { %6082 = vpow2.f32 %v1410_v54 }
 0x454   : > { %v6841_v57 = vpop.eup %6076  ;;  %v1412_v58 = vmul.f32 1.442695, %v1396_v56 }
 0x455   : > { %v1426_v59 = vsel %vm1358_vm4, %v6841_v57, 0.0  ;;  %v1383_v12 = vpop.xlane.xlu1 %1382 }
 0x456   : > { %6084 = vpow2.f32 %v1412_v58  ;;  %1427 = vadd.xlane.f32.xlu0 %v1426_v59  ;;  %v1397_v18 = vsub.f32 %v6817_v1, %v1383_v12 }
 0x457   : > { %v1386_v61 = vpop.xlane.xlu0 %1385 }
 0x458   : > { %v6845_v62 = vpop.eup %6078  ;;  %v1414_v23 = vmul.f32 1.442695, %v1397_v18  ;;  %v1398_v25 = vsub.f32 %v6819_v24, %v1386_v61 }
 0x459   : > { %v1429_v63 = vsel %vm1358_vm4, %v6845_v62, 0.0  ;;  %v1677_v14 = vpop.permute.xlu1 %1676 }
 0x45a   : > { %1430 = vadd.xlane.f32.xlu1 %v1429_v63  ;;  %v1416_v27 = vmul.f32 1.442695, %v1398_v25  ;;  %v1692_v44 = vsel %vm1190_vm3, %v1677_v14, 0 }
 0x45b   : > { %v1481_v0 = vpop.permute.xlu0 %1480 }
 0x45c   : > { %v1495_v3 = vsel %vm1493_vm6, %v1481_v0, 0  ;;  %v6850_v4 = vpop.eup %6080 }
 0x45d   : > { %5567 = vmatpush3.bf16.msra.mxu1 %v1495_v3  ;;  %v1432_v5 = vsel %vm1371_vm5, %v6850_v4, 0.0  ;;  %v6855_v6 = vpop.eup %6082 }
 0x45e   : > { %5598 = vmatprep.subr.bf16.mxu1 %v6393_v43  ;;  %1433 = vadd.xlane.f32.xlu1 %v1432_v5  ;;  %v1435_v11 = vsel %vm1358_vm4, %v6855_v6, 0.0 }
 0x460   : > { %v6857_v7 = vpop.eup %6084 }
 0x461   : > { %v1438_v8 = vsel %vm1358_vm4, %v6857_v7, 0.0 }
 0x462   : > { %1439 = vadd.xlane.f32.xlu0 %v1438_v8  ;;  %1436 = vadd.xlane.f32.xlu1 %v1435_v11 }
 0x473   : > { %1555 = vrot.lane.b32.xlu1 %v6758_v34, %s6396_s4 }
 0x477   : > { %1678 = vrot.lane.b32.xlu1 %v6748_v13, %s6397_s29 }
 0x478   : > { %1553 = vrot.lane.b32.xlu0 %v6756_v32, %s6396_s4 }
 0x47b   : > { %1557 = vrot.lane.b32.xlu1 %v6764_v36, %s6396_s4  ;;  %s8296_s4 = scalar_lea.vmem %s8253_s7, %s6537_s2 }
 0x47f   : > { %1680 = vrot.lane.b32.xlu1 %v6752_v22, %s6397_s29 }
 0x483   : > { %1762 = vrot.lane.b32.xlu1 %v6756_v32, %s6397_s29 }
 0x487   : > { %1670 = vrot.lane.b32.xlu1 %v6744_v60, %s6398_s30 }
 0x48a   : > { %v1389_v15 = vpop.xlane.xlu1 %1388 }
 0x48b   : > { %v1399_v16 = vsub.f32 %v6829_v35, %v1389_v15 }
 0x48d   : > { %v1418_v17 = vmul.f32 1.442695, %v1399_v16 }
 0x48f   : > { %6086 = vpow2.f32 %v1418_v17 }
 0x490   : > { %6088 = vpow2.f32 %v1414_v23 }
 0x491   : > { %6090 = vpow2.f32 %v1416_v27 }
 0x499   : > { %v6878_v21 = vpop.eup %6086 }
 0x49a   : > { %v1447_v26 = vsel %vm1371_vm5, %v6878_v21, 0.0  ;;  %v6883_v28 = vpop.eup %6088 }
 0x49b   : > { %1448 = vadd.xlane.f32.xlu0 %v1447_v26  ;;  %v1441_v31 = vsel %vm1358_vm4, %v6883_v28, 0.0  ;;  %v6887_v9 = vpop.eup %6090 }
 0x49c   : > { %v1444_v1 = vsel %vm1358_vm4, %v6887_v9, 0.0 }
 0x4ab   : > { %1442 = vadd.xlane.f32.xlu1 %v1441_v31 }
 0x4af   : > { %1445 = vadd.xlane.f32.xlu1 %v1444_v1 }
 0x4b1   : > { %1672 = vrot.lane.b32.xlu0 %v6748_v13, %s6398_s30 }
 0x4c0   : > { %1764 = vrot.lane.b32.xlu1 %v6758_v34, %s6397_s29 }
 0x4c4   : > { %1766 = vrot.lane.b32.xlu1 %v6764_v36, %s6397_s29 }
 0x4c8   : > { %1756 = vrot.lane.b32.xlu1 %v6756_v32, %s6398_s30 }
 0x4cc   : > { %1674 = vrot.lane.b32.xlu1 %v6752_v22, %s6398_s30 }
 0x4d0   : > { %1758 = vrot.lane.b32.xlu1 %v6758_v34, %s6398_s30 }
 0x4d4   : > { %1760 = vrot.lane.b32.xlu1 %v6764_v36, %s6398_s30 }
 0x4db   : > { %v1422_v24 = vpop.xlane.xlu0 %1421 }
 0x4dc   : > { %6092 = vrcp.f32 %v1422_v24 }
 0x4dd   : > { %v1425_v33 = vpop.xlane.xlu1 %1424 }
 0x4de   : > { %6094 = vrcp.f32 %v1425_v33 }
 0x4e3   : > { %v1428_v35 = vpop.xlane.xlu0 %1427 }
 0x4e4   : > { %6096 = vrcp.f32 %v1428_v35 }
 0x4e6   : > { %v6093_v38 = vpop.eup %6092 }
 0x4e7   : > { %v1431_v2 = vpop.xlane.xlu1 %1430  ;;  %v1460_v10 = vmul.f32 %v6093_v38, %v6833_v48 }
 0x4e8   : > { %v6095_v39 = vpop.eup %6094  ;;  %6098 = vrcp.f32 %v1431_v2 }
 0x4e9   : > { %v1461_v40 = vmul.f32 %v6095_v39, %v6837_v19 }
 0x4eb   : > { %v1470_v41 = vpack.c.bf16 %v1461_v40, %v1460_v10  ;;  %v1434_v42 = vpop.xlane.xlu1 %1433 }
 0x4ec   : > { %6100 = vrcp.f32 %v1434_v42 }
 0x4ed   : > { %5569 = vmatmul.mubr.msk.bf16.vlgmr.msra.gmra.mrb[20].mxu1 %vm1358_vm4, %v1470_v41 }
 0x4ee   : > { %5599 = vmatpush3.bf16.xpose.msra.mxu1 %v1692_v44  ;;  %5572 = vmatprep.mubr.msk.bf16.mxu1 %vm6394_vm2, %v6393_v43  ;;  %v6097_v29 = vpop.eup %6096 }
 0x4ef   : > { %v1440_v45 = vpop.xlane.xlu0 %1439  ;;  %5600 = vmatprep.subr.bf16.mxu1 %v6393_v43  ;;  %v1437_v46 = vpop.xlane.xlu1 %1436  ;;  %v1462_v20 = vmul.f32 %v6097_v29, %v6841_v57 }
 0x4f0   : > { %6102 = vrcp.f32 %v1440_v45 }
 0x4f1   : > { %6104 = vrcp.f32 %v1437_v46 }
 0x4f2   : > { %v6099_v47 = vpop.eup %6098 }
 0x4f3   : > { %v1554_v48 = vpop.permute.xlu0 %1553  ;;  %v1463_v49 = vmul.f32 %v6099_v47, %v6845_v62  ;;  %v1556_v30 = vpop.permute.xlu1 %1555 }
 0x4f4   : > { %5581 = vmatpush3.bf16.msra.mxu0 %v1554_v48 }
 0x4f5   : > { %v1471_v50 = vpack.c.bf16 %v1463_v49, %v1462_v20  ;;  %5582 = vmatprep.subr.bf16.mxu0 %v6393_v43 }
 0x4f6   : > { %v6101_v19 = vpop.eup %6100 }
 0x4f7   : > { %5573 = vmatmul.mubr.msk.bf16.gmra.mrb[24].mxu1 %vm1358_vm4, %v1471_v50  ;;  %v1679_v51 = vpop.permute.xlu1 %1678  ;;  %v1464_v52 = vmul.f32 %v6101_v19, %v6850_v4 }
 0x4f8   : > { %5583 = vmatpush3.bf16.msra.mxu0 %v1556_v30  ;;  %5576 = vmatprep.mubr.msk.bf16.mxu1 %vm6394_vm2, %v6393_v43  ;;  %v1695_v37 = vsel %vm1190_vm3, %v1679_v51, 0 }
 0x4f9   : > { %5584 = vmatprep.subr.bf16.mxu0 %v6393_v43  ;;  %5601 = vmatpush3.bf16.xpose.msra.mxu1 %v1695_v37  ;;  %v1472_v59 = vpack.c.bf16 %v1464_v52, %v1464_v52 }
 0x4fa   : > { %v6103_v53 = vpop.eup %6102  ;;  %5602 = vmatprep.subr.bf16.mxu1 %v6393_v43 }
 0x4fb   : > { %v6105_v54 = vpop.eup %6104  ;;  %v1466_v55 = vmul.f32 %v6103_v53, %v6857_v7  ;;  %v1558_v57 = vpop.permute.xlu1 %1557 }
 0x4fc   : > { %v1465_v56 = vmul.f32 %v6105_v54, %v6855_v6  ;;  %v1571_v58 = vsel %vm1493_vm6, %v1558_v57, 0 }
 0x4fd   : > { %5585 = vmatpush3.bf16.msra.mxu0 %v1571_v58 }
 0x4fe   : > { %v1473_v61 = vpack.c.bf16 %v1466_v55, %v1465_v56  ;;  %5616 = vmatprep.subr.bf16.mxu0 %v6393_v43 }
 0x4ff   : > { %5577 = vmatmul.mubr.msk.bf16.gmra.mrb[28].mxu1 %vm1358_vm4, %v1472_v59  ;;  %v1681_v62 = vpop.permute.xlu1 %1680 }
 0x500   : > { %5604 = vmatprep.mubr.msk.bf16.mxu1 %vm6394_vm2, %v6393_v43  ;;  %v1698_v63 = vsel %vm1190_vm3, %v1681_v62, 0  ;;  %5587 = vmatmul.mubr.msk.bf16.vlgmr.msra.gmra.mrb[24].mxu0 %vm1358_vm4, %v1473_v61 }
 0x501   : > { %5603 = vmatpush3.bf16.xpose.msra.mxu1 %v1698_v63  ;;  %5590 = vmatprep.mubr.msk.bf16.mxu0 %vm6394_vm2, %v6393_v43 }
 0x502   : > { %5634 = vmatprep.subr.bf16.mxu1 %v6393_v43 }
 0x503   : > { %v1763_v0 = vpop.permute.xlu1 %1762 }
 0x504   : > { %v1778_v3 = vsel %vm1190_vm3, %v1763_v0, 0 }
 0x506   : > { %5617 = vmatpush3.bf16.xpose.msra.mxu0 %v1778_v3 }
 0x507   : > { %v1671_v4 = vpop.permute.xlu1 %1670  ;;  %5618 = vmatprep.subr.bf16.mxu0 %v6393_v43 }
 0x508   : > { %5605 = vmatmul.mubr.msk.bf16.vlgmr.msra.gmra.mrb[32].mxu1 %vm1190_vm3, %v1671_v4 }
 0x509   : > { %5608 = vmatprep.mubr.msk.bf16.mxu1 %vm6394_vm2, %v6393_v43 }
 0x528   : > { %v1449_v5 = vpop.xlane.xlu0 %1448 }
 0x52c   : > { %v1673_v6 = vpop.permute.xlu0 %1672 }
 0x52d   : > { %5609 = vmatmul.mubr.msk.bf16.gmra.mrb[36].mxu1 %vm1190_vm3, %v1673_v6 }
 0x52e   : > { %5612 = vmatprep.mubr.msk.bf16.mxu1 %vm6394_vm2, %v6393_v43 }
 0x538   : > { %v1443_v7 = vpop.xlane.xlu1 %1442 }
 0x539   : > { %6106 = vrcp.f32 %v1443_v7 }
 0x53c   : > { %v1446_v8 = vpop.xlane.xlu1 %1445 }
 0x53d   : > { %6108 = vrcp.f32 %v1446_v8 }
 0x53e   : > { %6110 = vrcp.f32 %v1449_v5 }
 0x540   : > { %v1765_v11 = vpop.permute.xlu1 %1764 }
 0x541   : > { %v1781_v12 = vsel %vm1190_vm3, %v1765_v11, 0 }
 0x542   : > { %5619 = vmatpush3.bf16.xpose.msra.mxu0 %v1781_v12 }
 0x543   : > { %5620 = vmatprep.subr.bf16.mxu0 %v6393_v43  ;;  %v6107_v15 = vpop.eup %6106 }
 0x544   : > { %v1767_v14 = vpop.permute.xlu1 %1766  ;;  %v1467_v18 = vmul.f32 %v6107_v15, %v6883_v28 }
 0x545   : > { %v1784_v25 = vsel %vm1190_vm3, %v1767_v14, 0 }
 0x547   : > { %v6109_v16 = vpop.eup %6108 }
 0x548   : > { %v1757_v17 = vpop.permute.xlu1 %1756  ;;  %v1468_v23 = vmul.f32 %v6109_v16, %v6887_v9  ;;  %v6111_v27 = vpop.eup %6110 }
 0x549   : > { %v1469_v1 = vmul.f32 %v6111_v27, %v6878_v21 }
 0x54a   : > { %5621 = vmatpush3.bf16.xpose.msra.mxu0 %v1784_v25  ;;  %v1474_v26 = vpack.c.bf16 %v1468_v23, %v1467_v18 }
 0x54b   : > { %5652 = vmatprep.subr.bf16.mxu0 %v6393_v43  ;;  %v1475_v28 = vpack.c.bf16 %v1469_v1, %v1469_v1 }
 0x54c   : > { %v1675_v31 = vpop.permute.xlu1 %1674  ;;  %5591 = vmatmul.mubr.msk.bf16.gmra.mrb[28].mxu0 %vm1358_vm4, %v1474_v26 }
 0x54d   : > { %5613 = vmatmul.mubr.msk.bf16.gmra.mrb[40].mxu1 %vm1190_vm3, %v1675_v31  ;;  %5594 = vmatprep.mubr.msk.bf16.mxu0 %vm6394_vm2, %v6393_v43 }
 0x54e   : > { %5640 = vmatprep.mubr.msk.bf16.mxu1 %vm6394_vm2, %v6393_v43 }
 0x550   : > { %v1759_v9 = vpop.permute.xlu1 %1758 }
 0x554   : > { %5595 = vmatmul.mubr.msk.bf16.gmra.mrb[32].mxu0 %vm1358_vm4, %v1475_v28  ;;  %v1761_v21 = vpop.permute.xlu1 %1760 }
 0x555   : > { %5622 = vmatprep.mubr.msk.bf16.mxu0 %vm6394_vm2, %v6393_v43 }
 0x55c   : > { %5623 = vmatmul.mubr.msk.bf16.vlgmr.msra.gmra.mrb[36].mxu0 %vm1190_vm3, %v1757_v17 }
 0x55d   : > { %5626 = vmatprep.mubr.msk.bf16.mxu0 %vm6394_vm2, %v6393_v43 }
 0x564   : > { %5627 = vmatmul.mubr.msk.bf16.gmra.mrb[40].mxu0 %vm1190_vm3, %v1759_v9 }
 0x565   : > { %5630 = vmatprep.mubr.msk.bf16.mxu0 %vm6394_vm2, %v6393_v43 }
 0x56c   : > { %5631 = vmatmul.mubr.msk.bf16.gmra.mrb[44].mxu0 %vm1190_vm3, %v1761_v21 }
 0x56d   : > { %5658 = vmatprep.mubr.msk.bf16.mxu0 %vm6394_vm2, %v6393_v43 }
 0x5c0   : > { %v1531_v24 = vpop.f32.mrb[20].mxu1 }
 0x5c1   : > { %v1639_v33 = vcombine.high %v1531_v24, %v1531_v24  ;;  %v5570_v35 = vpop.f32.mrb[21].mxu1 }
 0x5c2   : > { %v1534_v38 = vpop.f32.mrb[22].mxu1 }
 0x5c3   : > { %v1640_v2 = vcombine.high %v1534_v38, %v1534_v38  ;;  %v5571_v39 = vpop.f32.mrb[23].mxu1  ;;  %v6962_v10 = vcombine.low %v1531_v24, %v1639_v33 }
 0x5c5   : > { %v6964_v40 = vcombine.low %v1534_v38, %v1640_v2 }
 0x5c7   : > { %v1665_v41 = vpack.c.bf16 %v6964_v40, %v6962_v10 }
 0x5ca   : > { %v1539_v42 = vpop.f32.mrb[24].mxu1 }
 0x5cb   : > { %v1641_v44 = vcombine.high %v1539_v42, %v1539_v42  ;;  %v5574_v45 = vpop.f32.mrb[25].mxu1 }
 0x5cc   : > { %v1542_v29 = vpop.f32.mrb[26].mxu1 }
 0x5cd   : > { %v1642_v46 = vcombine.high %v1542_v29, %v1542_v29  ;;  %v5575_v47 = vpop.f32.mrb[27].mxu1  ;;  %v6968_v48 = vcombine.low %v1539_v42, %v1641_v44 }
 0x5cf   : > { %v6970_v20 = vcombine.low %v1542_v29, %v1642_v46 }
 0x5d1   : > { %v1666_v49 = vpack.c.bf16 %v6970_v20, %v6968_v48 }
 0x5d2   : > { %v1547_v30 = vpop.f32.mrb[28].mxu1 }
 0x5d3   : > { %v5578_v50 = vpop.f32.mrb[29].mxu1  ;;  %v1607_v19 = vpop.f32.mrb[24].mxu0 }
 0x5d4   : > { %v1550_v51 = vpop.f32.mrb[30].mxu1  ;;  %v1643_v37 = vcombine.high %v1607_v19, %v1607_v19  ;;  %v1651_v52 = vcombine.low %v1547_v30, %v1607_v19  ;;  %v5588_v53 = vpop.f32.mrb[25].mxu0 }
 0x5d5   : > { %v5579_v54 = vpop.f32.mrb[31].mxu1  ;;  %v1610_v55 = vpop.f32.mrb[26].mxu0 }
 0x5d6   : > { %v1652_v56 = vcombine.low %v1643_v37, %v1610_v55  ;;  %v5589_v57 = vpop.f32.mrb[27].mxu0  ;;  %v1644_v17 = vcombine.high %v1610_v55, %v1610_v55 }
 0x5d8   : > { %v6974_v58 = vpack.c.bf16 %v1652_v56, %v1651_v52 }
 0x5db   : > { %v1734_v59 = vpop.f32.mrb[32].mxu1 }
 0x5dc   : > { %v6976_v61 = vmul.f32 0.35355338, %v1734_v59  ;;  %v5606_v62 = vpop.f32.mrb[33].mxu1 }
 0x5dd   : > { %v1737_v63 = vpop.f32.mrb[34].mxu1 }
 0x5de   : > { %v6978_v0 = vmul.f32 0.35355338, %v1737_v63  ;;  %v5607_v3 = vpop.f32.mrb[35].mxu1  ;;  %v1852_v4 = vsel %vm1358_vm4, %v6976_v61, -inf }
 0x5df   : > { %1853 = vmax.xlane.f32.xlu1 %v1852_v4 }
 0x5e0   : > { %v1855_v5 = vsel %vm1358_vm4, %v6978_v0, -inf }
 0x5e1   : > { %1856 = vmax.xlane.f32.xlu0 %v1855_v5 }
 0x600   : > { %v1742_v6 = vpop.f32.mrb[36].mxu1 }
 0x601   : > { %v6984_v7 = vmul.f32 0.35355338, %v1742_v6  ;;  %v5610_v8 = vpop.f32.mrb[37].mxu1 }
 0x602   : > { %v1745_v11 = vpop.f32.mrb[38].mxu1 }
 0x603   : > { %v6986_v12 = vmul.f32 0.35355338, %v1745_v11  ;;  %v5611_v14 = vpop.f32.mrb[39].mxu1  ;;  %v1858_v15 = vsel %vm1358_vm4, %v6984_v7, -inf }
 0x604   : > { %1859 = vmax.xlane.f32.xlu0 %v1858_v15 }
 0x605   : > { %v1861_v16 = vsel %vm1358_vm4, %v6986_v12, -inf }
 0x606   : > { %1862 = vmax.xlane.f32.xlu1 %v1861_v16 }
 0x61f   : > { %v1615_v18 = vpop.f32.mrb[28].mxu0 }
 0x620   : > { %v1645_v23 = vcombine.high %v1615_v18, %v1615_v18  ;;  %v6992_v25 = vcombine.low %v1644_v17, %v1615_v18  ;;  %v5592_v26 = vpop.f32.mrb[29].mxu0  ;;  %v1750_v27 = vpop.f32.mrb[40].mxu1 }
 0x621   : > { %v1618_v31 = vpop.f32.mrb[30].mxu0  ;;  %v5614_v1 = vpop.f32.mrb[41].mxu1  ;;  %v7002_v30 = vmul.f32 0.35355338, %v1750_v27 }
 0x622   : > { %v6994_v28 = vcombine.low %v1645_v23, %v1618_v31  ;;  %v5593_v9 = vpop.f32.mrb[31].mxu0  ;;  %v1753_v21 = vpop.f32.mrb[42].mxu1  ;;  %v1646_v35 = vcombine.high %v1618_v31, %v1618_v31 }
 0x623   : > { %v5615_v24 = vpop.f32.mrb[43].mxu1  ;;  %v1864_v52 = vsel %vm1371_vm5, %v7002_v30, -inf }
 0x624   : > { %v1668_v33 = vpack.c.bf16 %v6994_v28, %v6992_v25 }
 0x627   : > { %v1623_v38 = vpop.f32.mrb[32].mxu0 }
 0x628   : > { %v6998_v2 = vcombine.low %v1646_v35, %v1623_v38  ;;  %v5596_v39 = vpop.f32.mrb[33].mxu0 }
 0x629   : > { %v1626_v42 = vpop.f32.mrb[34].mxu0 }
 0x62a   : > { %v5597_v44 = vpop.f32.mrb[35].mxu0 }
 0x62f   : > { %v1820_v45 = vpop.f32.mrb[36].mxu0 }
 0x630   : > { %v7000_v29 = vmul.f32 0.35355338, %v1820_v45  ;;  %v5624_v46 = vpop.f32.mrb[37].mxu0 }
 0x631   : > { %v1823_v47 = vpop.f32.mrb[38].mxu0 }
 0x632   : > { %v7004_v50 = vmul.f32 0.35355338, %v1823_v47  ;;  %v5625_v19 = vpop.f32.mrb[39].mxu0  ;;  %v1867_v51 = vsel %vm1358_vm4, %v7000_v29, -inf }
 0x633   : > { %1868 = vmax.xlane.f32.xlu0 %v1867_v51 }
 0x634   : > { %v1870_v37 = vsel %vm1358_vm4, %v7004_v50, -inf }
 0x635   : > { %1871 = vmax.xlane.f32.xlu1 %v1870_v37 }
 0x637   : > { %v1828_v53 = vpop.f32.mrb[40].mxu0  ;;  %1865 = vmax.xlane.f32.xlu0 %v1864_v52 }
 0x638   : > { %v7012_v54 = vmul.f32 0.35355338, %v1828_v53  ;;  %v5628_v55 = vpop.f32.mrb[41].mxu0 }
 0x639   : > { %v1831_v56 = vpop.f32.mrb[42].mxu0 }
 0x63a   : > { %v7014_v57 = vmul.f32 0.35355338, %v1831_v56  ;;  %v5629_v59 = vpop.f32.mrb[43].mxu0  ;;  %v1873_v62 = vsel %vm1358_vm4, %v7012_v54, -inf }
 0x63b   : > { %1874 = vmax.xlane.f32.xlu1 %v1873_v62 }
 0x63c   : > { %v1876_v63 = vsel %vm1358_vm4, %v7014_v57, -inf }
 0x63d   : > { %1877 = vmax.xlane.f32.xlu0 %v1876_v63 }
 0x63f   : > { %v1836_v3 = vpop.f32.mrb[44].mxu0 }
 0x640   : > { %v5632_v4 = vpop.f32.mrb[45].mxu0  ;;  %v7026_v8 = vmul.f32 0.35355338, %v1836_v3 }
 0x641   : > { %v1839_v5 = vpop.f32.mrb[46].mxu0 }
 0x642   : > { %v5633_v6 = vpop.f32.mrb[47].mxu0  ;;  %v1879_v16 = vsel %vm1371_vm5, %v7026_v8, -inf }
 0x64c   : > { %1970 = vrot.lane.b32.xlu1 %v6748_v13, %s6399_s21 }
 0x653   : > { %1968 = vrot.lane.b32.xlu0 %v6744_v60, %s6399_s21 }
 0x657   : > { %1972 = vrot.lane.b32.xlu0 %v6752_v22, %s6399_s21 }
 0x66c   : > { %v1854_v11 = vpop.xlane.xlu1 %1853 }
 0x66d   : > { %v1882_v14 = vsub.f32 %v6976_v61, %v1854_v11 }
 0x66e   : > { %v1857_v23 = vpop.xlane.xlu0 %1856 }
 0x66f   : > { %v1892_v15 = vmul.f32 1.442695, %v1882_v14  ;;  %v1883_v26 = vsub.f32 %v6978_v0, %v1857_v23 }
 0x670   : > { %1880 = vmax.xlane.f32.xlu1 %v1879_v16 }
 0x671   : > { %6112 = vpow2.f32 %v1892_v15  ;;  %v1894_v1 = vmul.f32 1.442695, %v1883_v26 }
 0x67b   : > { %v7031_v17 = vpop.eup %6112 }
 0x67c   : > { %v1912_v18 = vsel %vm1358_vm4, %v7031_v17, 0.0 }
 0x67d   : > { %1913 = vadd.xlane.f32.xlu0 %v1912_v18 }
 0x681   : > { %2044 = vrot.lane.b32.xlu1 %v6756_v32, %s6399_s21 }
 0x691   : > { %v1860_v27 = vpop.xlane.xlu0 %1859 }
 0x692   : > { %v1884_v61 = vsub.f32 %v6984_v7, %v1860_v27 }
 0x693   : > { %v1863_v31 = vpop.xlane.xlu1 %1862 }
 0x694   : > { %v1896_v9 = vmul.f32 1.442695, %v1884_v61  ;;  %v1885_v21 = vsub.f32 %v6986_v12, %v1863_v31 }
 0x696   : > { %6114 = vpow2.f32 %v1896_v9  ;;  %v1898_v24 = vmul.f32 1.442695, %v1885_v21 }
 0x697   : > { %6116 = vpow2.f32 %v1894_v1 }
 0x698   : > { %6118 = vpow2.f32 %v1898_v24 }
 0x6a0   : > { %v7040_v35 = vpop.eup %6114 }
 0x6a1   : > { %v1918_v38 = vsel %vm1358_vm4, %v7040_v35, 0.0  ;;  %v7044_v39 = vpop.eup %6116 }
 0x6a2   : > { %1919 = vadd.xlane.f32.xlu0 %v1918_v38  ;;  %v1915_v0 = vsel %vm1358_vm4, %v7044_v39, 0.0  ;;  %v7048_v7 = vpop.eup %6118 }
 0x6a3   : > { %v1921_v12 = vsel %vm1358_vm4, %v7048_v7, 0.0 }
 0x6a5   : > { %1916 = vadd.xlane.f32.xlu1 %v1915_v0 }
 0x6a9   : > { %1922 = vadd.xlane.f32.xlu1 %v1921_v12 }
 0x6c0   : > { %v1869_v42 = vpop.xlane.xlu0 %1868 }
 0x6c1   : > { %v1887_v44 = vsub.f32 %v7000_v29, %v1869_v42 }
 0x6c2   : > { %v1872_v45 = vpop.xlane.xlu1 %1871 }
 0x6c3   : > { %v1902_v46 = vmul.f32 1.442695, %v1887_v44  ;;  %v1888_v47 = vsub.f32 %v7004_v50, %v1872_v45 }
 0x6c4   : > { %v1866_v19 = vpop.xlane.xlu0 %1865 }
 0x6c5   : > { %6120 = vpow2.f32 %v1902_v46  ;;  %v1886_v51 = vsub.f32 %v7002_v30, %v1866_v19  ;;  %v1904_v37 = vmul.f32 1.442695, %v1888_v47 }
 0x6c7   : > { %v1900_v52 = vmul.f32 1.442695, %v1886_v51 }
 0x6c8   : > { %v1875_v53 = vpop.xlane.xlu1 %1874 }
 0x6c9   : > { %6122 = vpow2.f32 %v1900_v52  ;;  %v1889_v55 = vsub.f32 %v7012_v54, %v1875_v53 }
 0x6ca   : > { %v1878_v56 = vpop.xlane.xlu0 %1877  ;;  %6124 = vpow2.f32 %v1904_v37 }
 0x6cb   : > { %v1906_v59 = vmul.f32 1.442695, %v1889_v55  ;;  %v1890_v62 = vsub.f32 %v7014_v57, %v1878_v56 }
 0x6cc   : > { %v1971_v50 = vpop.permute.xlu1 %1970 }
 0x6cd   : > { %v1908_v29 = vmul.f32 1.442695, %v1890_v62  ;;  %6126 = vpow2.f32 %v1906_v59 }
 0x6ce   : > { %v1969_v63 = vpop.permute.xlu0 %1968 }
 0x6cf   : > { %v7057_v3 = vpop.eup %6120  ;;  %6128 = vpow2.f32 %v1908_v29  ;;  %5635 = vmatpush3.bf16.msra.mxu1 %v1969_v63 }
 0x6d0   : > { %v1927_v30 = vsel %vm1358_vm4, %v7057_v3, 0.0  ;;  %5636 = vmatprep.subr.bf16.mxu1 %v6393_v43 }
 0x6d1   : > { %1928 = vadd.xlane.f32.xlu0 %v1927_v30 }
 0x6d2   : > { %v1973_v4 = vpop.permute.xlu0 %1972 }
 0x6d3   : > { %v7062_v54 = vpop.eup %6122  ;;  %5637 = vmatpush3.bf16.msra.mxu1 %v1971_v50  ;;  %v1986_v6 = vsel %vm1493_vm6, %v1973_v4, 0  ;;  %v1031_v4 = vld [vmem:[%s6560_s18] sm:$0xf] }
 0x6d4   : > { %v1924_v57 = vsel %vm1371_vm5, %v7062_v54, 0.0  ;;  %5638 = vmatprep.subr.bf16.mxu1 %v6393_v43  ;;  %v7067_v5 = vpop.eup %6124 }
 0x6d5   : > { %1925 = vadd.xlane.f32.xlu1 %v1924_v57  ;;  %v1930_v14 = vsel %vm1358_vm4, %v7067_v5, 0.0 }
 0x6d7   : > { %5639 = vmatpush3.bf16.msra.mxu1 %v1986_v6  ;;  %v7070_v11 = vpop.eup %6126 }
 0x6d8   : > { %5670 = vmatprep.subr.bf16.mxu1 %v6393_v43  ;;  %v1933_v18 = vsel %vm1358_vm4, %v7070_v11, 0.0 }
 0x6d9   : > { %v7075_v15 = vpop.eup %6128  ;;  %1931 = vadd.xlane.f32.xlu1 %v1930_v14 }
 0x6da   : > { %v1936_v16 = vsel %vm1358_vm4, %v7075_v15, 0.0 }
 0x6db   : > { %1937 = vadd.xlane.f32.xlu0 %v1936_v16  ;;  %v2268_v16 = vsel %vm2176_vm7, %v1031_v4, 0 }
 0x6dd   : > { %1934 = vadd.xlane.f32.xlu1 %v1933_v18 }
 0x6ee   : > { %2048 = vrot.lane.b32.xlu1 %v6764_v36, %s6399_s21 }
 0x6f2   : > { %2348 = vrot.lane.b32.xlu1 %v6744_v60, %s6400_s24 }
 0x6f6   : > { %2352 = vrot.lane.b32.xlu1 %v6752_v22, %s6400_s24 }
 0x6fa   : > { %2342 = vrot.lane.b32.xlu1 %v6744_v60, %s6401_s5 }
 0x6fd   : > { %v1881_v23 = vpop.xlane.xlu1 %1880 }
 0x6fe   : > { %v1891_v26 = vsub.f32 %v7026_v8, %v1881_v23  ;;  %2344 = vrot.lane.b32.xlu1 %v6748_v13, %s6401_s5 }
 0x700   : > { %v1910_v27 = vmul.f32 1.442695, %v1891_v26 }
 0x701   : > { %v2045_v61 = vpop.permute.xlu1 %2044 }
 0x702   : > { %6130 = vpow2.f32 %v1910_v27  ;;  %5653 = vmatpush3.bf16.msra.mxu0 %v2045_v61  ;;  %2428 = vrot.lane.b32.xlu1 %v6756_v32, %s6401_s5 }
 0x703   : > { %5654 = vmatprep.subr.bf16.mxu0 %v6393_v43 }
 0x706   : > { %2430 = vrot.lane.b32.xlu1 %v6758_v34, %s6401_s5 }
 0x70a   : > { %v1914_v8 = vpop.xlane.xlu0 %1913 }
 0x70b   : > { %6132 = vrcp.f32 %v1914_v8 }
 0x70c   : > { %v7091_v31 = vpop.eup %6130 }
 0x70d   : > { %v1939_v1 = vsel %vm1371_vm5, %v7091_v31, 0.0 }
 0x70e   : > { %1940 = vadd.xlane.f32.xlu0 %v1939_v1 }
 0x715   : > { %v6133_v38 = vpop.eup %6132 }
 0x716   : > { %v1952_v12 = vmul.f32 %v6133_v38, %v7031_v17 }
 0x724   : > { %2046 = vrot.lane.b32.xlu0 %v6758_v34, %s6399_s21  ;;  %s8297_s21 = scalar_lea.vmem %s8254_s8, %s6537_s2 }
 0x728   : > { %2350 = vrot.lane.b32.xlu0 %v6748_v13, %s6400_s24 }
 0x72c   : > { %2434 = vrot.lane.b32.xlu0 %v6756_v32, %s6400_s24 }
 0x72f   : > { %v1920_v21 = vpop.xlane.xlu0 %1919 }
 0x730   : > { %2436 = vrot.lane.b32.xlu0 %v6758_v34, %s6400_s24 }
 0x732   : > { %v1917_v9 = vpop.xlane.xlu1 %1916 }
 0x733   : > { %6134 = vrcp.f32 %v1917_v9 }
 0x734   : > { %2438 = vrot.lane.b32.xlu0 %v6764_v36, %s6400_s24 }
 0x736   : > { %v1923_v24 = vpop.xlane.xlu1 %1922 }
 0x737   : > { %6136 = vrcp.f32 %v1923_v24 }
 0x738   : > { %2346 = vrot.lane.b32.xlu0 %v6752_v22, %s6401_s5  ;;  %6138 = vrcp.f32 %v1920_v21 }
 0x73c   : > { %2432 = vrot.lane.b32.xlu0 %v6764_v36, %s6401_s5  ;;  %s8298_s5 = scalar_lea.vmem %s8256_s10, %s6537_s2 }
 0x73d   : > { %v6135_v0 = vpop.eup %6134 }
 0x73e   : > { %v1953_v42 = vmul.f32 %v6135_v0, %v7044_v39 }
 0x740   : > { %v1962_v44 = vpack.c.bf16 %v1953_v42, %v1952_v12 }
 0x741   : > { %v6137_v45 = vpop.eup %6136 }
 0x742   : > { %5641 = vmatmul.mubr.msk.bf16.vlgmr.msra.gmra.mrb[44].mxu1 %vm1358_vm4, %v1962_v44  ;;  %v6139_v46 = vpop.eup %6138  ;;  %v1955_v47 = vmul.f32 %v6137_v45, %v7048_v7 }
 0x743   : > { %5644 = vmatprep.mubr.msk.bf16.mxu1 %vm6394_vm2, %v6393_v43  ;;  %v1954_v19 = vmul.f32 %v6139_v46, %v7040_v35  ;;  %v1032_v35 = vld [vmem:[%s6560_s18 + $0x4] sm:$0xf] }
 0x744   : > { %v2178_v55 = vsel %vm2176_vm7, %v1032_v35, 0 }
 0x745   : > { %v1963_v51 = vpack.c.bf16 %v1955_v47, %v1954_v19  ;;  %5671 = vmatpush3.bf16.msra.mxu1 %v2178_v55 }
 0x746   : > { %5714 = vmatprep.subr.bf16.mxu1 %v6393_v43 }
 0x74a   : > { %5645 = vmatmul.mubr.msk.bf16.gmra.mrb[48].mxu1 %vm1358_vm4, %v1963_v51 }
 0x74b   : > { %5648 = vmatprep.mubr.msk.bf16.mxu1 %vm6394_vm2, %v6393_v43 }
 0x75e   : > { %v1929_v53 = vpop.xlane.xlu0 %1928 }
 0x762   : > { %v1926_v17 = vpop.xlane.xlu1 %1925 }
 0x763   : > { %6140 = vrcp.f32 %v1926_v17 }
 0x766   : > { %v1932_v7 = vpop.xlane.xlu1 %1931 }
 0x767   : > { %6142 = vrcp.f32 %v1932_v7 }
 0x768   : > { %6144 = vrcp.f32 %v1929_v53  ;;  %v1938_v56 = vpop.xlane.xlu0 %1937 }
 0x76a   : > { %v1935_v59 = vpop.xlane.xlu1 %1934 }
 0x76b   : > { %6146 = vrcp.f32 %v1935_v59 }
 0x76c   : > { %6148 = vrcp.f32 %v1938_v56 }
 0x76d   : > { %v6141_v39 = vpop.eup %6140 }
 0x76e   : > { %v1956_v37 = vmul.f32 %v6141_v39, %v7062_v54  ;;  %v2049_v50 = vpop.permute.xlu1 %2048 }
 0x76f   : > { %v2062_v6 = vsel %vm1493_vm6, %v2049_v50, 0 }
 0x770   : > { %v1964_v52 = vpack.c.bf16 %v1956_v37, %v1956_v37 }
 0x771   : > { %v6143_v29 = vpop.eup %6142 }
 0x772   : > { %5649 = vmatmul.mubr.msk.bf16.gmra.mrb[52].mxu1 %vm1358_vm4, %v1964_v52  ;;  %v6145_v30 = vpop.eup %6144  ;;  %v1958_v54 = vmul.f32 %v6143_v29, %v7067_v5  ;;  %v2349_v40 = vpop.permute.xlu1 %2348 }
 0x773   : > { %5672 = vmatprep.mubr.msk.bf16.mxu1 %vm6394_vm2, %v6393_v43  ;;  %v1957_v57 = vmul.f32 %v6145_v30, %v7057_v3  ;;  %v2364_v19 = vsel %vm1190_vm3, %v2349_v40, 0 }
 0x775   : > { %v1965_v14 = vpack.c.bf16 %v1958_v54, %v1957_v57  ;;  %v6147_v18 = vpop.eup %6146 }
 0x776   : > { %v6149_v23 = vpop.eup %6148  ;;  %v1959_v5 = vmul.f32 %v6147_v18, %v7070_v11  ;;  %v2353_v48 = vpop.permute.xlu1 %2352 }
 0x777   : > { %v1960_v3 = vmul.f32 %v6149_v23, %v7075_v15  ;;  %v2370_v56 = vsel %vm1190_vm3, %v2353_v48, 0 }
 0x779   : > { %v1966_v26 = vpack.c.bf16 %v1960_v3, %v1959_v5 }
 0x77a   : > { %v7170_v20 = vpop.permute.xlu1 %2342 }
 0x79b   : > { %v1941_v62 = vpop.xlane.xlu0 %1940 }
 0x79c   : > { %6150 = vrcp.f32 %v1941_v62 }
 0x79f   : > { %v2047_v63 = vpop.permute.xlu0 %2046 }
 0x7a0   : > { %5655 = vmatpush3.bf16.msra.mxu0 %v2047_v63 }
 0x7a1   : > { %5656 = vmatprep.subr.bf16.mxu0 %v6393_v43 }
 0x7a3   : > { %v7137_v8 = vpop.permute.xlu0 %2350 }
 0x7a4   : > { %5657 = vmatpush3.bf16.msra.mxu0 %v2062_v6  ;;  %v2367_v55 = vsel %vm1190_vm3, %v7137_v8, 0 }
 0x7a5   : > { %5692 = vmatprep.subr.bf16.mxu0 %v6393_v43 }
 0x7a6   : > { %v6151_v27 = vpop.eup %6150 }
 0x7a7   : > { %5659 = vmatmul.mubr.msk.bf16.vlgmr.msra.gmra.mrb[48].mxu0 %vm1358_vm4, %v1965_v14  ;;  %v1961_v61 = vmul.f32 %v6151_v27, %v7091_v31  ;;  %v2435_v11 = vpop.permute.xlu0 %2434 }
 0x7a8   : > { %5662 = vmatprep.mubr.msk.bf16.mxu0 %vm6394_vm2, %v6393_v43  ;;  %5693 = vmatpush3.bf16.msra.mxu0 %v2268_v16  ;;  %v2450_v15 = vsel %vm1190_vm3, %v2435_v11, 0 }
 0x7a9   : > { %5732 = vmatprep.subr.bf16.mxu0 %v6393_v43  ;;  %v1967_v1 = vpack.c.bf16 %v1961_v61, %v1961_v61 }
 0x7ab   : > { %v2437_v31 = vpop.permute.xlu0 %2436 }
 0x7ac   : > { %v2453_v9 = vsel %vm1190_vm3, %v2437_v31, 0 }
 0x7af   : > { %5663 = vmatmul.mubr.msk.bf16.gmra.mrb[52].mxu0 %vm1358_vm4, %v1966_v26  ;;  %v2439_v10 = vpop.permute.xlu0 %2438 }
 0x7b0   : > { %5666 = vmatprep.mubr.msk.bf16.mxu0 %vm6394_vm2, %v6393_v43 }
 0x7b3   : > { %v7183_v28 = vpop.permute.xlu0 %2346 }
 0x7b7   : > { %5667 = vmatmul.mubr.msk.bf16.gmra.mrb[56].mxu0 %vm1358_vm4, %v1967_v1 }
 0x7b8   : > { %5694 = vmatprep.mubr.msk.bf16.mxu0 %vm6394_vm2, %v6393_v43 }
 0x7bf   : > { %5695 = vmatmul.mubr.msk.bf16.vlgmr.msra.gmra.mrb[60].mxu0 %vm1190_vm3, %v1665_v41  ;;  %v2456_v41 = vsel %vm1190_vm3, %v2439_v10, 0 }
 0x7c0   : > { %5733 = vmatpush3.bf16.xpose.msra.mxu0 %v2450_v15  ;;  %5698 = vmatprep.mubr.msk.bf16.mxu0 %vm6394_vm2, %v6393_v43 }
 0x7c1   : > { %5734 = vmatprep.subr.bf16.mxu0 %v6393_v43 }
 0x7c7   : > { %5699 = vmatmul.mubr.msk.bf16.gmra.mrb[64].mxu0 %vm1190_vm3, %v1666_v49  ;;  %v1669_v49 = vpack.c.bf16 %v6998_v2, %v6998_v2 }
 0x7c8   : > { %5735 = vmatpush3.bf16.xpose.msra.mxu0 %v2453_v9  ;;  %5702 = vmatprep.mubr.msk.bf16.mxu0 %vm6394_vm2, %v6393_v43 }
 0x7c9   : > { %5736 = vmatprep.subr.bf16.mxu0 %v6393_v43 }
 0x7cf   : > { %5703 = vmatmul.mubr.msk.bf16.gmra.mrb[68].mxu0 %vm1190_vm3, %v6974_v58  ;;  %v7175_v58 = vpop.permute.xlu1 %2344 }
 0x7d0   : > { %5737 = vmatpush3.bf16.xpose.msra.mxu0 %v2456_v41  ;;  %5706 = vmatprep.mubr.msk.bf16.mxu0 %vm6394_vm2, %v6393_v43 }
 0x7d1   : > { %5768 = vmatprep.subr.bf16.mxu0 %v6393_v43 }
 0x7d3   : > { %v2429_v21 = vpop.permute.xlu1 %2428 }
 0x7d7   : > { %5707 = vmatmul.mubr.msk.bf16.gmra.mrb[72].mxu0 %vm1190_vm3, %v1668_v33  ;;  %v2431_v25 = vpop.permute.xlu1 %2430  ;;  %v2433_v33 = vpop.permute.xlu0 %2432 }
 0x7d8   : > { %5710 = vmatprep.mubr.msk.bf16.mxu0 %vm6394_vm2, %v6393_v43 }
 0x7df   : > { %5711 = vmatmul.mubr.msk.bf16.gmra.mrb[76].mxu0 %vm1190_vm3, %v1669_v49 }
 0x7e0   : > { %5738 = vmatprep.mubr.msk.bf16.mxu0 %vm6394_vm2, %v6393_v43 }
 0x7e7   : > { %5739 = vmatmul.mubr.msk.bf16.vlgmr.msra.gmra.mrb[80].mxu0 %vm1190_vm3, %v2429_v21 }
 0x7e8   : > { %5742 = vmatprep.mubr.msk.bf16.mxu0 %vm6394_vm2, %v6393_v43 }
 0x7ef   : > { %5743 = vmatmul.mubr.msk.bf16.gmra.mrb[84].mxu0 %vm1190_vm3, %v2431_v25 }
 0x7f0   : > { %5746 = vmatprep.mubr.msk.bf16.mxu0 %vm6394_vm2, %v6393_v43 }
 0x7f7   : > { %5747 = vmatmul.mubr.msk.bf16.gmra.mrb[88].mxu0 %vm1190_vm3, %v2433_v33 }
 0x7f8   : > { %5774 = vmatprep.mubr.msk.bf16.mxu0 %vm6394_vm2, %v6393_v43 }
 0x815   : > { %v2022_v2 = vpop.f32.mrb[44].mxu1 }
 0x816   : > { %v2130_v24 = vcombine.high %v2022_v2, %v2022_v2  ;;  %v5642_v38 = vpop.f32.mrb[45].mxu1 }
 0x817   : > { %v2025_v0 = vpop.f32.mrb[46].mxu1 }
 0x818   : > { %v2131_v12 = vcombine.high %v2025_v0, %v2025_v0  ;;  %v5643_v42 = vpop.f32.mrb[47].mxu1  ;;  %v2138_v44 = vcombine.low %v2022_v2, %v2130_v24 }
 0x81a   : > { %v2139_v45 = vcombine.low %v2025_v0, %v2131_v12 }
 0x81c   : > { %v2156_v46 = vpack.c.bf16 %v2139_v45, %v2138_v44 }
 0x81d   : > { %v2030_v47 = vpop.f32.mrb[48].mxu1 }
 0x81e   : > { %v2132_v51 = vcombine.high %v2030_v47, %v2030_v47  ;;  %v5646_v17 = vpop.f32.mrb[49].mxu1  ;;  %5673 = vmatmul.mubr.msk.bf16.vlgmr.msra.gmra.mrb[56].mxu1 %vm1190_vm3, %v2156_v46 }
 0x81f   : > { %5715 = vmatpush3.bf16.xpose.msra.mxu1 %v2364_v19  ;;  %v2033_v39 = vpop.f32.mrb[50].mxu1  ;;  %5676 = vmatprep.mubr.msk.bf16.mxu1 %vm6394_vm2, %v6393_v43 }
 0x820   : > { %v2133_v37 = vcombine.high %v2033_v39, %v2033_v39  ;;  %v5647_v52 = vpop.f32.mrb[51].mxu1  ;;  %5716 = vmatprep.subr.bf16.mxu1 %v6393_v43  ;;  %v2140_v7 = vcombine.low %v2030_v47, %v2132_v51 }
 0x822   : > { %v2141_v53 = vcombine.low %v2033_v39, %v2133_v37 }
 0x824   : > { %v2157_v35 = vpack.c.bf16 %v2141_v53, %v2140_v7 }
 0x826   : > { %5677 = vmatmul.mubr.msk.bf16.gmra.mrb[60].mxu1 %vm1190_vm3, %v2157_v35 }
 0x827   : > { %5717 = vmatpush3.bf16.xpose.msra.mxu1 %v2367_v55  ;;  %5680 = vmatprep.mubr.msk.bf16.mxu1 %vm6394_vm2, %v6393_v43 }
 0x828   : > { %5718 = vmatprep.subr.bf16.mxu1 %v6393_v43 }
 0x82f   : > { %5719 = vmatpush3.bf16.xpose.msra.mxu1 %v2370_v56 }
 0x830   : > { %5750 = vmatprep.subr.bf16.mxu1 %v6393_v43 }
 0x845   : > { %v2038_v59 = vpop.f32.mrb[52].mxu1 }
 0x846   : > { %v5650_v62 = vpop.f32.mrb[53].mxu1 }
 0x847   : > { %v2041_v29 = vpop.f32.mrb[54].mxu1 }
 0x848   : > { %v5651_v63 = vpop.f32.mrb[55].mxu1 }
 0x87a   : > { %v2098_v30 = vpop.f32.mrb[48].mxu0 }
 0x87b   : > { %v2134_v50 = vcombine.high %v2098_v30, %v2098_v30  ;;  %v2142_v54 = vcombine.low %v2038_v59, %v2098_v30  ;;  %v5660_v4 = vpop.f32.mrb[49].mxu0 }
 0x87c   : > { %v2101_v57 = vpop.f32.mrb[50].mxu0 }
 0x87d   : > { %v2143_v6 = vcombine.low %v2134_v50, %v2101_v57  ;;  %v5661_v14 = vpop.f32.mrb[51].mxu0  ;;  %v2135_v18 = vcombine.high %v2101_v57, %v2101_v57 }
 0x87f   : > { %v2158_v16 = vpack.c.bf16 %v2143_v6, %v2142_v54 }
 0x881   : > { %5681 = vmatmul.mubr.msk.bf16.gmra.mrb[64].mxu1 %vm1190_vm3, %v2158_v16 }
 0x882   : > { %v2106_v23 = vpop.f32.mrb[52].mxu0  ;;  %5684 = vmatprep.mubr.msk.bf16.mxu1 %vm6394_vm2, %v6393_v43 }
 0x883   : > { %v2136_v5 = vcombine.high %v2106_v23, %v2106_v23  ;;  %v2144_v3 = vcombine.low %v2135_v18, %v2106_v23  ;;  %v5664_v26 = vpop.f32.mrb[53].mxu0 }
 0x884   : > { %v2109_v27 = vpop.f32.mrb[54].mxu0 }
 0x885   : > { %v2145_v61 = vcombine.low %v2136_v5, %v2109_v27  ;;  %v5665_v1 = vpop.f32.mrb[55].mxu0  ;;  %v2137_v11 = vcombine.high %v2109_v27, %v2109_v27 }
 0x887   : > { %v2159_v8 = vpack.c.bf16 %v2145_v61, %v2144_v3 }
 0x889   : > { %5685 = vmatmul.mubr.msk.bf16.gmra.mrb[68].mxu1 %vm1190_vm3, %v2159_v8 }
 0x88a   : > { %v2114_v15 = vpop.f32.mrb[56].mxu0  ;;  %5688 = vmatprep.mubr.msk.bf16.mxu1 %vm6394_vm2, %v6393_v43 }
 0x88b   : > { %v2146_v31 = vcombine.low %v2137_v11, %v2114_v15  ;;  %v5668_v9 = vpop.f32.mrb[57].mxu0 }
 0x88c   : > { %v2117_v10 = vpop.f32.mrb[58].mxu0 }
 0x88d   : > { %v5669_v40 = vpop.f32.mrb[59].mxu0  ;;  %v2160_v41 = vpack.c.bf16 %v2146_v31, %v2146_v31 }
 0x891   : > { %5689 = vmatmul.mubr.msk.bf16.gmra.mrb[72].mxu1 %vm1190_vm3, %v2160_v41 }
 0x892   : > { %v2304_v48 = vpop.f32.mrb[60].mxu0  ;;  %5720 = vmatprep.mubr.msk.bf16.mxu1 %vm6394_vm2, %v6393_v43 }
 0x893   : > { %v5696_v49 = vpop.f32.mrb[61].mxu0 }
 0x894   : > { %v2307_v21 = vpop.f32.mrb[62].mxu0 }
 0x895   : > { %v5697_v25 = vpop.f32.mrb[63].mxu0 }
 0x899   : > { %5721 = vmatmul.mubr.msk.bf16.vlgmr.msra.gmra.mrb[76].mxu1 %vm1190_vm3, %v7170_v20 }
 0x89a   : > { %v2312_v33 = vpop.f32.mrb[64].mxu0  ;;  %5724 = vmatprep.mubr.msk.bf16.mxu1 %vm6394_vm2, %v6393_v43 }
 0x89b   : > { %v5700_v2 = vpop.f32.mrb[65].mxu0 }
 0x89c   : > { %v2315_v24 = vpop.f32.mrb[66].mxu0 }
 0x89d   : > { %v5701_v38 = vpop.f32.mrb[67].mxu0 }
 0x8a1   : > { %5725 = vmatmul.mubr.msk.bf16.gmra.mrb[80].mxu1 %vm1190_vm3, %v7175_v58 }
 0x8a2   : > { %v2320_v0 = vpop.f32.mrb[68].mxu0  ;;  %5728 = vmatprep.mubr.msk.bf16.mxu1 %vm6394_vm2, %v6393_v43 }
 0x8a3   : > { %v5704_v12 = vpop.f32.mrb[69].mxu0 }
 0x8a4   : > { %v2323_v42 = vpop.f32.mrb[70].mxu0 }
 0x8a5   : > { %v5705_v44 = vpop.f32.mrb[71].mxu0 }
 0x8a9   : > { %5729 = vmatmul.mubr.msk.bf16.gmra.mrb[84].mxu1 %vm1190_vm3, %v7183_v28 }
 0x8aa   : > { %v2328_v20 = vpop.f32.mrb[72].mxu0  ;;  %5756 = vmatprep.mubr.msk.bf16.mxu1 %vm6394_vm2, %v6393_v43 }
 0x8ab   : > { %v5708_v45 = vpop.f32.mrb[73].mxu0 }
 0x8ac   : > { %v2331_v46 = vpop.f32.mrb[74].mxu0 }
 0x8ad   : > { %v5709_v47 = vpop.f32.mrb[75].mxu0 }
 0x8b2   : > { %v2336_v19 = vpop.f32.mrb[76].mxu0 }
 0x8b3   : > { %v5712_v51 = vpop.f32.mrb[77].mxu0 }
 0x8b4   : > { %v2339_v58 = vpop.f32.mrb[78].mxu0 }
 0x8b5   : > { %v5713_v17 = vpop.f32.mrb[79].mxu0 }
 0x8ba   : > { %v2492_v39 = vpop.f32.mrb[80].mxu0 }
 0x8bb   : > { %v5740_v37 = vpop.f32.mrb[81].mxu0  ;;  %v2519_v58 = vmul.f32 0.35355338, %v2492_v39 }
 0x8bc   : > { %v2495_v52 = vpop.f32.mrb[82].mxu0 }
 0x8bd   : > { %v5741_v7 = vpop.f32.mrb[83].mxu0 }
 0x8c2   : > { %v2500_v53 = vpop.f32.mrb[84].mxu0 }
 0x8c3   : > { %v5744_v35 = vpop.f32.mrb[85].mxu0  ;;  %v2521_v45 = vmul.f32 0.35355338, %v2500_v53 }
 0x8c4   : > { %v7224_v55 = vpop.f32.mrb[86].mxu0 }
 0x8c5   : > { %v5745_v28 = vpop.f32.mrb[87].mxu0  ;;  %v2545_v35 = vsel %vm1358_vm4, %v2521_v45, -inf }
 0x8c6   : > { %v2539_v28 = vsel %vm1358_vm4, %v2519_v58, -inf }
 0x8ca   : > { %v2508_v56 = vpop.f32.mrb[88].mxu0 }
 0x8cb   : > { %v5748_v59 = vpop.f32.mrb[89].mxu0  ;;  %v7257_v53 = vmul.f32 0.35355338, %v2508_v56 }
 0x8cc   : > { %v2511_v62 = vpop.f32.mrb[90].mxu0 }
 0x8cd   : > { %v5749_v29 = vpop.f32.mrb[91].mxu0  ;;  %v2551_v56 = vsel %vm1371_vm5, %v7257_v53, -inf }
 0x8f1   : > { %v2214_v63 = vpop.f32.mrb[56].mxu1 }
 0x8f2   : > { %v7226_v30 = vadd.f32 %v2304_v48, %v2214_v63  ;;  %v5674_v50 = vpop.f32.mrb[57].mxu1 }
 0x8f3   : > { %v2217_v54 = vpop.f32.mrb[58].mxu1  ;;  %v2522_v50 = vmul.f32 0.35355338, %v7224_v55 }
 0x8f4   : > { %v7228_v4 = vadd.f32 %v2307_v21, %v2217_v54  ;;  %v5675_v57 = vpop.f32.mrb[59].mxu1 }
 0x8f9   : > { %v2222_v6 = vpop.f32.mrb[60].mxu1 }
 0x8fa   : > { %v7230_v14 = vadd.f32 %v2312_v33, %v2222_v6  ;;  %v5678_v16 = vpop.f32.mrb[61].mxu1  ;;  %v2548_v6 = vsel %vm1358_vm4, %v2522_v50, -inf }
 0x8fb   : > { %v2225_v18 = vpop.f32.mrb[62].mxu1 }
 0x8fc   : > { %v7232_v23 = vadd.f32 %v2315_v24, %v2225_v18  ;;  %v5679_v5 = vpop.f32.mrb[63].mxu1 }
 0x954   : > { %v2230_v3 = vpop.f32.mrb[64].mxu1 }
 0x955   : > { %v7234_v26 = vadd.f32 %v2320_v0, %v2230_v3  ;;  %v5682_v27 = vpop.f32.mrb[65].mxu1  ;;  %v2520_v0 = vmul.f32 0.35355338, %v2495_v52 }
 0x956   : > { %v2233_v61 = vpop.f32.mrb[66].mxu1 }
 0x957   : > { %v7236_v1 = vadd.f32 %v2323_v42, %v2233_v61  ;;  %v5683_v8 = vpop.f32.mrb[67].mxu1 }
 0x95c   : > { %v2238_v11 = vpop.f32.mrb[68].mxu1 }
 0x95d   : > { %v7238_v15 = vadd.f32 %v2328_v20, %v2238_v11  ;;  %v5686_v31 = vpop.f32.mrb[69].mxu1 }
 0x95e   : > { %v2241_v9 = vpop.f32.mrb[70].mxu1 }
 0x95f   : > { %v7240_v10 = vadd.f32 %v2331_v46, %v2241_v9  ;;  %v5687_v40 = vpop.f32.mrb[71].mxu1  ;;  %v2542_v46 = vsel %vm1358_vm4, %v2520_v0, -inf }
 0x964   : > { %v2246_v41 = vpop.f32.mrb[72].mxu1 }
 0x965   : > { %v7242_v48 = vadd.f32 %v2336_v19, %v2246_v41  ;;  %v5690_v49 = vpop.f32.mrb[73].mxu1 }
 0x966   : > { %v2249_v21 = vpop.f32.mrb[74].mxu1 }
 0x967   : > { %v5691_v25 = vpop.f32.mrb[75].mxu1 }
 0x96c   : > { %v2406_v33 = vpop.f32.mrb[76].mxu1 }
 0x96d   : > { %v7244_v2 = vmul.f32 0.35355338, %v2406_v33  ;;  %v5722_v24 = vpop.f32.mrb[77].mxu1 }
 0x96e   : > { %v2409_v38 = vpop.f32.mrb[78].mxu1 }
 0x96f   : > { %v2515_v12 = vmul.f32 0.35355338, %v2409_v38  ;;  %v5723_v42 = vpop.f32.mrb[79].mxu1  ;;  %v2524_v44 = vsel %vm1358_vm4, %v7244_v2, -inf }
 0x970   : > { %2525 = vmax.xlane.f32.xlu1 %v2524_v44 }
 0x971   : > { %v2527_v20 = vsel %vm1358_vm4, %v2515_v12, -inf }
 0x972   : > { %2528 = vmax.xlane.f32.xlu0 %v2527_v20 }
 0x974   : > { %v2414_v47 = vpop.f32.mrb[80].mxu1  ;;  %2543 = vmax.xlane.f32.xlu1 %v2542_v46 }
 0x975   : > { %v7250_v19 = vmul.f32 0.35355338, %v2414_v47  ;;  %v5726_v51 = vpop.f32.mrb[81].mxu1 }
 0x976   : > { %v2417_v17 = vpop.f32.mrb[82].mxu1 }
 0x977   : > { %v7252_v37 = vmul.f32 0.35355338, %v2417_v17  ;;  %v5727_v52 = vpop.f32.mrb[83].mxu1  ;;  %v2530_v7 = vsel %vm1358_vm4, %v7250_v19, -inf }
 0x978   : > { %2531 = vmax.xlane.f32.xlu0 %v2530_v7  ;;  %2546 = vmax.xlane.f32.xlu1 %v2545_v35 }
 0x979   : > { %v2533_v59 = vsel %vm1358_vm4, %v7252_v37, -inf }
 0x97c   : > { %2540 = vmax.xlane.f32.xlu0 %v2539_v28  ;;  %2534 = vmax.xlane.f32.xlu1 %v2533_v59  ;;  %v2422_v39 = vpop.f32.mrb[84].mxu1 }
 0x97d   : > { %v7262_v62 = vmul.f32 0.35355338, %v2422_v39  ;;  %v5730_v29 = vpop.f32.mrb[85].mxu1 }
 0x97e   : > { %v2425_v63 = vpop.f32.mrb[86].mxu1 }
 0x97f   : > { %v5731_v54 = vpop.f32.mrb[87].mxu1  ;;  %v2536_v57 = vsel %vm1371_vm5, %v7262_v62, -inf }
 0x980   : > { %2537 = vmax.xlane.f32.xlu0 %v2536_v57  ;;  %2552 = vmax.xlane.f32.xlu1 %v2551_v56 }
 0x984   : > { %2549 = vmax.xlane.f32.xlu0 %v2548_v6 }
 0x9fd   : > { %v2526_v16 = vpop.xlane.xlu1 %2525 }
 0x9ff   : > { %v2529_v18 = vpop.xlane.xlu0 %2528 }
 0xa00   : > { %v2555_v25 = vsub.f32 %v2515_v12, %v2529_v18 }
 0xa01   : > { %v2544_v5 = vpop.xlane.xlu1 %2543 }
 0xa02   : > { %v2560_v3 = vsub.f32 %v2520_v0, %v2544_v5  ;;  %v2566_v24 = vmul.f32 1.442695, %v2555_v25  ;;  %v2554_v0 = vsub.f32 %v7244_v2, %v2526_v16 }
 0xa04   : > { %v2576_v27 = vmul.f32 1.442695, %v2560_v3  ;;  %v2564_v20 = vmul.f32 1.442695, %v2554_v0 }
 0xa05   : > { %v2532_v61 = vpop.xlane.xlu0 %2531  ;;  %v2547_v49 = vpop.xlane.xlu1 %2546 }
 0xa06   : > { %6152 = vpow2.f32 %v2576_v27  ;;  %v2561_v21 = vsub.f32 %v2521_v45, %v2547_v49  ;;  %v2556_v45 = vsub.f32 %v7250_v19, %v2532_v61 }
 0xa08   : > { %v2578_v33 = vmul.f32 1.442695, %v2561_v21  ;;  %v2568_v52 = vmul.f32 1.442695, %v2556_v45 }
 0xa09   : > { %v2541_v55 = vpop.xlane.xlu0 %2540  ;;  %v2535_v44 = vpop.xlane.xlu1 %2534 }
 0xa0a   : > { %v2559_v8 = vsub.f32 %v2519_v58, %v2541_v55  ;;  %v2557_v54 = vsub.f32 %v7252_v37, %v2535_v44 }
 0xa0c   : > { %v2574_v11 = vmul.f32 1.442695, %v2559_v8  ;;  %v2570_v57 = vmul.f32 1.442695, %v2557_v54 }
 0xa0d   : > { %v2538_v38 = vpop.xlane.xlu0 %2537  ;;  %v2553_v17 = vpop.xlane.xlu1 %2552 }
 0xa0e   : > { %6154 = vpow2.f32 %v2574_v11  ;;  %v2563_v2 = vsub.f32 %v7257_v53, %v2553_v17  ;;  %v2558_v56 = vsub.f32 %v7262_v62, %v2538_v38 }
 0xa0f   : > { %6156 = vpow2.f32 %v2578_v33 }
 0xa10   : > { %v7270_v31 = vpop.eup %6152  ;;  %6158 = vpow2.f32 %v2566_v24  ;;  %v2582_v35 = vmul.f32 1.442695, %v2563_v2  ;;  %v2572_v6 = vmul.f32 1.442695, %v2558_v56 }
 0xa11   : > { %v2602_v9 = vsel %vm1358_vm4, %v7270_v31, 0.0  ;;  %v2550_v42 = vpop.xlane.xlu0 %2549  ;;  %6160 = vpow2.f32 %v2564_v20 }
 0xa12   : > { %2603 = vadd.xlane.f32.xlu1 %v2602_v9  ;;  %v2562_v46 = vsub.f32 %v2522_v50, %v2550_v42 }
 0xa14   : > { %v2580_v12 = vmul.f32 1.442695, %v2562_v46 }
 0xa16   : > { %6162 = vpow2.f32 %v2580_v12 }
 0xa17   : > { %6164 = vpow2.f32 %v2568_v52 }
 0xa18   : > { %v7274_v40 = vpop.eup %6154  ;;  %6166 = vpow2.f32 %v2582_v35 }
 0xa19   : > { %v2599_v41 = vsel %vm1358_vm4, %v7274_v40, 0.0  ;;  %v7285_v47 = vpop.eup %6156  ;;  %6168 = vpow2.f32 %v2570_v57 }
 0xa1a   : > { %2600 = vadd.xlane.f32.xlu0 %v2599_v41  ;;  %v2605_v51 = vsel %vm1358_vm4, %v7285_v47, 0.0  ;;  %v7290_v58 = vpop.eup %6158  ;;  %6170 = vpow2.f32 %v2572_v6 }
 0xa1b   : > { %v2587_v7 = vsel %vm1358_vm4, %v7290_v58, 0.0  ;;  %v7295_v28 = vpop.eup %6160 }
 0xa1c   : > { %v2584_v19 = vsel %vm1358_vm4, %v7295_v28, 0.0 }
 0xa20   : > { %v7299_v59 = vpop.eup %6162 }
 0xa21   : > { %v2608_v39 = vsel %vm1358_vm4, %v7299_v59, 0.0  ;;  %v7303_v53 = vpop.eup %6164 }
 0xa22   : > { %v2590_v29 = vsel %vm1358_vm4, %v7303_v53, 0.0  ;;  %v7307_v63 = vpop.eup %6166 }
 0xa23   : > { %2642 = vrot.lane.b32.xlu1 %v6748_v13, %s6402_s1  ;;  %v2611_v50 = vsel %vm1371_vm5, %v7307_v63, 0.0  ;;  %v7318_v16 = vpop.eup %6168 }
 0xa24   : > { %v2593_v18 = vsel %vm1358_vm4, %v7318_v16, 0.0  ;;  %v7323_v37 = vpop.eup %6170 }
 0xa25   : > { %v2596_v62 = vsel %vm1371_vm5, %v7323_v37, 0.0 }
 0xa30   : > { %2640 = vrot.lane.b32.xlu0 %v6744_v60, %s6402_s1 }
 0xa34   : > { %2644 = vrot.lane.b32.xlu0 %v6752_v22, %s6402_s1 }
 0xa47   : > { %2606 = vadd.xlane.f32.xlu1 %v2605_v51 }
 0xa4b   : > { %2588 = vadd.xlane.f32.xlu1 %v2587_v7 }
 0xa53   : > { %2585 = vadd.xlane.f32.xlu0 %v2584_v19 }
 0xa57   : > { %2609 = vadd.xlane.f32.xlu0 %v2608_v39 }
 0xa5b   : > { %2591 = vadd.xlane.f32.xlu0 %v2590_v29 }
 0xa5c   : > { %2716 = vrot.lane.b32.xlu1 %v6756_v32, %s6402_s1 }
 0xa5f   : > { %2612 = vadd.xlane.f32.xlu0 %v2611_v50 }
 0xa75   : > { %2718 = vrot.lane.b32.xlu0 %v6758_v34, %s6402_s1 }
 0xa79   : > { %2940 = vrot.lane.b32.xlu0 %v6748_v13, %s6403_s19 }
 0xa7d   : > { %3024 = vrot.lane.b32.xlu0 %v6756_v32, %s6403_s19 }
 0xa80   : > { %2594 = vadd.xlane.f32.xlu1 %v2593_v18 }
 0xa81   : > { %3026 = vrot.lane.b32.xlu0 %v6758_v34, %s6403_s19 }
 0xa84   : > { %2597 = vadd.xlane.f32.xlu1 %v2596_v62 }
 0xa85   : > { %3028 = vrot.lane.b32.xlu0 %v6764_v36, %s6403_s19 }
 0xa89   : > { %2936 = vrot.lane.b32.xlu0 %v6752_v22, %s6404_s3 }
 0xa8d   : > { %3022 = vrot.lane.b32.xlu0 %v6764_v36, %s6404_s3 }
 0xa95   : > { %2720 = vrot.lane.b32.xlu1 %v6764_v36, %s6402_s1 }
 0xa99   : > { %2938 = vrot.lane.b32.xlu1 %v6744_v60, %s6403_s19 }
 0xa9d   : > { %2942 = vrot.lane.b32.xlu1 %v6752_v22, %s6403_s19 }
 0xa9f   : > { %v2604_v5 = vpop.xlane.xlu1 %2603 }
 0xaa0   : > { %6172 = vrcp.f32 %v2604_v5 }
 0xaa1   : > { %2932 = vrot.lane.b32.xlu1 %v6744_v60, %s6404_s3 }
 0xaa3   : > { %v2643_v61 = vpop.permute.xlu1 %2642 }
 0xaa5   : > { %2934 = vrot.lane.b32.xlu1 %v6748_v13, %s6404_s3 }
 0xaa7   : > { %v2601_v3 = vpop.xlane.xlu0 %2600 }
 0xaa8   : > { %6174 = vrcp.f32 %v2601_v3 }
 0xaa9   : > { %3018 = vrot.lane.b32.xlu1 %v6756_v32, %s6404_s3 }
 0xaaa   : > { %v6173_v55 = vpop.eup %6172 }
 0xaab   : > { %v2641_v27 = vpop.permute.xlu0 %2640  ;;  %v2630_v9 = vmul.f32 %v6173_v55, %v7270_v31 }
 0xaac   : > { %5751 = vmatpush3.bf16.msra.mxu1 %v2641_v27 }
 0xaad   : > { %3020 = vrot.lane.b32.xlu1 %v6758_v34, %s6404_s3  ;;  %5752 = vmatprep.subr.bf16.mxu1 %v6393_v43 }
 0xaaf   : > { %v2645_v8 = vpop.permute.xlu0 %2644 }
 0xab0   : > { %5753 = vmatpush3.bf16.msra.mxu1 %v2643_v61  ;;  %v2658_v49 = vsel %vm1493_vm6, %v2645_v8, 0 }
 0xab1   : > { %5754 = vmatprep.subr.bf16.mxu1 %v6393_v43 }
 0xab2   : > { %v6175_v11 = vpop.eup %6174 }
 0xab3   : > { %v2629_v41 = vmul.f32 %v6175_v11, %v7274_v40 }
 0xab4   : > { %5755 = vmatpush3.bf16.msra.mxu1 %v2658_v49 }
 0xab5   : > { %v2637_v21 = vpack.c.bf16 %v2630_v9, %v2629_v41  ;;  %5786 = vmatprep.subr.bf16.mxu1 %v6393_v43  ;;  %v1033_v9 = vld [vmem:[%s6560_s18 + $0x8] sm:$0xf] }
 0xab6   : > { %v2849_v41 = vsel %vm2176_vm7, %v1033_v9, 0 }
 0xad4   : > { %v2607_v25 = vpop.xlane.xlu1 %2606 }
 0xad8   : > { %v2589_v33 = vpop.xlane.xlu1 %2588 }
 0xad9   : > { %6176 = vrcp.f32 %v2589_v33 }
 0xadc   : > { %v2717_v24 = vpop.permute.xlu1 %2716 }
 0xadd   : > { %5769 = vmatpush3.bf16.msra.mxu0 %v2717_v24 }
 0xade   : > { %5770 = vmatprep.subr.bf16.mxu0 %v6393_v43 }
 0xae0   : > { %v2586_v38 = vpop.xlane.xlu0 %2585 }
 0xae1   : > { %6178 = vrcp.f32 %v2586_v38 }
 0xae3   : > { %v6177_v31 = vpop.eup %6176 }
 0xae4   : > { %v2610_v0 = vpop.xlane.xlu0 %2609  ;;  %v2625_v40 = vmul.f32 %v6177_v31, %v7290_v58 }
 0xae8   : > { %v2592_v42 = vpop.xlane.xlu0 %2591 }
 0xae9   : > { %6180 = vrcp.f32 %v2592_v42 }
 0xaeb   : > { %v6179_v44 = vpop.eup %6178 }
 0xaec   : > { %v2624_v20 = vmul.f32 %v6179_v44, %v7295_v28  ;;  %v2613_v46 = vpop.xlane.xlu0 %2612 }
 0xaee   : > { %v2634_v45 = vpack.c.bf16 %v2625_v40, %v2624_v20 }
 0xaf0   : > { %5757 = vmatmul.mubr.msk.bf16.vlgmr.msra.gmra.mrb[88].mxu1 %vm1358_vm4, %v2634_v45  ;;  %v2719_v12 = vpop.permute.xlu0 %2718 }
 0xaf1   : > { %5771 = vmatpush3.bf16.msra.mxu0 %v2719_v12  ;;  %5760 = vmatprep.mubr.msk.bf16.mxu1 %vm6394_vm2, %v6393_v43 }
 0xaf2   : > { %5772 = vmatprep.subr.bf16.mxu0 %v6393_v43  ;;  %5787 = vmatpush3.bf16.msra.mxu1 %v2849_v41 }
 0xaf3   : > { %v6181_v52 = vpop.eup %6180  ;;  %5826 = vmatprep.subr.bf16.mxu1 %v6393_v43 }
 0xaf4   : > { %v2626_v28 = vmul.f32 %v6181_v52, %v7303_v53 }
 0xb0d   : > { %v2595_v51 = vpop.xlane.xlu1 %2594 }
 0xb0e   : > { %6182 = vrcp.f32 %v2595_v51 }
 0xb0f   : > { %6184 = vrcp.f32 %v2610_v0 }
 0xb10   : > { %6186 = vrcp.f32 %v2607_v25 }
 0xb11   : > { %v2598_v17 = vpop.xlane.xlu1 %2597 }
 0xb12   : > { %6188 = vrcp.f32 %v2598_v17 }
 0xb13   : > { %6190 = vrcp.f32 %v2613_v46 }
 0xb15   : > { %v2721_v58 = vpop.permute.xlu1 %2720 }
 0xb16   : > { %v2734_v2 = vsel %vm1493_vm6, %v2721_v58, 0 }
 0xb17   : > { %5773 = vmatpush3.bf16.msra.mxu0 %v2734_v2 }
 0xb18   : > { %v6183_v7 = vpop.eup %6182  ;;  %5808 = vmatprep.subr.bf16.mxu0 %v6393_v43 }
 0xb19   : > { %v6185_v35 = vpop.eup %6184  ;;  %v2627_v19 = vmul.f32 %v6183_v7, %v7318_v16  ;;  %v2939_v54 = vpop.permute.xlu1 %2938 }
 0xb1a   : > { %5775 = vmatmul.mubr.msk.bf16.vlgmr.msra.gmra.mrb[92].mxu0 %vm1358_vm4, %v2637_v21  ;;  %v6187_v39 = vpop.eup %6186  ;;  %v2632_v57 = vmul.f32 %v6185_v35, %v7299_v59  ;;  %v2954_v53 = vsel %vm1190_vm3, %v2939_v54, 0  ;;  %v2941_v59 = vpop.permute.xlu0 %2940 }
 0xb1b   : > { %v2635_v29 = vpack.c.bf16 %v2627_v19, %v2626_v28  ;;  %5778 = vmatprep.mubr.msk.bf16.mxu0 %vm6394_vm2, %v6393_v43  ;;  %v2631_v56 = vmul.f32 %v6187_v39, %v7285_v47 }
 0xb1c   : > { %v6189_v50 = vpop.eup %6188 }
 0xb1d   : > { %5761 = vmatmul.mubr.msk.bf16.gmra.mrb[92].mxu1 %vm1358_vm4, %v2635_v29  ;;  %v2628_v6 = vmul.f32 %v6189_v50, %v7323_v37  ;;  %v2638_v16 = vpack.c.bf16 %v2632_v57, %v2631_v56  ;;  %v6191_v18 = vpop.eup %6190  ;;  %v2957_v37 = vsel %vm1190_vm3, %v2941_v59, 0  ;;  %v2943_v3 = vpop.permute.xlu1 %2942 }
 0xb1e   : > { %5764 = vmatprep.mubr.msk.bf16.mxu1 %vm6394_vm2, %v6393_v43  ;;  %v2633_v47 = vmul.f32 %v6191_v18, %v7307_v63  ;;  %v2960_v63 = vsel %vm1190_vm3, %v2943_v3, 0  ;;  %v3025_v27 = vpop.permute.xlu0 %3024 }
 0xb1f   : > { %v2636_v62 = vpack.c.bf16 %v2628_v6, %v2628_v6  ;;  %v3040_v40 = vsel %vm1190_vm3, %v3025_v27, 0 }
 0xb20   : > { %5809 = vmatpush3.bf16.xpose.msra.mxu0 %v2954_v53  ;;  %v2639_v5 = vpack.c.bf16 %v2633_v47, %v2633_v47 }
 0xb21   : > { %5810 = vmatprep.subr.bf16.mxu0 %v6393_v43  ;;  %v2933_v61 = vpop.permute.xlu1 %2932 }
 0xb22   : > { %5779 = vmatmul.mubr.msk.bf16.gmra.mrb[96].mxu0 %vm1358_vm4, %v2638_v16  ;;  %v3027_v55 = vpop.permute.xlu0 %3026 }
 0xb23   : > { %5782 = vmatprep.mubr.msk.bf16.mxu0 %vm6394_vm2, %v6393_v43  ;;  %v3043_v20 = vsel %vm1190_vm3, %v3027_v55, 0 }
 0xb25   : > { %5765 = vmatmul.mubr.msk.bf16.gmra.mrb[96].mxu1 %vm1358_vm4, %v2636_v62  ;;  %v2935_v8 = vpop.permute.xlu1 %2934 }
 0xb26   : > { %5788 = vmatprep.mubr.msk.bf16.mxu1 %vm6394_vm2, %v6393_v43  ;;  %v3029_v11 = vpop.permute.xlu0 %3028 }
 0xb27   : > { %v3046_v46 = vsel %vm1190_vm3, %v3029_v11, 0 }
 0xb28   : > { %5811 = vmatpush3.bf16.xpose.msra.mxu0 %v2957_v37 }
 0xb29   : > { %5812 = vmatprep.subr.bf16.mxu0 %v6393_v43 }
 0xb2a   : > { %5783 = vmatmul.mubr.msk.bf16.gmra.mrb[100].mxu0 %vm1358_vm4, %v2639_v5  ;;  %v2937_v49 = vpop.permute.xlu0 %2936 }
 0xb2b   : > { %5814 = vmatprep.mubr.msk.bf16.mxu0 %vm6394_vm2, %v6393_v43 }
 0xb30   : > { %5813 = vmatpush3.bf16.xpose.msra.mxu0 %v2960_v63 }
 0xb31   : > { %5844 = vmatprep.subr.bf16.mxu0 %v6393_v43 }
 0xb37   : > { %5815 = vmatmul.mubr.msk.bf16.vlgmr.msra.gmra.mrb[104].mxu0 %vm1190_vm3, %v2933_v61 }
 0xb38   : > { %5818 = vmatprep.mubr.msk.bf16.mxu0 %vm6394_vm2, %v6393_v43 }
 0xb3f   : > { %5819 = vmatmul.mubr.msk.bf16.gmra.mrb[108].mxu0 %vm1190_vm3, %v2935_v8 }
 0xb40   : > { %5822 = vmatprep.mubr.msk.bf16.mxu0 %vm6394_vm2, %v6393_v43 }
 0xb47   : > { %5823 = vmatmul.mubr.msk.bf16.gmra.mrb[112].mxu0 %vm1190_vm3, %v2937_v49 }
 0xb48   : > { %5850 = vmatprep.mubr.msk.bf16.mxu0 %vm6394_vm2, %v6393_v43 }
 0xbc3   : > { %v2694_v21 = vpop.f32.mrb[88].mxu1 }
 0xbc4   : > { %v2802_v25 = vcombine.high %v2694_v21, %v2694_v21  ;;  %v5758_v33 = vpop.f32.mrb[89].mxu1 }
 0xbc5   : > { %v2697_v24 = vpop.f32.mrb[90].mxu1 }
 0xbc6   : > { %v2803_v38 = vcombine.high %v2697_v24, %v2697_v24  ;;  %v5759_v0 = vpop.f32.mrb[91].mxu1  ;;  %v2810_v42 = vcombine.low %v2694_v21, %v2802_v25 }
 0xbc8   : > { %v2811_v31 = vcombine.low %v2697_v24, %v2803_v38 }
 0xbca   : > { %v2828_v44 = vpack.c.bf16 %v2811_v31, %v2810_v42 }
 0xbcc   : > { %5789 = vmatmul.mubr.msk.bf16.vlgmr.msra.gmra.mrb[100].mxu1 %vm1190_vm3, %v2828_v44 }
 0xbcd   : > { %5827 = vmatpush3.bf16.xpose.msra.mxu1 %v3040_v40  ;;  %5792 = vmatprep.mubr.msk.bf16.mxu1 %vm6394_vm2, %v6393_v43 }
 0xbce   : > { %5828 = vmatprep.subr.bf16.mxu1 %v6393_v43 }
 0xbd5   : > { %5829 = vmatpush3.bf16.xpose.msra.mxu1 %v3043_v20 }
 0xbd6   : > { %5830 = vmatprep.subr.bf16.mxu1 %v6393_v43 }
 0xbdd   : > { %5831 = vmatpush3.bf16.xpose.msra.mxu1 %v3046_v46 }
 0xbde   : > { %5862 = vmatprep.subr.bf16.mxu1 %v6393_v43 }
 0xbed   : > { %v2770_v45 = vpop.f32.mrb[92].mxu0 }
 0xbee   : > { %v2806_v12 = vcombine.high %v2770_v45, %v2770_v45  ;;  %v5776_v51 = vpop.f32.mrb[93].mxu0 }
 0xbef   : > { %v2773_v17 = vpop.f32.mrb[94].mxu0 }
 0xbf0   : > { %v2815_v58 = vcombine.low %v2806_v12, %v2773_v17  ;;  %v2702_v52 = vpop.f32.mrb[92].mxu1  ;;  %v5777_v2 = vpop.f32.mrb[95].mxu0  ;;  %v2807_v29 = vcombine.high %v2773_v17, %v2773_v17 }
 0xbf1   : > { %v2804_v7 = vcombine.high %v2702_v52, %v2702_v52  ;;  %v5762_v35 = vpop.f32.mrb[93].mxu1 }
 0xbf2   : > { %v2705_v28 = vpop.f32.mrb[94].mxu1 }
 0xbf3   : > { %v2805_v19 = vcombine.high %v2705_v28, %v2705_v28  ;;  %v5763_v39 = vpop.f32.mrb[95].mxu1  ;;  %v2812_v50 = vcombine.low %v2702_v52, %v2804_v7  ;;  %v3019_v52 = vpop.permute.xlu1 %3018 }
 0xbf4   : > { %v3023_v39 = vpop.permute.xlu0 %3022 }
 0xbf5   : > { %v2813_v54 = vcombine.low %v2705_v28, %v2805_v19  ;;  %v2778_v57 = vpop.f32.mrb[96].mxu0 }
 0xbf6   : > { %v2808_v56 = vcombine.high %v2778_v57, %v2778_v57  ;;  %v2816_v53 = vcombine.low %v2807_v29, %v2778_v57  ;;  %v5780_v6 = vpop.f32.mrb[97].mxu0 }
 0xbf7   : > { %v2829_v16 = vpack.c.bf16 %v2813_v54, %v2812_v50  ;;  %v2781_v18 = vpop.f32.mrb[98].mxu0  ;;  %v3021_v19 = vpop.permute.xlu1 %3020 }
 0xbf8   : > { %v2817_v62 = vcombine.low %v2808_v56, %v2781_v18  ;;  %v2710_v59 = vpop.f32.mrb[96].mxu1  ;;  %v5781_v47 = vpop.f32.mrb[99].mxu0  ;;  %v2809_v55 = vcombine.high %v2781_v18, %v2781_v18 }
 0xbf9   : > { %v2814_v37 = vcombine.low %v2710_v59, %v2770_v45  ;;  %v5766_v5 = vpop.f32.mrb[97].mxu1  ;;  %5793 = vmatmul.mubr.msk.bf16.gmra.mrb[104].mxu1 %vm1190_vm3, %v2829_v16 }
 0xbfa   : > { %v2831_v3 = vpack.c.bf16 %v2817_v62, %v2816_v53  ;;  %v2713_v63 = vpop.f32.mrb[98].mxu1  ;;  %5796 = vmatprep.mubr.msk.bf16.mxu1 %vm6394_vm2, %v6393_v43 }
 0xbfb   : > { %v2830_v27 = vpack.c.bf16 %v2815_v58, %v2814_v37  ;;  %v5767_v61 = vpop.f32.mrb[99].mxu1 }
 0xbfd   : > { %v2786_v8 = vpop.f32.mrb[100].mxu0 }
 0xbfe   : > { %v2818_v11 = vcombine.low %v2809_v55, %v2786_v8  ;;  %v5784_v9 = vpop.f32.mrb[101].mxu0 }
 0xbff   : > { %v2789_v41 = vpop.f32.mrb[102].mxu0 }
 0xc00   : > { %v5785_v49 = vpop.f32.mrb[103].mxu0  ;;  %v2832_v31 = vpack.c.bf16 %v2818_v11, %v2818_v11 }
 0xc01   : > { %5797 = vmatmul.mubr.msk.bf16.gmra.mrb[108].mxu1 %vm1190_vm3, %v2830_v27 }
 0xc02   : > { %5800 = vmatprep.mubr.msk.bf16.mxu1 %vm6394_vm2, %v6393_v43 }
 0xc09   : > { %5801 = vmatmul.mubr.msk.bf16.gmra.mrb[112].mxu1 %vm1190_vm3, %v2831_v3 }
 0xc0a   : > { %v2996_v21 = vpop.f32.mrb[104].mxu0  ;;  %5804 = vmatprep.mubr.msk.bf16.mxu1 %vm6394_vm2, %v6393_v43 }
 0xc0b   : > { %v7411_v25 = vmul.f32 0.35355338, %v2996_v21  ;;  %v5816_v33 = vpop.f32.mrb[105].mxu0 }
 0xc0c   : > { %v2999_v24 = vpop.f32.mrb[106].mxu0 }
 0xc0d   : > { %v7413_v38 = vmul.f32 0.35355338, %v2999_v24  ;;  %v5817_v0 = vpop.f32.mrb[107].mxu0  ;;  %v3114_v42 = vsel %vm1358_vm4, %v7411_v25, -inf }
 0xc0e   : > { %3115 = vmax.xlane.f32.xlu1 %v3114_v42 }
 0xc0f   : > { %v3117_v44 = vsel %vm1358_vm4, %v7413_v38, -inf }
 0xc10   : > { %3118 = vmax.xlane.f32.xlu0 %v3117_v44 }
 0xc11   : > { %5805 = vmatmul.mubr.msk.bf16.gmra.mrb[116].mxu1 %vm1190_vm3, %v2832_v31 }
 0xc12   : > { %v3004_v40 = vpop.f32.mrb[108].mxu0  ;;  %5832 = vmatprep.mubr.msk.bf16.mxu1 %vm6394_vm2, %v6393_v43 }
 0xc13   : > { %v7422_v20 = vmul.f32 0.35355338, %v3004_v40  ;;  %v5820_v46 = vpop.f32.mrb[109].mxu0 }
 0xc14   : > { %v3007_v45 = vpop.f32.mrb[110].mxu0 }
 0xc15   : > { %v3107_v12 = vmul.f32 0.35355338, %v3007_v45  ;;  %v5821_v51 = vpop.f32.mrb[111].mxu0  ;;  %v3120_v17 = vsel %vm1358_vm4, %v7422_v20, -inf }
 0xc16   : > { %3121 = vmax.xlane.f32.xlu0 %v3120_v17 }
 0xc17   : > { %v3123_v58 = vsel %vm1358_vm4, %v3107_v12, -inf }
 0xc18   : > { %3124 = vmax.xlane.f32.xlu1 %v3123_v58 }
 0xc19   : > { %5833 = vmatmul.mubr.msk.bf16.vlgmr.msra.gmra.mrb[120].mxu1 %vm1190_vm3, %v3019_v52 }
 0xc1a   : > { %v3012_v2 = vpop.f32.mrb[112].mxu0  ;;  %5836 = vmatprep.mubr.msk.bf16.mxu1 %vm6394_vm2, %v6393_v43 }
 0xc1b   : > { %v5824_v7 = vpop.f32.mrb[113].mxu0  ;;  %v3108_v17 = vmul.f32 0.35355338, %v3012_v2 }
 0xc1c   : > { %v3015_v35 = vpop.f32.mrb[114].mxu0 }
 0xc1d   : > { %v5825_v28 = vpop.f32.mrb[115].mxu0 }
 0xc21   : > { %5837 = vmatmul.mubr.msk.bf16.gmra.mrb[124].mxu1 %vm1190_vm3, %v3021_v19 }
 0xc22   : > { %5840 = vmatprep.mubr.msk.bf16.mxu1 %vm6394_vm2, %v6393_v43 }
 0xc29   : > { %5841 = vmatmul.mubr.msk.bf16.gmra.mrb[128].mxu1 %vm1190_vm3, %v3023_v39 }
 0xc2a   : > { %5868 = vmatprep.mubr.msk.bf16.mxu1 %vm6394_vm2, %v6393_v43 }
 0xc9b   : > { %v3116_v11 = vpop.xlane.xlu1 %3115 }
 0xc9d   : > { %v3119_v9 = vpop.xlane.xlu0 %3118 }
 0xc9f   : > { %v2885_v29 = vpop.f32.mrb[100].mxu1 }
 0xca0   : > { %v7437_v50 = vadd.f32 %v2885_v29, %v7226_v30  ;;  %v5790_v54 = vpop.f32.mrb[101].mxu1 }
 0xca1   : > { %v2888_v57 = vpop.f32.mrb[102].mxu1 }
 0xca2   : > { %v7440_v56 = vadd.f32 %v2888_v57, %v7228_v4  ;;  %v5791_v53 = vpop.f32.mrb[103].mxu1 }
 0xca3   : > { %v3122_v0 = vpop.xlane.xlu0 %3121 }
 0xca4   : > { %v3146_v44 = vsub.f32 %v7422_v20, %v3122_v0  ;;  %v3126_v20 = vsel %vm1371_vm5, %v3108_v17, -inf }
 0xca5   : > { %v3125_v33 = vpop.xlane.xlu1 %3124 }
 0xca6   : > { %v3147_v31 = vsub.f32 %v3107_v12, %v3125_v33 }
 0xccc   : > { %v2893_v6 = vpop.f32.mrb[104].mxu1 }
 0xccd   : > { %v7443_v16 = vadd.f32 %v2893_v6, %v7230_v14  ;;  %v5794_v18 = vpop.f32.mrb[105].mxu1 }
 0xcce   : > { %v2896_v62 = vpop.f32.mrb[106].mxu1 }
 0xccf   : > { %v7446_v59 = vadd.f32 %v2896_v62, %v7232_v23  ;;  %v5795_v47 = vpop.f32.mrb[107].mxu1 }
 0xcd4   : > { %v2901_v37 = vpop.f32.mrb[108].mxu1 }
 0xcd5   : > { %v7449_v30 = vadd.f32 %v2901_v37, %v7234_v26  ;;  %v5798_v5 = vpop.f32.mrb[109].mxu1 }
 0xcd6   : > { %v2904_v3 = vpop.f32.mrb[110].mxu1 }
 0xcd7   : > { %v7452_v4 = vadd.f32 %v2904_v3, %v7236_v1  ;;  %v5799_v63 = vpop.f32.mrb[111].mxu1  ;;  %v3145_v1 = vsub.f32 %v7413_v38, %v3119_v9 }
 0xcd9   : > { %v3156_v42 = vmul.f32 1.442695, %v3145_v1 }
 0xcdb   : > { %6192 = vpow2.f32 %v3156_v42 }
 0xcdc   : > { %v2909_v27 = vpop.f32.mrb[112].mxu1 }
 0xcdd   : > { %v7455_v14 = vadd.f32 %v2909_v27, %v7238_v15  ;;  %v5802_v61 = vpop.f32.mrb[113].mxu1  ;;  %v3144_v15 = vsub.f32 %v7411_v25, %v3116_v11  ;;  %v3158_v25 = vmul.f32 1.442695, %v3146_v44 }
 0xcde   : > { %v2912_v55 = vpop.f32.mrb[114].mxu1 }
 0xcdf   : > { %v7458_v23 = vadd.f32 %v2912_v55, %v7240_v10  ;;  %v5803_v8 = vpop.f32.mrb[115].mxu1  ;;  %v3154_v10 = vmul.f32 1.442695, %v3144_v15 }
 0xce1   : > { %6194 = vpow2.f32 %v3154_v10 }
 0xce4   : > { %v2917_v26 = vpop.f32.mrb[116].mxu1 }
 0xce5   : > { %v7461_v41 = vadd.f32 %v2917_v26, %v7242_v48  ;;  %v5806_v49 = vpop.f32.mrb[117].mxu1  ;;  %v3160_v48 = vmul.f32 1.442695, %v3147_v31  ;;  %v7476_v54 = vpop.eup %6192 }
 0xce6   : > { %v2920_v21 = vpop.f32.mrb[118].mxu1  ;;  %v3177_v6 = vsel %vm1358_vm4, %v7476_v54, 0.0 }
 0xce7   : > { %v5807_v24 = vpop.f32.mrb[119].mxu1  ;;  %6196 = vpow2.f32 %v3160_v48 }
 0xce8   : > { %6198 = vpow2.f32 %v3158_v25 }
 0xceb   : > { %v7479_v53 = vpop.eup %6194 }
 0xcec   : > { %v3082_v40 = vpop.f32.mrb[120].mxu1  ;;  %v3174_v37 = vsel %vm1358_vm4, %v7479_v53, 0.0 }
 0xced   : > { %v3109_v46 = vmul.f32 0.35355338, %v3082_v40  ;;  %v5834_v45 = vpop.f32.mrb[121].mxu1 }
 0xcee   : > { %v3085_v51 = vpop.f32.mrb[122].mxu1 }
 0xcef   : > { %v7466_v58 = vmul.f32 0.35355338, %v3085_v51  ;;  %v5835_v38 = vpop.f32.mrb[123].mxu1  ;;  %v3129_v52 = vsel %vm1358_vm4, %v3109_v46, -inf }
 0xcf0   : > { %3130 = vmax.xlane.f32.xlu0 %v3129_v52 }
 0xcf1   : > { %v3132_v12 = vsel %vm1358_vm4, %v7466_v58, -inf  ;;  %v7483_v18 = vpop.eup %6196 }
 0xcf2   : > { %3133 = vmax.xlane.f32.xlu1 %v3132_v12  ;;  %v7487_v5 = vpop.eup %6198  ;;  %v3183_v27 = vsel %vm1358_vm4, %v7483_v18, 0.0 }
 0xcf3   : > { %v3180_v61 = vsel %vm1358_vm4, %v7487_v5, 0.0 }
 0xcf4   : > { %v3090_v7 = vpop.f32.mrb[124].mxu1  ;;  %3127 = vmax.xlane.f32.xlu0 %v3126_v20 }
 0xcf5   : > { %v7472_v35 = vmul.f32 0.35355338, %v3090_v7  ;;  %v5838_v2 = vpop.f32.mrb[125].mxu1 }
 0xcf6   : > { %v3093_v28 = vpop.f32.mrb[126].mxu1 }
 0xcf7   : > { %v3112_v19 = vmul.f32 0.35355338, %v3093_v28  ;;  %v5839_v39 = vpop.f32.mrb[127].mxu1  ;;  %v3135_v29 = vsel %vm1358_vm4, %v7472_v35, -inf }
 0xcf8   : > { %3136 = vmax.xlane.f32.xlu1 %v3135_v29 }
 0xcf9   : > { %v3138_v57 = vsel %vm1358_vm4, %v3112_v19, -inf }
 0xcfa   : > { %3139 = vmax.xlane.f32.xlu0 %v3138_v57 }
 0xcfc   : > { %v3098_v62 = vpop.f32.mrb[128].mxu1  ;;  %3178 = vadd.xlane.f32.xlu1 %v3177_v6 }
 0xcfd   : > { %v5842_v47 = vpop.f32.mrb[129].mxu1  ;;  %v3113_v0 = vmul.f32 0.35355338, %v3098_v62 }
 0xcfe   : > { %3175 = vadd.xlane.f32.xlu0 %v3174_v37  ;;  %v3101_v3 = vpop.f32.mrb[130].mxu1 }
 0xcff   : > { %v5843_v63 = vpop.f32.mrb[131].mxu1  ;;  %v3141_v10 = vsel %vm1371_vm5, %v3113_v0, -inf }
 0xd00   : > { %3184 = vadd.xlane.f32.xlu1 %v3183_v27 }
 0xd02   : > { %3181 = vadd.xlane.f32.xlu0 %v3180_v61 }
 0xd18   : > { %3230 = vrot.lane.b32.xlu0 %v6744_v60, %s6405_s25 }
 0xd1c   : > { %3234 = vrot.lane.b32.xlu0 %v6752_v22, %s6405_s25 }
 0xd20   : > { %3306 = vrot.lane.b32.xlu0 %v6756_v32, %s6405_s25 }
 0xd7d   : > { %v3131_v55 = vpop.xlane.xlu0 %3130 }
 0xd7e   : > { %v3149_v8 = vsub.f32 %v3109_v46, %v3131_v55 }
 0xd7f   : > { %v3134_v48 = vpop.xlane.xlu1 %3133 }
 0xd80   : > { %v3164_v11 = vmul.f32 1.442695, %v3149_v8  ;;  %v3150_v51 = vsub.f32 %v7466_v58, %v3134_v48 }
 0xd81   : > { %v3128_v9 = vpop.xlane.xlu0 %3127 }
 0xd82   : > { %6200 = vpow2.f32 %v3164_v11  ;;  %v3148_v26 = vsub.f32 %v3108_v17, %v3128_v9  ;;  %v3166_v38 = vmul.f32 1.442695, %v3150_v51 }
 0xd84   : > { %v3162_v49 = vmul.f32 1.442695, %v3148_v26 }
 0xd85   : > { %v3137_v17 = vpop.xlane.xlu1 %3136 }
 0xd86   : > { %6202 = vpow2.f32 %v3162_v49  ;;  %v3151_v52 = vsub.f32 %v7472_v35, %v3137_v17 }
 0xd87   : > { %v3140_v1 = vpop.xlane.xlu0 %3139 }
 0xd88   : > { %v3152_v21 = vsub.f32 %v3112_v19, %v3140_v1  ;;  %v3168_v25 = vmul.f32 1.442695, %v3151_v52 }
 0xd8a   : > { %v3170_v33 = vmul.f32 1.442695, %v3152_v21 }
 0xd8b   : > { %v3176_v24 = vpop.xlane.xlu0 %3175 }
 0xd8c   : > { %v7499_v15 = vpop.eup %6200  ;;  %6204 = vpow2.f32 %v3170_v33 }
 0xd8d   : > { %v3189_v60 = vsel %vm1358_vm4, %v7499_v15, 0.0  ;;  %6206 = vpow2.f32 %v3166_v38 }
 0xd8e   : > { %3190 = vadd.xlane.f32.xlu0 %v3189_v60  ;;  %6208 = vpow2.f32 %v3168_v25 }
 0xd8f   : > { %v3182_v22 = vpop.xlane.xlu0 %3181  ;;  %6210 = vrcp.f32 %v3176_v24 }
 0xd90   : > { %v7503_v32 = vpop.eup %6202 }
 0xd91   : > { %v3186_v42 = vsel %vm1371_vm5, %v7503_v32, 0.0 }
 0xd92   : > { %3187 = vadd.xlane.f32.xlu1 %v3186_v42 }
 0xd93   : > { %v3231_v31 = vpop.permute.xlu0 %3230 }
 0xd94   : > { %5845 = vmatpush3.bf16.msra.mxu0 %v3231_v31 }
 0xd95   : > { %5846 = vmatprep.subr.bf16.mxu0 %v6393_v43 }
 0xd96   : > { %v7509_v44 = vpop.eup %6204  ;;  %3142 = vmax.xlane.f32.xlu1 %v3141_v10 }
 0xd97   : > { %v3235_v40 = vpop.permute.xlu0 %3234  ;;  %v3198_v46 = vsel %vm1358_vm4, %v7509_v44, 0.0  ;;  %v7520_v12 = vpop.eup %6206 }
 0xd98   : > { %3199 = vadd.xlane.f32.xlu0 %v3198_v46  ;;  %v3192_v20 = vsel %vm1358_vm4, %v7520_v12, 0.0  ;;  %v7524_v7 = vpop.eup %6208  ;;  %v3248_v47 = vsel %vm1493_vm6, %v3235_v40, 0 }
 0xd99   : > { %v6211_v19 = vpop.eup %6210 }
 0xd9a   : > { %v3214_v6 = vmul.f32 %v6211_v19, %v7479_v53 }
 0xd9b   : > { %v3307_v45 = vpop.permute.xlu0 %3306 }
 0xd9c   : > { %5863 = vmatpush3.bf16.msra.mxu1 %v3307_v45 }
 0xd9d   : > { %5864 = vmatprep.subr.bf16.mxu1 %v6393_v43 }
 0xda7   : > { %3232 = vrot.lane.b32.xlu1 %v6748_v13, %s6405_s25  ;;  %v3195_v13 = vsel %vm1358_vm4, %v7524_v7, 0.0 }
 0xdae   : > { %3310 = vrot.lane.b32.xlu0 %v6764_v36, %s6405_s25  ;;  %v3179_v36 = vpop.xlane.xlu1 %3178 }
 0xdaf   : > { %6212 = vrcp.f32 %v3179_v36 }
 0xdb0   : > { %6214 = vrcp.f32 %v3182_v22 }
 0xdb2   : > { %v3185_v58 = vpop.xlane.xlu1 %3184 }
 0xdb3   : > { %6216 = vrcp.f32 %v3185_v58 }
 0xdb9   : > { %v6213_v57 = vpop.eup %6212 }
 0xdba   : > { %v3215_v62 = vmul.f32 %v6213_v57, %v7476_v54  ;;  %v6215_v3 = vpop.eup %6214 }
 0xdbb   : > { %v3216_v53 = vmul.f32 %v6215_v3, %v7487_v5 }
 0xdbc   : > { %v3224_v37 = vpack.c.bf16 %v3215_v62, %v3214_v6 }
 0xdbd   : > { %v6217_v63 = vpop.eup %6216 }
 0xdbe   : > { %v3217_v61 = vmul.f32 %v6217_v63, %v7483_v18  ;;  %v1034_v18 = vld [vmem:[%s6560_s18 + $0xc] sm:$0xf] }
 0xdbf   : > { %v3439_v5 = vsel %vm2176_vm7, %v1034_v18, 0  ;;  %vm4560_vm7 = vcmask (!%p5325_p6), 326912  }
 0xdc0   : > { %v3225_v55 = vpack.c.bf16 %v3217_v61, %v3216_v53 }
 0xdcb   : > { %3193 = vadd.xlane.f32.xlu1 %v3192_v20 }
 0xdcf   : > { %3196 = vadd.xlane.f32.xlu1 %v3195_v13 }
 0xe1b   : > { %v3191_v49 = vpop.xlane.xlu0 %3190 }
 0xe1f   : > { %v3188_v35 = vpop.xlane.xlu1 %3187 }
 0xe23   : > { %v3143_v2 = vpop.xlane.xlu1 %3142 }
 0xe24   : > { %v3153_v28 = vsub.f32 %v3113_v0, %v3143_v2 }
 0xe25   : > { %v3200_v21 = vpop.xlane.xlu0 %3199 }
 0xe26   : > { %v3172_v39 = vmul.f32 1.442695, %v3153_v28 }
 0xe27   : > { %v3233_v29 = vpop.permute.xlu1 %3232 }
 0xe28   : > { %6218 = vpow2.f32 %v3172_v39  ;;  %5847 = vmatpush3.bf16.msra.mxu0 %v3233_v29 }
 0xe29   : > { %5848 = vmatprep.subr.bf16.mxu0 %v6393_v43  ;;  %6220 = vrcp.f32 %v3188_v35 }
 0xe2c   : > { %5849 = vmatpush3.bf16.msra.mxu0 %v3248_v47 }
 0xe2d   : > { %5880 = vmatprep.subr.bf16.mxu0 %v6393_v43 }
 0xe2f   : > { %5851 = vmatmul.mubr.msk.bf16.vlgmr.msra.gmra.mrb[116].mxu0 %vm1358_vm4, %v3224_v37 }
 0xe30   : > { %5854 = vmatprep.mubr.msk.bf16.mxu0 %vm6394_vm2, %v6393_v43  ;;  %5881 = vmatpush3.bf16.msra.mxu0 %v3439_v5 }
 0xe31   : > { %5926 = vmatprep.subr.bf16.mxu0 %v6393_v43 }
 0xe32   : > { %v6219_v27 = vpop.eup %6218 }
 0xe33   : > { %v3201_v54 = vsel %vm1371_vm5, %v6219_v27, 0.0  ;;  %v6221_v8 = vpop.eup %6220  ;;  %vm4546_vm5 = vcmask (!%p5325_p6), 195712  }
 0xe34   : > { %3202 = vadd.xlane.f32.xlu1 %v3201_v54  ;;  %v3218_v11 = vmul.f32 %v6221_v8, %v7503_v32  ;;  %v3311_v32 = vpop.permute.xlu0 %3310 }
 0xe35   : > { %v3324_v42 = vsel %vm1493_vm6, %v3311_v32, 0 }
 0xe36   : > { %v3226_v9 = vpack.c.bf16 %v3218_v11, %v3218_v11 }
 0xe37   : > { %5855 = vmatmul.mubr.msk.bf16.gmra.mrb[120].mxu0 %vm1358_vm4, %v3225_v55 }
 0xe38   : > { %5858 = vmatprep.mubr.msk.bf16.mxu0 %vm6394_vm2, %v6393_v43 }
 0xe3f   : > { %5859 = vmatmul.mubr.msk.bf16.gmra.mrb[124].mxu0 %vm1358_vm4, %v3226_v9 }
 0xe40   : > { %5882 = vmatprep.mubr.msk.bf16.mxu0 %vm6394_vm2, %v6393_v43 }
 0xe45   : > { %3308 = vrot.lane.b32.xlu1 %v6758_v34, %s6405_s25 }
 0xe58   : > { %v3194_v26 = vpop.xlane.xlu1 %3193 }
 0xe59   : > { %6222 = vrcp.f32 %v3194_v26 }
 0xe5a   : > { %6224 = vrcp.f32 %v3191_v49 }
 0xe5c   : > { %v3197_v1 = vpop.xlane.xlu1 %3196 }
 0xe5d   : > { %6226 = vrcp.f32 %v3197_v1 }
 0xe5e   : > { %6228 = vrcp.f32 %v3200_v21 }
 0xe63   : > { %v6223_v24 = vpop.eup %6222 }
 0xe64   : > { %v6225_v22 = vpop.eup %6224  ;;  %v3220_v34 = vmul.f32 %v6223_v24, %v7520_v12 }
 0xe65   : > { %v3219_v0 = vmul.f32 %v6225_v22, %v7499_v15 }
 0xe67   : > { %v3227_v31 = vpack.c.bf16 %v3220_v34, %v3219_v0  ;;  %v6227_v10 = vpop.eup %6226 }
 0xe68   : > { %v6229_v40 = vpop.eup %6228  ;;  %v3221_v46 = vmul.f32 %v6227_v10, %v7524_v7  ;;  %v7587_v10 = vld [vmem:[%s8295_s0] ss:$0 sm:$0xff] }
 0xe69   : > { %v3222_v45 = vmul.f32 %v6229_v40, %v7509_v44 }
 0xe6b   : > { %v3228_v48 = vpack.c.bf16 %v3222_v45, %v3221_v46 }
 0xec1   : > { %v3203_v33 = vpop.xlane.xlu1 %3202 }
 0xec2   : > { %6230 = vrcp.f32 %v3203_v33 }
 0xec5   : > { %v3309_v60 = vpop.permute.xlu1 %3308 }
 0xec6   : > { %5865 = vmatpush3.bf16.msra.mxu1 %v3309_v60 }
 0xec7   : > { %5866 = vmatprep.subr.bf16.mxu1 %v6393_v43 }
 0xeca   : > { %5867 = vmatpush3.bf16.msra.mxu1 %v3324_v42 }
 0xecb   : > { %5902 = vmatprep.subr.bf16.mxu1 %v6393_v43 }
 0xecc   : > { %v6231_v15 = vpop.eup %6230 }
 0xecd   : > { %5869 = vmatmul.mubr.msk.bf16.vlgmr.msra.gmra.mrb[132].mxu1 %vm1358_vm4, %v3227_v31  ;;  %v3223_v51 = vmul.f32 %v6231_v15, %v6219_v27 }
 0xece   : > { %5872 = vmatprep.mubr.msk.bf16.mxu1 %vm6394_vm2, %v6393_v43 }
 0xecf   : > { %v3229_v17 = vpack.c.bf16 %v3223_v51, %v3223_v51 }
 0xed5   : > { %5873 = vmatmul.mubr.msk.bf16.gmra.mrb[136].mxu1 %vm1358_vm4, %v3228_v48 }
 0xed6   : > { %5876 = vmatprep.mubr.msk.bf16.mxu1 %vm6394_vm2, %v6393_v43 }
 0xedd   : > { %5877 = vmatmul.mubr.msk.bf16.gmra.mrb[140].mxu1 %vm1358_vm4, %v3229_v17 }
 0xede   : > { %5906 = vmatprep.mubr.msk.bf16.mxu1 %vm6394_vm2, %v6393_v43 }
 0xf02   : > { %v3284_v38 = vpop.f32.mrb[116].mxu0 }
 0xf03   : > { %v3392_v52 = vcombine.high %v3284_v38, %v3284_v38  ;;  %v5852_v25 = vpop.f32.mrb[117].mxu0 }
 0xf04   : > { %v3287_v12 = vpop.f32.mrb[118].mxu0 }
 0xf05   : > { %v3393_v20 = vcombine.high %v3287_v12, %v3287_v12  ;;  %v5853_v44 = vpop.f32.mrb[119].mxu0  ;;  %v3400_v7 = vcombine.low %v3284_v38, %v3392_v52  ;;  %v6286_v52 = vld [vmem:[#allocation2] sm:$0xff] }
 0xf07   : > { %v3401_v13 = vcombine.low %v3287_v12, %v3393_v20  ;;  %v6287_v20 = vld [vmem:[#allocation2 + $0x8] sm:$0xff] }
 0xf09   : > { %v3418_v36 = vpack.c.bf16 %v3401_v13, %v3400_v7 }
 0xf0a   : > { %v3292_v58 = vpop.f32.mrb[120].mxu0 }
 0xf0b   : > { %v3394_v35 = vcombine.high %v3292_v58, %v3292_v58  ;;  %v5856_v2 = vpop.f32.mrb[121].mxu0  ;;  %5883 = vmatmul.mubr.msk.bf16.vlgmr.msra.gmra.mrb[128].mxu0 %vm1190_vm3, %v3418_v36 }
 0xf0c   : > { %v3295_v28 = vpop.f32.mrb[122].mxu0  ;;  %5886 = vmatprep.mubr.msk.bf16.mxu0 %vm6394_vm2, %v6393_v43 }
 0xf0d   : > { %v3395_v19 = vcombine.high %v3295_v28, %v3295_v28  ;;  %v5857_v39 = vpop.f32.mrb[123].mxu0  ;;  %v3402_v29 = vcombine.low %v3292_v58, %v3394_v35 }
 0xf0f   : > { %v3403_v57 = vcombine.low %v3295_v28, %v3395_v19  ;;  %v6288_v19 = vld [vmem:[#allocation2 + $0x10] sm:$0xff] }
 0xf11   : > { %v3419_v6 = vpack.c.bf16 %v3403_v57, %v3402_v29  ;;  %v6289_v57 = vld [vmem:[#allocation2 + $0x18] sm:$0xff] }
 0xf12   : > { %v3300_v62 = vpop.f32.mrb[124].mxu0 }
 0xf13   : > { %v5860_v47 = vpop.f32.mrb[125].mxu0  ;;  %5887 = vmatmul.mubr.msk.bf16.gmra.mrb[132].mxu0 %vm1190_vm3, %v3419_v6 }
 0xf14   : > { %v3303_v37 = vpop.f32.mrb[126].mxu0  ;;  %5890 = vmatprep.mubr.msk.bf16.mxu0 %vm6394_vm2, %v6393_v43 }
 0xf15   : > { %v5861_v3 = vpop.f32.mrb[127].mxu0 }
 0xfa0   : > { %v3360_v63 = vpop.f32.mrb[132].mxu1 }
 0xfa1   : > { %v3396_v53 = vcombine.high %v3360_v63, %v3360_v63  ;;  %v3404_v27 = vcombine.low %v3300_v62, %v3360_v63  ;;  %v5870_v54 = vpop.f32.mrb[133].mxu1 }
 0xfa2   : > { %v3363_v61 = vpop.f32.mrb[134].mxu1  ;;  %v6290_v54 = vld [vmem:[#allocation2 + $0x20] sm:$0xff] }
 0xfa3   : > { %v3405_v55 = vcombine.low %v3396_v53, %v3363_v61  ;;  %v5871_v8 = vpop.f32.mrb[135].mxu1  ;;  %v3397_v9 = vcombine.high %v3363_v61, %v3363_v61 }
 0xfa5   : > { %v3420_v11 = vpack.c.bf16 %v3405_v55, %v3404_v27 }
 0xfa7   : > { %5891 = vmatmul.mubr.msk.bf16.gmra.mrb[136].mxu0 %vm1190_vm3, %v3420_v11 }
 0xfa8   : > { %v3368_v18 = vpop.f32.mrb[136].mxu1  ;;  %5894 = vmatprep.mubr.msk.bf16.mxu0 %vm6394_vm2, %v6393_v43 }
 0xfa9   : > { %v3398_v5 = vcombine.high %v3368_v18, %v3368_v18  ;;  %v3406_v26 = vcombine.low %v3397_v9, %v3368_v18  ;;  %v5874_v49 = vpop.f32.mrb[137].mxu1  ;;  %v6291_v9 = vld [vmem:[#allocation2 + $0x28] sm:$0xff] }
 0xfaa   : > { %v3371_v1 = vpop.f32.mrb[138].mxu1 }
 0xfab   : > { %v3407_v21 = vcombine.low %v3398_v5, %v3371_v1  ;;  %v5875_v33 = vpop.f32.mrb[139].mxu1  ;;  %v3399_v60 = vcombine.high %v3371_v1, %v3371_v1 }
 0xfad   : > { %v3421_v24 = vpack.c.bf16 %v3407_v21, %v3406_v26 }
 0xfaf   : > { %5895 = vmatmul.mubr.msk.bf16.gmra.mrb[140].mxu0 %vm1190_vm3, %v3421_v24 }
 0xfb0   : > { %v3376_v22 = vpop.f32.mrb[140].mxu1  ;;  %5898 = vmatprep.mubr.msk.bf16.mxu0 %vm6394_vm2, %v6393_v43 }
 0xfb1   : > { %v3408_v32 = vcombine.low %v3399_v60, %v3376_v22  ;;  %v5878_v34 = vpop.f32.mrb[141].mxu1 }
 0xfb2   : > { %v3379_v0 = vpop.f32.mrb[142].mxu1 }
 0xfb3   : > { %v5879_v42 = vpop.f32.mrb[143].mxu1  ;;  %v3422_v31 = vpack.c.bf16 %v3408_v32, %v3408_v32  ;;  %v6292_v0 = vld [vmem:[#allocation2 + $0x30] sm:$0xff] }
 0xfb7   : > { %5899 = vmatmul.mubr.msk.bf16.gmra.mrb[144].mxu0 %vm1190_vm3, %v3422_v31  ;;  %vm4539_vm3 = vcmask (!%p5325_p6), 130112  }
 0xfb8   : > { %5942 = vmatprep.mubr.msk.bf16.mxu0 %vm6394_vm2, %v6393_v43 }
 0xfde   : > { %v3475_v40 = vpop.f32.mrb[128].mxu0 }
 0xfdf   : > { %v3513_v46 = vadd.f32 %v3475_v40, %v7437_v50  ;;  %v5884_v45 = vpop.f32.mrb[129].mxu0  ;;  %v6293_v40 = vld [vmem:[#allocation2 + $0x38] sm:$0xff] }
 0xfe0   : > { %v3478_v48 = vpop.f32.mrb[130].mxu0 }
 0xfe1   : > { %v3528_v15 = vadd.f32 %v7587_v10, %v3513_v46  ;;  %v3514_v51 = vadd.f32 %v3478_v48, %v7440_v56  ;;  %v5885_v17 = vpop.f32.mrb[131].mxu0 }
 0xfe3   : > { %v3529_v38 = vadd.f32 %v7587_v10, %v3514_v51  ;;  %v3537_v25 = vadd.f32 %v6286_v52, %v3528_v15 }
 0xfe5   : > { %v3548_v12 = vsel %vm878_vm1, %v3537_v25, 0.0  ;;  %v7594_v44 = vadd.f32 %v6287_v20, %v3529_v38 }
 0xfe6   : > { %3549 = vadd.xlane.f32.xlu1 %v3548_v12  ;;  %v3483_v7 = vpop.f32.mrb[132].mxu0 }
 0xfe7   : > { %v3515_v50 = vadd.f32 %v3483_v7, %v7443_v16  ;;  %v5888_v13 = vpop.f32.mrb[133].mxu0  ;;  %v3551_v36 = vsel %vm878_vm1, %v7594_v44, 0.0 }
 0xfe8   : > { %3552 = vadd.xlane.f32.xlu0 %v3551_v36  ;;  %v3486_v56 = vpop.f32.mrb[134].mxu0  ;;  %v6294_v13 = vld [vmem:[#allocation2 + $0x40] sm:$0xff] }
 0xfe9   : > { %v3530_v58 = vadd.f32 %v7587_v10, %v3515_v50  ;;  %v3516_v35 = vadd.f32 %v3486_v56, %v7446_v59  ;;  %v5889_v2 = vpop.f32.mrb[135].mxu0 }
 0xfeb   : > { %v3531_v28 = vadd.f32 %v7587_v10, %v3516_v35  ;;  %v3539_v39 = vadd.f32 %v6288_v19, %v3530_v58  ;;  %v6044_v19 = vld [vmem:[%s6573_s22] sm:$0xff]  }
 0xfec   : > { %5903 = vmatpush3.bf16.msra.mxu1 %v6044_v19 }
 0xfed   : > { %v3554_v29 = vsel %vm878_vm1, %v3539_v39, 0.0  ;;  %v3540_v6 = vadd.f32 %v6289_v57, %v3531_v28  ;;  %5904 = vmatprep.subr.bf16.mxu1 %v6393_v43 }
 0xfee   : > { %3555 = vadd.xlane.f32.xlu0 %v3554_v29 }
 0xfef   : > { %v3557_v16 = vsel %vm878_vm1, %v3540_v6, 0.0 }
 0xff0   : > { %3558 = vadd.xlane.f32.xlu1 %v3557_v16 }
0x1073   : > { %v3550_v55 = vpop.xlane.xlu1 %3549 }
0x1074   : > { %v3575_v5 = vmul.f32 0.03125, %v3550_v55 }
0x1075   : > { %v3553_v8 = vpop.xlane.xlu0 %3552 }
0x1076   : > { %v7616_v22 = vsub.f32 %v3537_v25, %v3575_v5  ;;  %v3576_v31 = vmul.f32 0.03125, %v3553_v8 }
0x1078   : > { %v3593_v38 = vmul.f32 %v7616_v22, %v7616_v22  ;;  %v7627_v25 = vsub.f32 %v7594_v44, %v3576_v31 }
0x107a   : > { %v3491_v62 = vpop.f32.mrb[136].mxu0  ;;  %v3602_v50 = vsel %vm878_vm1, %v3593_v38, 0.0  ;;  %v3594_v44 = vmul.f32 %v7627_v25, %v7627_v25 }
0x107b   : > { %v3517_v47 = vadd.f32 %v3491_v62, %v7449_v30  ;;  %v5892_v37 = vpop.f32.mrb[137].mxu0  ;;  %v3556_v1 = vpop.xlane.xlu0 %3555 }
0x107c   : > { %v3494_v3 = vpop.f32.mrb[138].mxu0  ;;  %v3577_v32 = vmul.f32 0.03125, %v3556_v1  ;;  %v3605_v35 = vsel %vm878_vm1, %v3594_v44, 0.0 }
0x107d   : > { %v3532_v59 = vadd.f32 %v7587_v10, %v3517_v47  ;;  %v3518_v63 = vadd.f32 %v3494_v3, %v7452_v4  ;;  %v5893_v53 = vpop.f32.mrb[139].mxu0  ;;  %v3559_v45 = vpop.xlane.xlu1 %3558 }
0x107e   : > { %v7620_v15 = vsub.f32 %v3539_v39, %v3577_v32  ;;  %v3578_v12 = vmul.f32 0.03125, %v3559_v45  ;;  %v6045_v39 = vld [vmem:[%s6573_s22 + $0x8] sm:$0xff]   ;;  %s8299_s22 = sld [smem:[#allocation16_spill]] (!%p5325_p6) }
0x107f   : > { %v3533_v27 = vadd.f32 %v7587_v10, %v3518_v63  ;;  %v7608_v61 = vadd.f32 %v6290_v54, %v3532_v59  ;;  %5905 = vmatpush3.bf16.msra.mxu1 %v6045_v39 }
0x1080   : > { %v3595_v36 = vmul.f32 %v7620_v15, %v7620_v15  ;;  %v7633_v56 = vsub.f32 %v3540_v6, %v3578_v12  ;;  %v7687_v12 = vld [vmem:[%s8297_s21] ss:$0 sm:$0xff]  ;;  %s8300_s21 = sld [smem:[#allocation17_spill]] (!%p5325_p6) }
0x1081   : > { %v3560_v11 = vsel %vm878_vm1, %v7608_v61, 0.0  ;;  %v3542_v18 = vadd.f32 %v6291_v9, %v3533_v27 }
0x1082   : > { %3561 = vadd.xlane.f32.xlu0 %v3560_v11  ;;  %v3499_v30 = vpop.f32.mrb[140].mxu0  ;;  %v3596_v2 = vmul.f32 %v7633_v56, %v7633_v56 }
0x1083   : > { %v3519_v26 = vadd.f32 %v3499_v30, %v7455_v14  ;;  %v5896_v49 = vpop.f32.mrb[141].mxu0  ;;  %v3563_v4 = vsel %vm878_vm1, %v3542_v18, 0.0 }
0x1084   : > { %3564 = vadd.xlane.f32.xlu1 %v3563_v4  ;;  %v3502_v21 = vpop.f32.mrb[142].mxu0  ;;  %v3611_v28 = vsel %vm878_vm1, %v3596_v2, 0.0  ;;  %v6046_v2 = vld [vmem:[%s6587_s26] sm:$0xff]  }
0x1085   : > { %v3534_v33 = vadd.f32 %v7587_v10, %v3519_v26  ;;  %v3520_v24 = vadd.f32 %v3502_v21, %v7458_v23  ;;  %v5897_v60 = vpop.f32.mrb[143].mxu0  ;;  %5927 = vmatpush3.bf16.msra.mxu0 %v6046_v2 }
0x1086   : > { %5928 = vmatprep.subr.bf16.mxu0 %v6393_v43 }
0x1087   : > { %v3535_v34 = vadd.f32 %v7587_v10, %v3520_v24  ;;  %v3543_v42 = vadd.f32 %v6292_v0, %v3534_v33 }
0x1089   : > { %v3566_v14 = vsel %vm878_vm1, %v3543_v42, 0.0  ;;  %v3544_v46 = vadd.f32 %v6293_v40, %v3535_v34 }
0x108a   : > { %3567 = vadd.xlane.f32.xlu0 %v3566_v14  ;;  %v3507_v48 = vpop.f32.mrb[144].mxu0 }
0x108b   : > { %v3521_v23 = vadd.f32 %v3507_v48, %v7461_v41  ;;  %v5900_v51 = vpop.f32.mrb[145].mxu0  ;;  %v3569_v17 = vsel %vm878_vm1, %v3544_v46, 0.0 }
0x108c   : > { %3570 = vadd.xlane.f32.xlu1 %v3569_v17  ;;  %v3510_v52 = vpop.f32.mrb[146].mxu0 }
0x108d   : > { %v3536_v20 = vadd.f32 %v7587_v10, %v3521_v23  ;;  %v5901_v7 = vpop.f32.mrb[147].mxu0  ;;  %v3608_v10 = vsel %vm878_vm1, %v3595_v36, 0.0  ;;  %v7678_v23 = vld [vmem:[%s8296_s4] ss:$0 sm:$0xff] }
0x108f   : > { %v3545_v41 = vadd.f32 %v6294_v13, %v3536_v20 }
0x1090   : > { %3603 = vadd.xlane.f32.xlu1 %v3602_v50 }
0x1091   : > { %v3572_v58 = vsel %vm878_vm1, %v3545_v41, 0.0 }
0x1092   : > { %3573 = vadd.xlane.f32.xlu0 %v3572_v58 }
0x1094   : > { %3609 = vadd.xlane.f32.xlu1 %v3608_v10 }
0x1096   : > { %3606 = vadd.xlane.f32.xlu0 %v3605_v35 }
0x109a   : > { %3612 = vadd.xlane.f32.xlu0 %v3611_v28 }
0x110f   : > { %v3562_v29 = vpop.xlane.xlu0 %3561 }
0x1110   : > { %v3579_v57 = vmul.f32 0.03125, %v3562_v29 }
0x1111   : > { %v3565_v6 = vpop.xlane.xlu1 %3564 }
0x1112   : > { %v7647_v16 = vsub.f32 %v7608_v61, %v3579_v57  ;;  %v3580_v62 = vmul.f32 0.03125, %v3565_v6  ;;  %v6047_v57 = vld [vmem:[%s6587_s26 + $0x8] sm:$0xff]  }
0x1113   : > { %5929 = vmatpush3.bf16.msra.mxu0 %v6047_v57 }
0x1114   : > { %v7649_v47 = vsub.f32 %v3542_v18, %v3580_v62  ;;  %v3597_v37 = vmul.f32 %v7647_v16, %v7647_v16  ;;  %5930 = vmatprep.subr.bf16.mxu0 %v6393_v43 }
0x1116   : > { %v3614_v3 = vsel %vm878_vm1, %v3597_v37, 0.0  ;;  %v3598_v59 = vmul.f32 %v7649_v47, %v7649_v47  ;;  %v6048_v37 = vld [vmem:[%s6587_s26 + $0x10] sm:$0xff]  }
0x1117   : > { %3615 = vadd.xlane.f32.xlu1 %v3614_v3  ;;  %v3568_v63 = vpop.xlane.xlu0 %3567  ;;  %5931 = vmatpush3.bf16.msra.mxu0 %v6048_v37 }
0x1118   : > { %v3581_v53 = vmul.f32 0.03125, %v3568_v63  ;;  %v3617_v27 = vsel %vm878_vm1, %v3598_v59, 0.0  ;;  %5932 = vmatprep.subr.bf16.mxu0 %v6393_v43 }
0x1119   : > { %v3571_v54 = vpop.xlane.xlu1 %3570  ;;  %3618 = vadd.xlane.f32.xlu0 %v3617_v27  ;;  %v6049_v27 = vld [vmem:[%s6587_s26 + $0x18] sm:$0xff]  }
0x111a   : > { %v7657_v61 = vsub.f32 %v3543_v42, %v3581_v53  ;;  %v3582_v55 = vmul.f32 0.03125, %v3571_v54 }
0x111b   : > { %5933 = vmatpush3.bf16.msra.mxu0 %v6049_v27 }
0x111c   : > { %v7659_v8 = vsub.f32 %v3544_v46, %v3582_v55  ;;  %v3599_v11 = vmul.f32 %v7657_v61, %v7657_v61  ;;  %5934 = vmatprep.subr.bf16.mxu0 %v6393_v43 }
0x111d   : > { %v3604_v9 = vpop.xlane.xlu1 %3603 }
0x111e   : > { %v3629_v18 = vmul.f32 0.03125, %v3604_v9  ;;  %v3620_v30 = vsel %vm878_vm1, %v3599_v11, 0.0  ;;  %v3600_v5 = vmul.f32 %v7659_v8, %v7659_v8 }
0x111f   : > { %3621 = vadd.xlane.f32.xlu1 %v3620_v30  ;;  %v3574_v26 = vpop.xlane.xlu0 %3573  ;;  %v6050_v30 = vld [vmem:[%s6587_s26 + $0x20] sm:$0xff]  }
0x1120   : > { %v3638_v49 = vadd.f32 1e-05, %v3629_v18  ;;  %v3583_v4 = vmul.f32 0.03125, %v3574_v26  ;;  %v3623_v1 = vsel %vm878_vm1, %v3600_v5, 0.0  ;;  %5935 = vmatpush3.bf16.msra.mxu0 %v6050_v30 }
0x1121   : > { %3624 = vadd.xlane.f32.xlu0 %v3623_v1  ;;  %v3610_v21 = vpop.xlane.xlu1 %3609  ;;  %5936 = vmatprep.subr.bf16.mxu0 %v6393_v43  ;;  %v6051_v1 = vld [vmem:[%s6587_s26 + $0x28] sm:$0xff]  }
0x1122   : > { %6232 = vrsqrt.f32 %v3638_v49  ;;  %v7667_v33 = vsub.f32 %v3545_v41, %v3583_v4  ;;  %v3631_v24 = vmul.f32 0.03125, %v3610_v21 }
0x1123   : > { %v3607_v60 = vpop.xlane.xlu0 %3606 }
0x1124   : > { %v3630_v32 = vmul.f32 0.03125, %v3607_v60  ;;  %v3601_v34 = vmul.f32 %v7667_v33, %v7667_v33  ;;  %v3640_v0 = vadd.f32 1e-05, %v3631_v24  ;;  %5937 = vmatpush3.bf16.msra.mxu0 %v6051_v1 }
0x1125   : > { %5938 = vmatprep.subr.bf16.mxu0 %v6393_v43 }
0x1126   : > { %v3639_v42 = vadd.f32 1e-05, %v3630_v32  ;;  %v3626_v31 = vsel %vm878_vm1, %v3601_v34, 0.0  ;;  %v6052_v34 = vld [vmem:[%s6587_s26 + $0x30] sm:$0xff]  }
0x1127   : > { %3627 = vadd.xlane.f32.xlu1 %v3626_v31  ;;  %v3613_v14 = vpop.xlane.xlu0 %3612  ;;  %v6053_v31 = vld [vmem:[%s6587_s26 + $0x38] sm:$0xff]  }
0x1128   : > { %6234 = vrsqrt.f32 %v3639_v42  ;;  %v3632_v40 = vmul.f32 0.03125, %v3613_v14  ;;  %5939 = vmatpush3.bf16.msra.mxu0 %v6052_v34 }
0x1129   : > { %6236 = vrsqrt.f32 %v3640_v0  ;;  %5940 = vmatprep.subr.bf16.mxu0 %v6393_v43 }
0x112a   : > { %v3641_v46 = vadd.f32 1e-05, %v3632_v40 }
0x112c   : > { %v6233_v45 = vpop.eup %6232  ;;  %6238 = vrsqrt.f32 %v3641_v46  ;;  %5941 = vmatpush3.bf16.msra.mxu0 %v6053_v31 }
0x112d   : > { %v3656_v48 = vmul.f32 %v6233_v45, %v7616_v22 }
0x112f   : > { %v3671_v17 = vmul.f32 %v7678_v23, %v3656_v48 }
0x1131   : > { %v7691_v7 = vadd.f32 %v7687_v12, %v3671_v17 }
0x1132   : > { %v6235_v51 = vpop.eup %6234 }
0x1133   : > { %v3657_v38 = vmul.f32 %v6235_v51, %v7627_v25  ;;  %v6237_v52 = vpop.eup %6236 }
0x1134   : > { %v3658_v50 = vmul.f32 %v6237_v52, %v7620_v15 }
0x1135   : > { %v3672_v22 = vmul.f32 %v7678_v23, %v3657_v38 }
0x1136   : > { %v6239_v20 = vpop.eup %6238  ;;  %v3673_v58 = vmul.f32 %v7678_v23, %v3658_v50 }
0x1137   : > { %v7695_v13 = vadd.f32 %v7687_v12, %v3672_v22  ;;  %v3659_v25 = vmul.f32 %v6239_v20, %v7633_v56 }
0x1138   : > { %v7709_v44 = vadd.f32 %v7687_v12, %v3673_v58 }
0x1139   : > { %v3699_v41 = vpack.c.bf16 %v7695_v13, %v7691_v7  ;;  %v3674_v36 = vmul.f32 %v7678_v23, %v3659_v25 }
0x113b   : > { %5907 = vmatmul.mubr.msk.bf16.vlgmr.msra.gmra.mrb[144].mxu1 %vm878_vm1, %v3699_v41  ;;  %v7706_v15 = vadd.f32 %v7687_v12, %v3674_v36 }
0x113c   : > { %5910 = vmatprep.mubr.msk.bf16.mxu1 %vm6394_vm2, %v6393_v43 }
0x113d   : > { %v3700_v56 = vpack.c.bf16 %v7706_v15, %v7709_v44 }
0x1143   : > { %5911 = vmatmul.mubr.msk.bf16.gmra.mrb[148].mxu1 %vm878_vm1, %v3700_v56 }
0x1144   : > { %5914 = vmatprep.mubr.msk.bf16.mxu1 %vm6394_vm2, %v6393_v43 }
0x11a4   : > { %v3616_v10 = vpop.xlane.xlu1 %3615 }
0x11a5   : > { %v3633_v35 = vmul.f32 0.03125, %v3616_v10 }
0x11a6   : > { %v3619_v28 = vpop.xlane.xlu0 %3618 }
0x11a7   : > { %v3642_v19 = vadd.f32 1e-05, %v3633_v35  ;;  %v3634_v39 = vmul.f32 0.03125, %v3619_v28 }
0x11a9   : > { %6240 = vrsqrt.f32 %v3642_v19  ;;  %v3643_v29 = vadd.f32 1e-05, %v3634_v39 }
0x11ab   : > { %6242 = vrsqrt.f32 %v3643_v29 }
0x11ac   : > { %v3622_v6 = vpop.xlane.xlu1 %3621 }
0x11ad   : > { %v3635_v62 = vmul.f32 0.03125, %v3622_v6 }
0x11ae   : > { %v3625_v3 = vpop.xlane.xlu0 %3624 }
0x11af   : > { %v3644_v59 = vadd.f32 1e-05, %v3635_v62  ;;  %v3636_v63 = vmul.f32 0.03125, %v3625_v3 }
0x11b1   : > { %6244 = vrsqrt.f32 %v3644_v59  ;;  %v3645_v53 = vadd.f32 1e-05, %v3636_v63 }
0x11b3   : > { %v6241_v54 = vpop.eup %6240  ;;  %6246 = vrsqrt.f32 %v3645_v53 }
0x11b4   : > { %v3660_v55 = vmul.f32 %v6241_v54, %v7647_v16  ;;  %v3628_v11 = vpop.xlane.xlu1 %3627 }
0x11b5   : > { %v6243_v9 = vpop.eup %6242  ;;  %v3637_v18 = vmul.f32 0.03125, %v3628_v11 }
0x11b6   : > { %v3661_v5 = vmul.f32 %v6243_v9, %v7649_v47  ;;  %v3675_v26 = vmul.f32 %v7678_v23, %v3660_v55 }
0x11b7   : > { %v3646_v49 = vadd.f32 1e-05, %v3637_v18 }
0x11b8   : > { %v3676_v4 = vmul.f32 %v7678_v23, %v3661_v5  ;;  %v7732_v16 = vadd.f32 %v7687_v12, %v3675_v26 }
0x11b9   : > { %6248 = vrsqrt.f32 %v3646_v49 }
0x11ba   : > { %v7735_v21 = vadd.f32 %v7687_v12, %v3676_v4 }
0x11bb   : > { %v6245_v24 = vpop.eup %6244 }
0x11bc   : > { %v3662_v47 = vmul.f32 %v6245_v24, %v7657_v61  ;;  %v3701_v60 = vpack.c.bf16 %v7735_v21, %v7732_v16 }
0x11bd   : > { %v6247_v32 = vpop.eup %6246 }
0x11be   : > { %v3663_v0 = vmul.f32 %v6247_v32, %v7659_v8  ;;  %5915 = vmatmul.mubr.msk.bf16.gmra.mrb[152].mxu1 %vm878_vm1, %v3701_v60  ;;  %v3677_v42 = vmul.f32 %v7678_v23, %v3662_v47 }
0x11bf   : > { %5918 = vmatprep.mubr.msk.bf16.mxu1 %vm6394_vm2, %v6393_v43 }
0x11c0   : > { %v3678_v61 = vmul.f32 %v7678_v23, %v3663_v0  ;;  %v7751_v14 = vadd.f32 %v7687_v12, %v3677_v42 }
0x11c2   : > { %v7754_v40 = vadd.f32 %v7687_v12, %v3678_v61 }
0x11c3   : > { %v6249_v8 = vpop.eup %6248 }
0x11c4   : > { %v3664_v46 = vmul.f32 %v6249_v8, %v7667_v33  ;;  %v3702_v45 = vpack.c.bf16 %v7754_v40, %v7751_v14  ;;  %v7774_v33 = vld [vmem:[%s8298_s5] ss:$0 sm:$0xff] }
0x11c6   : > { %5919 = vmatmul.mubr.msk.bf16.gmra.mrb[156].mxu1 %vm878_vm1, %v3702_v45  ;;  %v3679_v48 = vmul.f32 %v7678_v23, %v3664_v46 }
0x11c7   : > { %5922 = vmatprep.mubr.msk.bf16.mxu1 %vm6394_vm2, %v6393_v43 }
0x11c8   : > { %v7764_v51 = vadd.f32 %v7687_v12, %v3679_v48 }
0x11ca   : > { %v3703_v17 = vpack.c.bf16 %v7764_v51, %v7764_v51 }
0x11ce   : > { %5923 = vmatmul.mubr.msk.bf16.gmra.mrb[160].mxu1 %vm878_vm1, %v3703_v17 }
0x120e   : > { %v3772_v38 = vpop.f32.mrb[144].mxu1 }
0x120f   : > { %v7777_v23 = vadd.f32 %v7774_v33, %v3772_v38  ;;  %v5908_v52 = vpop.f32.mrb[145].mxu1 }
0x1210   : > { %v3775_v22 = vpop.f32.mrb[146].mxu1 }
0x1211   : > { %v7780_v12 = vmul.f32 0.70710677, %v7777_v23  ;;  %v7783_v20 = vadd.f32 %v7774_v33, %v3775_v22  ;;  %v5909_v50 = vpop.f32.mrb[147].mxu1 }
0x1213   : > { %v3846_v25 = vand.u32 2147483647, %v7780_v12  ;;  %v7787_v41 = vmul.f32 0.70710677, %v7783_v20  ;;  %vm3828_vm8 = vcmp.lt.f32.partialorder %v7780_v12, 0.0 }
0x1215   : > { %v3855_v36 = vmul.f32 0.3275911, %v3846_v25  ;;  %v3847_v58 = vand.u32 2147483647, %v7787_v41  ;;  %v3972_v59 = vsub.f32 0.0, %v3846_v25  ;;  %vm3829_vm9 = vcmp.lt.f32.partialorder %v7787_v41, 0.0 }
0x1216   : > { %v3780_v56 = vpop.f32.mrb[148].mxu1 }
0x1217   : > { %v3864_v10 = vadd.f32 1.0, %v3855_v36  ;;  %v3856_v35 = vmul.f32 0.3275911, %v3847_v58  ;;  %v5912_v2 = vpop.f32.mrb[149].mxu1  ;;  %v7791_v28 = vadd.f32 %v7774_v33, %v3780_v56  ;;  %v3973_v54 = vsub.f32 0.0, %v3847_v58 }
0x1218   : > { %v3783_v19 = vpop.f32.mrb[150].mxu1  ;;  %v3981_v11 = vmul.f32 %v3972_v59, %v3846_v25 }
0x1219   : > { %6250 = vrcp.f32 %v3864_v10  ;;  %v3865_v39 = vadd.f32 1.0, %v3856_v35  ;;  %v5913_v29 = vpop.f32.mrb[151].mxu1  ;;  %v7794_v57 = vmul.f32 0.70710677, %v7791_v28  ;;  %v7797_v6 = vadd.f32 %v7774_v33, %v3783_v19 }
0x121a   : > { %v3982_v26 = vmul.f32 %v3973_v54, %v3847_v58  ;;  %v3990_v49 = vmul.f32 1.442695, %v3981_v11 }
0x121b   : > { %6252 = vrcp.f32 %v3865_v39  ;;  %v3848_v62 = vand.u32 2147483647, %v7794_v57  ;;  %v7801_v37 = vmul.f32 0.70710677, %v7797_v6  ;;  %vm3830_vm10 = vcmp.lt.f32.partialorder %v7794_v57, 0.0 }
0x121c   : > { %v3992_v32 = vmul.f32 1.442695, %v3982_v26  ;;  %v3812_v57 = vmul.f32 0.5, %v7791_v28 }
0x121d   : > { %v3857_v3 = vmul.f32 0.3275911, %v3848_v62  ;;  %v3849_v63 = vand.u32 2147483647, %v7801_v37  ;;  %v3974_v24 = vsub.f32 0.0, %v3848_v62  ;;  %vm3831_vm11 = vcmp.lt.f32.partialorder %v7801_v37, 0.0 }
0x121f   : > { %v3866_v53 = vadd.f32 1.0, %v3857_v3  ;;  %v3858_v27 = vmul.f32 0.3275911, %v3849_v63  ;;  %v3975_v0 = vsub.f32 0.0, %v3849_v63  ;;  %v3983_v31 = vmul.f32 %v3974_v24, %v3848_v62 }
0x1221   : > { %6254 = vrcp.f32 %v3866_v53  ;;  %v3867_v9 = vadd.f32 1.0, %v3858_v27  ;;  %v3984_v52 = vmul.f32 %v3975_v0, %v3849_v63  ;;  %v3994_v50 = vmul.f32 1.442695, %v3983_v31 }
0x1223   : > { %v6251_v55 = vpop.eup %6250  ;;  %6256 = vrcp.f32 %v3867_v9  ;;  %v3996_v19 = vmul.f32 1.442695, %v3984_v52 }
0x1224   : > { %v3891_v18 = vmul.f32 1.0614054, %v6251_v55  ;;  %6258 = vpow2.f32 %v3990_v49 }
0x1225   : > { %v6253_v30 = vpop.eup %6252  ;;  %6260 = vpow2.f32 %v3992_v32 }
0x1226   : > { %v3900_v5 = vadd.f32 -1.4531521, %v3891_v18  ;;  %v3892_v4 = vmul.f32 1.0614054, %v6253_v30  ;;  %6262 = vpow2.f32 %v3994_v50 }
0x1227   : > { %6264 = vpow2.f32 %v3996_v19 }
0x1228   : > { %v3909_v1 = vmul.f32 %v6251_v55, %v3900_v5  ;;  %v3901_v47 = vadd.f32 -1.4531521, %v3892_v4  ;;  %v6406_v5 = vmov 1.0  }
0x1229   : > { %v3837_v26 = vsel %vm3828_vm8, -1.0, %v6406_v5  ;;  %v3838_v12 = vsel %vm3829_vm9, -1.0, %v6406_v5  ;;  %v3839_v50 = vsel %vm3830_vm10, -1.0, %v6406_v5  ;;  %vm4586_vm8 = vcmask (!%p5325_p6), 1041409  }
0x122a   : > { %v3918_v60 = vadd.f32 1.4214138, %v3909_v1  ;;  %v3910_v34 = vmul.f32 %v6253_v30, %v3901_v47  ;;  %vm4589_vm9 = vcmask (!%p5325_p6), 287744   ;;  %vm6409_vm10 = vmmov (!%p5325_p6), 0  }
0x122b   : > { %v6255_v42 = vpop.eup %6254 }
0x122c   : > { %v3927_v61 = vmul.f32 %v6251_v55, %v3918_v60  ;;  %v3919_v8 = vadd.f32 1.4214138, %v3910_v34  ;;  %v3893_v46 = vmul.f32 1.0614054, %v6255_v42 }
0x122d   : > { %v6257_v48 = vpop.eup %6256 }
0x122e   : > { %v3936_v45 = vadd.f32 -0.28449672, %v3927_v61  ;;  %v3928_v17 = vmul.f32 %v6253_v30, %v3919_v8  ;;  %v3902_v38 = vadd.f32 -1.4531521, %v3893_v46  ;;  %v3894_v25 = vmul.f32 1.0614054, %v6257_v48  ;;  %v6259_v62 = vpop.eup %6258 }
0x122f   : > { %v6261_v11 = vpop.eup %6260  ;;  %v3810_v61 = vmul.f32 0.5, %v7777_v23  ;;  %v3811_v8 = vmul.f32 0.5, %v7783_v20 }
0x1230   : > { %v3945_v22 = vmul.f32 %v6251_v55, %v3936_v45  ;;  %v3937_v36 = vadd.f32 -0.28449672, %v3928_v17  ;;  %v3911_v58 = vmul.f32 %v6255_v42, %v3902_v38  ;;  %v3903_v10 = vadd.f32 -1.4531521, %v3894_v25  ;;  %v6263_v0 = vpop.eup %6262 }
0x1231   : > { %v6265_v17 = vpop.eup %6264 }
0x1232   : > { %v3954_v56 = vadd.f32 0.2548296, %v3945_v22  ;;  %v3946_v35 = vmul.f32 %v6253_v30, %v3937_v36  ;;  %v3920_v2 = vadd.f32 1.4214138, %v3911_v58  ;;  %v3912_v29 = vmul.f32 %v6257_v48, %v3903_v10 }
0x1233   : > { %v3840_v58 = vsel %vm3831_vm11, -1.0, %v6406_v5 }
0x1234   : > { %v3963_v39 = vmul.f32 %v6251_v55, %v3954_v56  ;;  %v3955_v3 = vadd.f32 0.2548296, %v3946_v35  ;;  %v3929_v59 = vmul.f32 %v6255_v42, %v3920_v2  ;;  %v3921_v63 = vadd.f32 1.4214138, %v3912_v29 }
0x1236   : > { %v4008_v53 = vmul.f32 %v6259_v62, %v3963_v39  ;;  %v3964_v27 = vmul.f32 %v6253_v30, %v3955_v3  ;;  %v3938_v54 = vadd.f32 -0.28449672, %v3929_v59  ;;  %v3930_v18 = vmul.f32 %v6257_v48, %v3921_v63 }
0x1238   : > { %v4017_v9 = vsub.f32 1.0, %v4008_v53  ;;  %v4009_v55 = vmul.f32 %v6261_v11, %v3964_v27  ;;  %v3947_v49 = vmul.f32 %v6255_v42, %v3938_v54  ;;  %v3939_v1 = vadd.f32 -0.28449672, %v3930_v18 }
0x123a   : > { %v4026_v4 = vmul.f32 %v4017_v9, %v3837_v26  ;;  %v4018_v24 = vsub.f32 1.0, %v4009_v55  ;;  %v3956_v47 = vadd.f32 0.2548296, %v3947_v49  ;;  %v3948_v60 = vmul.f32 %v6257_v48, %v3939_v1 }
0x123c   : > { %v4035_v30 = vadd.f32 1.0, %v4026_v4  ;;  %v4027_v32 = vmul.f32 %v4018_v24, %v3838_v12  ;;  %v3965_v34 = vmul.f32 %v6255_v42, %v3956_v47  ;;  %v3957_v31 = vadd.f32 0.2548296, %v3948_v60 }
0x123e   : > { %v4036_v46 = vadd.f32 1.0, %v4027_v32  ;;  %v4010_v41 = vmul.f32 %v6263_v0, %v3965_v34  ;;  %v3966_v45 = vmul.f32 %v6257_v48, %v3957_v31  ;;  %v4044_v38 = vmul.f32 %v4035_v30, %v3810_v61 }
0x123f   : > { %v3813_v48 = vmul.f32 0.5, %v7797_v6 }
0x1240   : > { %v4045_v52 = vmul.f32 %v4036_v46, %v3811_v8  ;;  %v4019_v22 = vsub.f32 1.0, %v4010_v41  ;;  %v4011_v42 = vmul.f32 %v6265_v17, %v3966_v45 }
0x1242   : > { %v4069_v25 = vpack.c.bf16 %v4045_v52, %v4044_v38  ;;  %v4028_v36 = vmul.f32 %v4019_v22, %v3839_v50  ;;  %v4020_v23 = vsub.f32 1.0, %v4011_v42 }
0x1244   : > { %5943 = vmatmul.mubr.bf16.vlgmr.msra.gmra.mrb[148].mxu0 %v4069_v25  ;;  %v4037_v20 = vadd.f32 1.0, %v4028_v36  ;;  %v4029_v56 = vmul.f32 %v4020_v23, %v3840_v58 }
0x1245   : > { %5946 = vmatprep.mubr.msk.bf16.mxu0 %vm6394_vm2, %v6393_v43 }
0x1246   : > { %v4038_v10 = vadd.f32 1.0, %v4029_v56  ;;  %v4046_v35 = vmul.f32 %v4037_v20, %v3812_v57 }
0x1248   : > { %v4047_v2 = vmul.f32 %v4038_v10, %v3813_v48 }
0x124a   : > { %v4070_v37 = vpack.c.bf16 %v4047_v2, %v4046_v35 }
0x124c   : > { %5947 = vmatmul.mubr.bf16.gmra.mrb[152].mxu0 %v4070_v37 }
0x124d   : > { %5950 = vmatprep.mubr.msk.bf16.mxu0 %vm6394_vm2, %v6393_v43 }
0x1291   : > { %v3788_v19 = vpop.f32.mrb[152].mxu1 }
0x1292   : > { %v7821_v39 = vadd.f32 %v7774_v33, %v3788_v19  ;;  %v5916_v29 = vpop.f32.mrb[153].mxu1 }
0x1293   : > { %v3791_v62 = vpop.f32.mrb[154].mxu1 }
0x1294   : > { %v7824_v3 = vmul.f32 0.70710677, %v7821_v39  ;;  %v7827_v28 = vadd.f32 %v7774_v33, %v3791_v62  ;;  %v5917_v6 = vpop.f32.mrb[155].mxu1 }
0x1296   : > { %v3850_v59 = vand.u32 2147483647, %v7824_v3  ;;  %v7831_v53 = vmul.f32 0.70710677, %v7827_v28  ;;  %vm3832_vm12 = vcmp.lt.f32.partialorder %v7824_v3, 0.0 }
0x1298   : > { %v3859_v63 = vmul.f32 0.3275911, %v3850_v59  ;;  %v3851_v27 = vand.u32 2147483647, %v7831_v53  ;;  %v3976_v32 = vsub.f32 0.0, %v3850_v59  ;;  %vm3833_vm13 = vcmp.lt.f32.partialorder %v7831_v53, 0.0 }
0x1299   : > { %v3796_v54 = vpop.f32.mrb[156].mxu1 }
0x129a   : > { %v3868_v11 = vadd.f32 1.0, %v3859_v63  ;;  %v3860_v9 = vmul.f32 0.3275911, %v3851_v27  ;;  %v5920_v18 = vpop.f32.mrb[157].mxu1  ;;  %v7835_v26 = vadd.f32 %v7774_v33, %v3796_v54  ;;  %v3977_v45 = vsub.f32 0.0, %v3851_v27 }
0x129b   : > { %v3799_v55 = vpop.f32.mrb[158].mxu1  ;;  %v3985_v52 = vmul.f32 %v3976_v32, %v3850_v59 }
0x129c   : > { %6266 = vrcp.f32 %v3868_v11  ;;  %v3869_v49 = vadd.f32 1.0, %v3860_v9  ;;  %v5921_v4 = vpop.f32.mrb[159].mxu1  ;;  %v7838_v1 = vmul.f32 0.70710677, %v7835_v26  ;;  %v7841_v24 = vadd.f32 %v7774_v33, %v3799_v55 }
0x129d   : > { %v3986_v23 = vmul.f32 %v3977_v45, %v3851_v27  ;;  %v3998_v58 = vmul.f32 1.442695, %v3985_v52 }
0x129e   : > { %6268 = vrcp.f32 %v3869_v49  ;;  %v3852_v47 = vand.u32 2147483647, %v7838_v1  ;;  %v7845_v12 = vmul.f32 0.70710677, %v7841_v24  ;;  %vm3834_vm14 = vcmp.lt.f32.partialorder %v7838_v1, 0.0 }
0x129f   : > { %v4000_v2 = vmul.f32 1.442695, %v3986_v23 }
0x12a0   : > { %v3861_v60 = vmul.f32 0.3275911, %v3852_v47  ;;  %v3853_v34 = vand.u32 2147483647, %v7845_v12  ;;  %v3978_v48 = vsub.f32 0.0, %v3852_v47  ;;  %vm3835_vm15 = vcmp.lt.f32.partialorder %v7845_v12, 0.0 }
0x12a1   : > { %v3804_v30 = vpop.f32.mrb[160].mxu1  ;;  %v3844_v1 = vsel %vm3835_vm15, -1.0, %v6406_v5  ;;  %v3816_v12 = vmul.f32 0.5, %v7835_v26 }
0x12a2   : > { %v7849_v0 = vadd.f32 %v7774_v33, %v3804_v30  ;;  %v5924_v61 = vpop.f32.mrb[161].mxu1  ;;  %v3870_v31 = vadd.f32 1.0, %v3861_v60  ;;  %v3862_v46 = vmul.f32 0.3275911, %v3853_v34  ;;  %v3979_v19 = vsub.f32 0.0, %v3853_v34 }
0x12a3   : > { %v3807_v8 = vpop.f32.mrb[162].mxu1  ;;  %v3987_v6 = vmul.f32 %v3978_v48, %v3852_v47 }
0x12a4   : > { %v7852_v41 = vmul.f32 0.70710677, %v7849_v0  ;;  %6270 = vrcp.f32 %v3870_v31  ;;  %v5925_v17 = vpop.f32.mrb[163].mxu1  ;;  %v3871_v22 = vadd.f32 1.0, %v3862_v46  ;;  %v3988_v18 = vmul.f32 %v3979_v19, %v3853_v34 }
0x12a5   : > { %v4002_v4 = vmul.f32 1.442695, %v3987_v6 }
0x12a6   : > { %v6267_v38 = vpop.eup %6266  ;;  %v3854_v50 = vand.u32 2147483647, %v7852_v41  ;;  %6272 = vrcp.f32 %v3871_v22  ;;  %v4004_v47 = vmul.f32 1.442695, %v3988_v18  ;;  %vm3836_vm0 = vcmp.lt.f32.partialorder %v7852_v41, 0.0 }
0x12a7   : > { %v3895_v42 = vmul.f32 1.0614054, %v6267_v38  ;;  %v3818_v41 = vmul.f32 0.5, %v7849_v0 }
0x12a8   : > { %v3863_v25 = vmul.f32 0.3275911, %v3854_v50  ;;  %v6269_v33 = vpop.eup %6268  ;;  %v3980_v55 = vsub.f32 0.0, %v3854_v50 }
0x12a9   : > { %v3904_v36 = vadd.f32 -1.4531521, %v3895_v42  ;;  %v3896_v20 = vmul.f32 1.0614054, %v6269_v33 }
0x12aa   : > { %v3872_v56 = vadd.f32 1.0, %v3863_v25  ;;  %v3989_v17 = vmul.f32 %v3980_v55, %v3854_v50 }
0x12ab   : > { %v3913_v57 = vmul.f32 %v6267_v38, %v3904_v36  ;;  %v3905_v10 = vadd.f32 -1.4531521, %v3896_v20 }
0x12ac   : > { %6274 = vrcp.f32 %v3872_v56  ;;  %v4006_v48 = vmul.f32 1.442695, %v3989_v17 }
0x12ad   : > { %v3922_v35 = vadd.f32 1.4214138, %v3913_v57  ;;  %6276 = vpow2.f32 %v3998_v58  ;;  %v3914_v37 = vmul.f32 %v6269_v33, %v3905_v10 }
0x12ae   : > { %v6271_v29 = vpop.eup %6270  ;;  %6278 = vpow2.f32 %v4000_v2 }
0x12af   : > { %v3931_v62 = vmul.f32 %v6267_v38, %v3922_v35  ;;  %v3923_v59 = vadd.f32 1.4214138, %v3914_v37  ;;  %v3897_v63 = vmul.f32 1.0614054, %v6271_v29  ;;  %6280 = vpow2.f32 %v4002_v4 }
0x12b0   : > { %v6273_v27 = vpop.eup %6272  ;;  %6282 = vpow2.f32 %v4004_v47  ;;  %v3814_v4 = vmul.f32 0.5, %v7821_v39 }
0x12b1   : > { %v3940_v54 = vadd.f32 -0.28449672, %v3931_v62  ;;  %v3932_v11 = vmul.f32 %v6269_v33, %v3923_v59  ;;  %v3906_v9 = vadd.f32 -1.4531521, %v3897_v63  ;;  %v3898_v60 = vmul.f32 1.0614054, %v6273_v27 }
0x12b2   : > { %6284 = vpow2.f32 %v4006_v48 }
0x12b3   : > { %v3949_v49 = vmul.f32 %v6267_v38, %v3940_v54  ;;  %v3941_v30 = vadd.f32 -0.28449672, %v3932_v11  ;;  %v3915_v32 = vmul.f32 %v6271_v29, %v3906_v9  ;;  %v3907_v31 = vadd.f32 -1.4531521, %v3898_v60 }
0x12b5   : > { %v3958_v61 = vadd.f32 0.2548296, %v3949_v49  ;;  %v3950_v46 = vmul.f32 %v6269_v33, %v3941_v30  ;;  %v3924_v45 = vadd.f32 1.4214138, %v3915_v32  ;;  %v3916_v22 = vmul.f32 %v6273_v27, %v3907_v31 }
0x12b6   : > { %v6275_v8 = vpop.eup %6274  ;;  %v3815_v30 = vmul.f32 0.5, %v7827_v28 }
0x12b7   : > { %v3967_v52 = vmul.f32 %v6267_v38, %v3958_v61  ;;  %v3899_v42 = vmul.f32 1.0614054, %v6275_v8  ;;  %v6277_v25 = vpop.eup %6276  ;;  %v3959_v36 = vadd.f32 0.2548296, %v3950_v46  ;;  %v3933_v34 = vmul.f32 %v6271_v29, %v3924_v45 }
0x12b8   : > { %v3925_v58 = vadd.f32 1.4214138, %v3916_v22  ;;  %v6279_v10 = vpop.eup %6278  ;;  %v3841_v38 = vsel %vm3832_vm12, -1.0, %v6406_v5  ;;  %v3843_v22 = vsel %vm3834_vm14, -1.0, %v6406_v5 }
0x12b9   : > { %v4012_v23 = vmul.f32 %v6277_v25, %v3967_v52  ;;  %v3908_v20 = vadd.f32 -1.4531521, %v3899_v42  ;;  %v3968_v56 = vmul.f32 %v6269_v33, %v3959_v36  ;;  %v3942_v57 = vadd.f32 -0.28449672, %v3933_v34  ;;  %v6281_v49 = vpop.eup %6280 }
0x12ba   : > { %v3934_v2 = vmul.f32 %v6273_v27, %v3925_v58  ;;  %v3842_v33 = vsel %vm3833_vm13, -1.0, %v6406_v5  ;;  %v6283_v45 = vpop.eup %6282 }
0x12bb   : > { %v4021_v35 = vsub.f32 1.0, %v4012_v23  ;;  %v3917_v50 = vmul.f32 %v6275_v8, %v3908_v20  ;;  %v4013_v37 = vmul.f32 %v6279_v10, %v3968_v56  ;;  %v3951_v19 = vmul.f32 %v6271_v29, %v3942_v57 }
0x12bc   : > { %v3943_v6 = vadd.f32 -0.28449672, %v3934_v2  ;;  %v6285_v34 = vpop.eup %6284  ;;  %v3817_v20 = vmul.f32 0.5, %v7841_v24 }
0x12bd   : > { %v4030_v62 = vmul.f32 %v4021_v35, %v3841_v38  ;;  %v3926_v3 = vadd.f32 1.4214138, %v3917_v50  ;;  %v4022_v59 = vsub.f32 1.0, %v4013_v37  ;;  %v3960_v63 = vadd.f32 0.2548296, %v3951_v19 }
0x12be   : > { %v3952_v54 = vmul.f32 %v6273_v27, %v3943_v6 }
0x12bf   : > { %v3935_v11 = vmul.f32 %v6275_v8, %v3926_v3  ;;  %v4039_v9 = vadd.f32 1.0, %v4030_v62  ;;  %v4031_v18 = vmul.f32 %v4022_v59, %v3842_v33  ;;  %v3969_v55 = vmul.f32 %v6271_v29, %v3960_v63 }
0x12c0   : > { %v3961_v60 = vadd.f32 0.2548296, %v3952_v54 }
0x12c1   : > { %v3944_v53 = vadd.f32 -0.28449672, %v3935_v11  ;;  %v4040_v32 = vadd.f32 1.0, %v4031_v18  ;;  %v4014_v61 = vmul.f32 %v6281_v49, %v3969_v55  ;;  %v4048_v47 = vmul.f32 %v4039_v9, %v3814_v4 }
0x12c2   : > { %v3970_v31 = vmul.f32 %v6273_v27, %v3961_v60 }
0x12c3   : > { %v3953_v46 = vmul.f32 %v6275_v8, %v3944_v53  ;;  %v4049_v17 = vmul.f32 %v4040_v32, %v3815_v30  ;;  %v4023_v52 = vsub.f32 1.0, %v4014_v61 }
0x12c4   : > { %v4015_v29 = vmul.f32 %v6283_v45, %v3970_v31 }
0x12c5   : > { %v3962_v39 = vadd.f32 0.2548296, %v3953_v46  ;;  %v4032_v42 = vmul.f32 %v4023_v52, %v3843_v22  ;;  %v4071_v25 = vpack.c.bf16 %v4049_v17, %v4048_v47 }
0x12c6   : > { %v4024_v36 = vsub.f32 1.0, %v4015_v29 }
0x12c7   : > { %v3971_v28 = vmul.f32 %v6275_v8, %v3962_v39  ;;  %5951 = vmatmul.mubr.bf16.gmra.mrb[156].mxu0 %v4071_v25  ;;  %v4041_v27 = vadd.f32 1.0, %v4032_v42  ;;  %v3845_v8 = vsel %vm3836_vm0, -1.0, %v6406_v5  ;;  %v5324_v5 = vld [vmem:[%s790_s17] ss:$0 sm:$0xff] }
0x12c8   : > { %v4033_v23 = vmul.f32 %v4024_v36, %v3844_v1  ;;  %5954 = vmatprep.mubr.msk.bf16.mxu0 %vm6394_vm2, %v6393_v43 }
0x12c9   : > { %v4016_v58 = vmul.f32 %v6285_v34, %v3971_v28  ;;  %v4050_v48 = vmul.f32 %v4041_v27, %v3816_v12 }
0x12ca   : > { %v4042_v56 = vadd.f32 1.0, %v4033_v23 }
0x12cb   : > { %v4025_v57 = vsub.f32 1.0, %v4016_v58 }
0x12cc   : > { %v4051_v10 = vmul.f32 %v4042_v56, %v3817_v20 }
0x12cd   : > { %v4034_v35 = vmul.f32 %v4025_v57, %v3845_v8 }
0x12ce   : > { %v4072_v2 = vpack.c.bf16 %v4051_v10, %v4050_v48 }
0x12cf   : > { %v4043_v50 = vadd.f32 1.0, %v4034_v35 }
0x12d0   : > { %5955 = vmatmul.mubr.bf16.gmra.mrb[160].mxu0 %v4072_v2 }
0x12d1   : > { %5958 = vmatprep.mubr.msk.bf16.mxu0 %vm6394_vm2, %v6393_v43  ;;  %v4052_v38 = vmul.f32 %v4043_v50, %v3818_v41  ;;  %vm4479_vm2 = vcmask (!%p5325_p6), 257024  }
0x12d3   : > { %v4073_v26 = vpack.c.bf16 %v4052_v38, %v4052_v38 }
0x12d8   : > { %5959 = vmatmul.mubr.bf16.gmra.mrb[164].mxu0 %v4073_v26 }
0x1317   : > { %v4156_v24 = vpop.f32.mrb[148].mxu0 }
0x1318   : > { %v4194_v37 = vadd.f32 %v4156_v24, %v7691_v7  ;;  %v5944_v19 = vpop.f32.mrb[149].mxu0 }
0x1319   : > { %v4159_v62 = vpop.f32.mrb[150].mxu0 }
0x131a   : > { %v7880_v6 = vadd.f32 %v5324_v5, %v4194_v37  ;;  %v4195_v0 = vadd.f32 %v4159_v62, %v7695_v13  ;;  %v5945_v3 = vpop.f32.mrb[151].mxu0 }
0x131c   : > { %4219 = vst.msk [vmem:[#allocation2] sm:$0xff] %vm878_vm1, %v7880_v6  ;;  %v7885_v43 = vadd.f32 %v5324_v5, %v4195_v0 }
0x131e   : > { %4220 = vst.msk [vmem:[#allocation2 + $0x8] sm:$0xff] %vm878_vm1, %v7885_v43 }
0x131f   : > { %v4164_v59 = vpop.f32.mrb[152].mxu0 }
0x1320   : > { %v4196_v63 = vadd.f32 %v4164_v59, %v7709_v44  ;;  %v5948_v33 = vpop.f32.mrb[153].mxu0 }
0x1321   : > { %v4167_v7 = vpop.f32.mrb[154].mxu0 }
0x1322   : > { %v7890_v54 = vadd.f32 %v5324_v5, %v4196_v63  ;;  %v4197_v11 = vadd.f32 %v4167_v7, %v7706_v15  ;;  %v5949_v9 = vpop.f32.mrb[155].mxu0 }
0x1324   : > { %4221 = vst.msk [vmem:[#allocation2 + $0x10] sm:$0xff] %vm878_vm1, %v7890_v54  ;;  %v7895_v13 = vadd.f32 %v5324_v5, %v4197_v11  ;;  %v4240_v25 = vsel (!%p5325_p6), %vm878_vm1, %v7890_v54, 0.0 }
0x1326   : > { %4222 = vst.msk [vmem:[#allocation2 + $0x18] sm:$0xff] %vm878_vm1, %v7895_v13  ;;  %v4243_v28 = vsel (!%p5325_p6), %vm878_vm1, %v7895_v13, 0.0 }
0x139a   : > { %v4172_v18 = vpop.f32.mrb[156].mxu0 }
0x139b   : > { %v4198_v55 = vadd.f32 %v4172_v18, %v7732_v16  ;;  %v5952_v49 = vpop.f32.mrb[157].mxu0 }
0x139c   : > { %v4175_v44 = vpop.f32.mrb[158].mxu0 }
0x139d   : > { %v4214_v4 = vadd.f32 %v5324_v5, %v4198_v55  ;;  %v4199_v60 = vadd.f32 %v4175_v44, %v7735_v21  ;;  %v5953_v53 = vpop.f32.mrb[159].mxu0 }
0x139f   : > { %4223 = vst.msk [vmem:[#allocation2 + $0x20] sm:$0xff] %vm878_vm1, %v4214_v4  ;;  %v4215_v15 = vadd.f32 %v5324_v5, %v4199_v60  ;;  %v4246_v39 = vsel (!%p5325_p6), %vm878_vm1, %v4214_v4, 0.0 }
0x13a0   : > { %4247 = vadd.xlane.f32.xlu1 (!%p5325_p6), %v4246_v39 }
0x13a1   : > { %4224 = vst.msk [vmem:[#allocation2 + $0x28] sm:$0xff] %vm878_vm1, %v4215_v15  ;;  %v4249_v42 = vsel (!%p5325_p6), %vm878_vm1, %v4215_v15, 0.0 }
0x13a3   : > { %v4180_v30 = vpop.f32.mrb[160].mxu0 }
0x13a4   : > { %v4200_v32 = vadd.f32 %v4180_v30, %v7751_v14  ;;  %v5956_v61 = vpop.f32.mrb[161].mxu0  ;;  %4250 = vadd.xlane.f32.xlu1 (!%p5325_p6), %v4249_v42 }
0x13a5   : > { %v4183_v31 = vpop.f32.mrb[162].mxu0 }
0x13a6   : > { %v4216_v46 = vadd.f32 %v5324_v5, %v4200_v32  ;;  %v4201_v45 = vadd.f32 %v4183_v31, %v7754_v40  ;;  %v5957_v16 = vpop.f32.mrb[163].mxu0  ;;  %v4234_v40 = vsel (!%p5325_p6), %vm878_vm1, %v7880_v6, 0.0 }
0x13a7   : > { %4235 = vadd.xlane.f32.xlu0 (!%p5325_p6), %v4234_v40 }
0x13a8   : > { %4225 = vst.msk [vmem:[#allocation2 + $0x30] sm:$0xff] %vm878_vm1, %v4216_v46  ;;  %v7906_v47 = vadd.f32 %v5324_v5, %v4201_v45  ;;  %v4252_v36 = vsel (!%p5325_p6), %vm878_vm1, %v4216_v46, 0.0  ;;  %v6408_v45 = vmov (!%p5325_p6), 0  }
0x13a9   : > { %4253 = vadd.xlane.f32.xlu1 (!%p5325_p6), %v4252_v36  ;;  %6295 = vset.pattern.permute.xlu0 (!%p5325_p6), %v6408_v45 }
0x13aa   : > { %4226 = vst.msk [vmem:[#allocation2 + $0x38] sm:$0xff] %vm878_vm1, %v7906_v47  ;;  %4231 = sbr.rel (%p5325_p6) target bundleno = 6610 (0x19d2), region = 104  ;;  %v4255_v34 = vsel (!%p5325_p6), %vm878_vm1, %v7906_v47, 0.0  ;;  %6296 = vset.pattern.permute.xlu1 (!%p5325_p6), %v6408_v45 }
0x13ab   : > { %v4188_v21 = vpop.f32.mrb[164].mxu0 }
0x13ac   : > { %v4202_v17 = vadd.f32 %v4188_v21, %v7764_v51  ;;  %v5960_v52 = vpop.f32.mrb[165].mxu0  ;;  %v4237_v51 = vsel (!%p5325_p6), %vm878_vm1, %v7885_v43, 0.0 }
0x13ad   : > { %v4191_v22 = vpop.f32.mrb[166].mxu0  ;;  %4238 = vadd.xlane.f32.xlu0 (!%p5325_p6), %v4237_v51  ;;  %4256 = vadd.xlane.f32.xlu1 (!%p5325_p6), %v4255_v34 }
0x13ae   : > { %v7911_v29 = vadd.f32 %v5324_v5, %v4202_v17  ;;  %v5961_v14 = vpop.f32.mrb[167].mxu0 }
0x13b0   : > { %4227 = vst.msk [vmem:[#allocation2 + $0x40] sm:$0xff] %vm878_vm1, %v7911_v29  ;;  %v4258_v1 = vsel (!%p5325_p6), %vm878_vm1, %v7911_v29, 0.0 }
0x13b1   : > { %4241 = vadd.xlane.f32.xlu0 %v4240_v25 }
0x13b5   : > { %4244 = vadd.xlane.f32.xlu0 %v4243_v28 }
0x13b9   : > { %4259 = vadd.xlane.f32.xlu0 %v4258_v1 }
0x142d   : > { %v4248_v23 = vpop.xlane.xlu1 %4247 }
0x142e   : > { %v4265_v12 = vmul.f32 0.03125, %v4248_v23 }
0x1430   : > { %v7934_v56 = vsub.f32 %v4214_v4, %v4265_v12 }
0x1431   : > { %v4251_v8 = vpop.xlane.xlu1 %4250 }
0x1432   : > { %v4266_v10 = vmul.f32 0.03125, %v4251_v8  ;;  %v4283_v2 = vmul.f32 %v7934_v56, %v7934_v56  ;;  %v7987_v8 = vld [vmem:[%s8259_s13] ss:$0 sm:$0xff] }
0x1434   : > { %v4236_v27 = vpop.xlane.xlu0 %4235  ;;  %v7943_v41 = vsub.f32 %v4215_v15, %v4266_v10  ;;  %v4300_v5 = vsel %vm878_vm1, %v4283_v2, 0.0 }
0x1435   : > { %v4261_v58 = vmul.f32 0.03125, %v4236_v27 }
0x1436   : > { %v4254_v24 = vpop.xlane.xlu1 %4253 }
0x1437   : > { %v7932_v20 = vsub.f32 %v7880_v6, %v4261_v58  ;;  %v4267_v19 = vmul.f32 0.03125, %v4254_v24  ;;  %v4284_v6 = vmul.f32 %v7943_v41, %v7943_v41  ;;  %v7998_v24 = vld [vmem:[%s8261_s15] ss:$0 sm:$0xff] }
0x1439   : > { %v4279_v35 = vmul.f32 %v7932_v20, %v7932_v20  ;;  %v7954_v3 = vsub.f32 %v4216_v46, %v4267_v19  ;;  %v4303_v33 = vsel %vm878_vm1, %v4284_v6, 0.0  ;;  %v6407_v46 = vmov 0.0  }
0x143a   : > { %v4239_v57 = vpop.xlane.xlu0 %4238  ;;  %v4257_v63 = vpop.xlane.xlu1 %4256  ;;  %5962 = vmatprep.subr.bf16.mxu0 %v6407_v46  ;;  %5972 = vmatprep.subr.bf16.mxu1 %v6407_v46 }
0x143b   : > { %v4262_v48 = vmul.f32 0.03125, %v4239_v57  ;;  %v4288_v38 = vsel %vm878_vm1, %v4279_v35, 0.0  ;;  %v4268_v11 = vmul.f32 0.03125, %v4257_v63  ;;  %v4285_v18 = vmul.f32 %v7954_v3, %v7954_v3  ;;  %5978 = vmatprep.mubr.msk.bf16.mxu1 %vm6409_vm10, %v6407_v46  ;;  %5968 = vmatprep.mubr.msk.bf16.mxu0 %vm6409_vm10, %v6407_v46 }
0x143c   : > { %4289 = vadd.xlane.f32.xlu1 %v4288_v38 }
0x143d   : > { %v7941_v50 = vsub.f32 %v7885_v43, %v4262_v48  ;;  %v7966_v55 = vsub.f32 %v7906_v47, %v4268_v11  ;;  %v4306_v60 = vsel %vm878_vm1, %v4285_v18, 0.0 }
0x143e   : > { %v4242_v26 = vpop.xlane.xlu0 %4241 }
0x143f   : > { %v4263_v37 = vmul.f32 0.03125, %v4242_v26  ;;  %v4280_v62 = vmul.f32 %v7941_v50, %v7941_v50  ;;  %v4286_v15 = vmul.f32 %v7966_v55, %v7966_v55  ;;  %v7993_v26 = vld [vmem:[%s8260_s14] ss:$0 sm:$0xff] }
0x1440   : > { %4301 = vadd.xlane.f32.xlu1 %v4300_v5 }
0x1441   : > { %v7952_v0 = vsub.f32 %v7890_v54, %v4263_v37  ;;  %v4291_v43 = vsel %vm878_vm1, %v4280_v62, 0.0  ;;  %v4309_v32 = vsel %vm878_vm1, %v4286_v15, 0.0 }
0x1442   : > { %4292 = vadd.xlane.f32.xlu0 %v4291_v43  ;;  %v4245_v59 = vpop.xlane.xlu0 %4244 }
0x1443   : > { %v4264_v7 = vmul.f32 0.03125, %v4245_v59  ;;  %v4281_v9 = vmul.f32 %v7952_v0, %v7952_v0  ;;  %v8005_v59 = vcombine.high %v7998_v24, %v7998_v24 }
0x1445   : > { %v7963_v54 = vsub.f32 %v7895_v13, %v4264_v7  ;;  %v4294_v49 = vsel %vm878_vm1, %v4281_v9, 0.0 }
0x1446   : > { %4304 = vadd.xlane.f32.xlu0 %v4303_v33  ;;  %4295 = vadd.xlane.f32.xlu1 %v4294_v49  ;;  %v4260_v44 = vpop.xlane.xlu0 %4259 }
0x1447   : > { %v4269_v4 = vmul.f32 0.03125, %v4260_v44  ;;  %v4282_v53 = vmul.f32 %v7963_v54, %v7963_v54 }
0x1449   : > { %v7975_v13 = vsub.f32 %v7911_v29, %v4269_v4  ;;  %v4297_v30 = vsel %vm878_vm1, %v4282_v53, 0.0 }
0x144a   : > { %4307 = vadd.xlane.f32.xlu0 %v4306_v60  ;;  %4298 = vadd.xlane.f32.xlu1 %v4297_v30 }
0x144b   : > { %v4287_v61 = vmul.f32 %v7975_v13, %v7975_v13 }
0x144d   : > { %v4312_v31 = vsel %vm878_vm1, %v4287_v61, 0.0 }
0x144e   : > { %4310 = vadd.xlane.f32.xlu0 %v4309_v32  ;;  %4313 = vadd.xlane.f32.xlu1 %v4312_v31 }
0x14c9   : > { %v4290_v16 = vpop.xlane.xlu1 %4289 }
0x14ca   : > { %v4315_v47 = vmul.f32 0.03125, %v4290_v16 }
0x14cc   : > { %v4324_v21 = vadd.f32 1e-05, %v4315_v47 }
0x14cd   : > { %v4302_v17 = vpop.xlane.xlu1 %4301 }
0x14ce   : > { %6299 = vrsqrt.f32 %v4324_v21  ;;  %v4319_v22 = vmul.f32 0.03125, %v4302_v17 }
0x14cf   : > { %v4293_v52 = vpop.xlane.xlu0 %4292 }
0x14d0   : > { %v4316_v29 = vmul.f32 0.03125, %v4293_v52  ;;  %v4328_v14 = vadd.f32 1e-05, %v4319_v22 }
0x14d2   : > { %v4325_v40 = vadd.f32 1e-05, %v4316_v29  ;;  %6301 = vrsqrt.f32 %v4328_v14 }
0x14d3   : > { %v4296_v39 = vpop.xlane.xlu1 %4295  ;;  %v4305_v51 = vpop.xlane.xlu0 %4304 }
0x14d4   : > { %v4317_v42 = vmul.f32 0.03125, %v4296_v39  ;;  %v4320_v25 = vmul.f32 0.03125, %v4305_v51  ;;  %6303 = vrsqrt.f32 %v4325_v40 }
0x14d6   : > { %v4326_v36 = vadd.f32 1e-05, %v4317_v42  ;;  %v4329_v28 = vadd.f32 1e-05, %v4320_v25 }
0x14d7   : > { %v4299_v34 = vpop.xlane.xlu1 %4298  ;;  %v4308_v1 = vpop.xlane.xlu0 %4307 }
0x14d8   : > { %6305 = vrsqrt.f32 %v4326_v36  ;;  %v4318_v27 = vmul.f32 0.03125, %v4299_v34  ;;  %v4321_v23 = vmul.f32 0.03125, %v4308_v1  ;;  %v6300_v58 = vpop.eup %6299 }
0x14d9   : > { %6307 = vrsqrt.f32 %v4329_v28  ;;  %v4342_v35 = vmul.f32 %v6300_v58, %v7932_v20 }
0x14da   : > { %v4327_v12 = vadd.f32 1e-05, %v4318_v27  ;;  %v4330_v57 = vadd.f32 1e-05, %v4321_v23 }
0x14db   : > { %v4314_v48 = vpop.xlane.xlu1 %4313  ;;  %v4311_v10 = vpop.xlane.xlu0 %4310  ;;  %v4357_v5 = vmul.f32 %v7987_v8, %v4342_v35 }
0x14dc   : > { %6309 = vrsqrt.f32 %v4327_v12  ;;  %v4323_v2 = vmul.f32 0.03125, %v4314_v48  ;;  %v4322_v38 = vmul.f32 0.03125, %v4311_v10  ;;  %v6302_v37 = vpop.eup %6301 }
0x14dd   : > { %6311 = vrsqrt.f32 %v4330_v57  ;;  %v4346_v6 = vmul.f32 %v6302_v37, %v7934_v56  ;;  %v4372_v43 = vadd.f32 %v7993_v26, %v4357_v5 }
0x14de   : > { %v4332_v19 = vadd.f32 1e-05, %v4323_v2  ;;  %v4331_v62 = vadd.f32 1e-05, %v4322_v38  ;;  %v6304_v20 = vpop.eup %6303 }
0x14df   : > { %v4343_v63 = vmul.f32 %v6304_v20, %v7941_v50  ;;  %v4361_v33 = vmul.f32 %v7987_v8, %v4346_v6  ;;  %v4390_v7 = vcombine.high %v4372_v43, %v4372_v43  ;;  %v4417_v53 = vmul.f32 %v7998_v24, %v4372_v43 }
0x14e0   : > { %6313 = vrsqrt.f32 %v4332_v19 }
0x14e1   : > { %6315 = vrsqrt.f32 %v4331_v62  ;;  %v4358_v9 = vmul.f32 %v7987_v8, %v4343_v63  ;;  %v8012_v56 = vadd.f32 %v7993_v26, %v4361_v33  ;;  %v4418_v44 = vmul.f32 %v8005_v59, %v4390_v7 }
0x14e2   : > { %v6306_v11 = vpop.eup %6305  ;;  %v4755_v61 = vcombine.low %v4372_v43, %v4390_v7 }
0x14e3   : > { %v6308_v18 = vpop.eup %6307  ;;  %v4344_v49 = vmul.f32 %v6306_v11, %v7952_v0  ;;  %v4373_v4 = vadd.f32 %v7993_v26, %v4358_v9  ;;  %v4425_v60 = vmul.f32 %v7998_v24, %v8012_v56  ;;  %v4394_v15 = vcombine.high %v8012_v56, %v8012_v56 }
0x14e4   : > { %v4347_v50 = vmul.f32 %v6308_v18, %v7943_v41  ;;  %v4451_v21 = vcombine.low %v4417_v53, %v4418_v44  ;;  %v4773_v63 = vpack.c.bf16 %v8012_v56, %v8012_v56 }
0x14e5   : > { %v4359_v0 = vmul.f32 %v7987_v8, %v4344_v49  ;;  %v4391_v32 = vcombine.high %v4373_v4, %v4373_v4  ;;  %v4480_v41 = vsel %vm4479_vm2, %v4425_v60, 0.0  ;;  %v4419_v47 = vmul.f32 %v7998_v24, %v4373_v4 }
0x14e6   : > { %v6310_v30 = vpop.eup %6309  ;;  %v4362_v31 = vmul.f32 %v7987_v8, %v4347_v50  ;;  %4481 = vadd.xlane.f32.xlu0 %v4480_v41  ;;  %v4426_v14 = vmul.f32 %v7998_v24, %v4394_v15  ;;  %v4467_v34 = vsel %vm878_vm1, %v4451_v21, 0.0 }
0x14e7   : > { %v6312_v45 = vpop.eup %6311  ;;  %v4345_v16 = vmul.f32 %v6310_v30, %v7963_v54  ;;  %v4756_v17 = vcombine.low %v4373_v4, %v4391_v32  ;;  %v4420_v52 = vmul.f32 %v8005_v59, %v4391_v32  ;;  %v4374_v39 = vadd.f32 %v7993_v26, %v4359_v0 }
0x14e8   : > { %v4377_v22 = vadd.f32 %v7993_v26, %v4362_v31  ;;  %v4348_v29 = vmul.f32 %v6312_v45, %v7954_v3  ;;  %v4829_v0 = vsel %vm1493_vm6, %v4773_v63, 0 }
0x14e9   : > { %v4360_v40 = vmul.f32 %v7987_v8, %v4345_v16  ;;  %v4771_v51 = vpack.c.bf16 %v4756_v17, %v4755_v61  ;;  %v4452_v42 = vcombine.low %v4419_v47, %v4420_v52  ;;  %v4392_v57 = vcombine.high %v4374_v39, %v4374_v39 }
0x14ea   : > { %v6314_v54 = vpop.eup %6313  ;;  %v4427_v25 = vmul.f32 %v8005_v59, %v4377_v22  ;;  %v4363_v36 = vmul.f32 %v7987_v8, %v4348_v29  ;;  %v4395_v1 = vcombine.high %v4377_v22, %v4377_v22  ;;  %4468 = vadd.xlane.f32.xlu0 %v4467_v34  ;;  %v4759_v48 = vcombine.low %v4394_v15, %v4377_v22 }
0x14eb   : > { %v4350_v28 = vmul.f32 %v6314_v54, %v7975_v13  ;;  %v4375_v3 = vadd.f32 %v7993_v26, %v4360_v40  ;;  %v6316_v27 = vpop.eup %6315  ;;  %5963 = vmatpush3.bf16.msra.mxu0 %v4771_v51  ;;  %v4470_v23 = vsel %vm878_vm1, %v4452_v42, 0.0  ;;  %v4421_v5 = vmul.f32 %v7998_v24, %v4374_v39 }
0x14ec   : > { %v4455_v58 = vcombine.low %v4426_v14, %v4427_v25  ;;  %v4378_v12 = vadd.f32 %v7993_v26, %v4363_v36  ;;  %4471 = vadd.xlane.f32.xlu1 %v4470_v23  ;;  %v4428_v10 = vmul.f32 %v7998_v24, %v4395_v1  ;;  %5964 = vmatprep.subr.bf16.mxu0 %v6407_v46  ;;  %v5329_v14 = vld [vmem:[#allocation3] ss:$0 sm:$0xff]  ;;  %v4528_v42 = vlaneseq }
0x14ed   : > { %v4393_v13 = vcombine.high %v4375_v3, %v4375_v3  ;;  %v4757_v37 = vcombine.low %v4374_v39, %v4392_v57  ;;  %v4422_v62 = vmul.f32 %v8005_v59, %v4392_v57  ;;  %v4349_v20 = vmul.f32 %v6316_v27, %v7966_v55 }
0x14ee   : > { %v4483_v35 = vsel %vm878_vm1, %v4455_v58, 0.0  ;;  %v4760_v2 = vcombine.low %v4395_v1, %v4378_v12  ;;  %v4429_v38 = vmul.f32 %v8005_v59, %v4378_v12  ;;  %v4365_v33 = vmul.f32 %v7987_v8, %v4350_v28 }
0x14ef   : > { %v4758_v19 = vcombine.low %v4375_v3, %v4393_v13  ;;  %4484 = vadd.xlane.f32.xlu0 %v4483_v35  ;;  %v4453_v11 = vcombine.low %v4421_v5, %v4422_v62  ;;  %v4364_v9 = vmul.f32 %v7987_v8, %v4349_v20  ;;  %v4396_v18 = vcombine.high %v4378_v12, %v4378_v12 }
0x14f0   : > { %v4774_v6 = vpack.c.bf16 %v4760_v2, %v4759_v48  ;;  %v4456_v43 = vcombine.low %v4428_v10, %v4429_v38  ;;  %v4380_v44 = vadd.f32 %v7993_v26, %v4365_v33  ;;  %v4423_v55 = vmul.f32 %v7998_v24, %v4375_v3 }
0x14f1   : > { %v4772_v7 = vpack.c.bf16 %v4758_v19, %v4757_v37  ;;  %v4424_v4 = vmul.f32 %v8005_v59, %v4393_v13  ;;  %v4473_v56 = vsel %vm878_vm1, %v4453_v11, 0.0  ;;  %v4379_v50 = vadd.f32 %v7993_v26, %v4364_v9 }
0x14f2   : > { %5973 = vmatpush3.bf16.msra.mxu1 %v4774_v6  ;;  %v4486_v49 = vsel %vm878_vm1, %v4456_v43, 0.0  ;;  %v4430_v60 = vmul.f32 %v7998_v24, %v4396_v18  ;;  %v4433_v32 = vmul.f32 %v8005_v59, %v4380_v44  ;;  %v4398_v61 = vcombine.high %v4380_v44, %v4380_v44 }
0x14f3   : > { %4487 = vadd.xlane.f32.xlu1 %v4486_v49  ;;  %5965 = vmatpush3.bf16.msra.mxu0 %v4772_v7  ;;  %v4454_v8 = vcombine.low %v4423_v55, %v4424_v4  ;;  %v4431_v53 = vmul.f32 %v8005_v59, %v4379_v50  ;;  %v4397_v15 = vcombine.high %v4379_v50, %v4379_v50  ;;  %v4529_v28 = vand.u32 127, %v4528_v42 }
0x14f4   : > { %4474 = vadd.xlane.f32.xlu0 %v4473_v56  ;;  %5974 = vmatprep.subr.bf16.mxu1 %v6407_v46  ;;  %v4761_v30 = vcombine.low %v4396_v18, %v4379_v50  ;;  %v4776_v17 = vpack.c.bf16 %v4398_v61, %v4398_v61  ;;  %v4434_v52 = vmul.f32 %v7998_v24, %v4398_v61  ;;  %v8072_v1 = vshrl.u32 %v4528_v42, 7 }
0x14f5   : > { %5966 = vmatprep.subr.bf16.mxu0 %v6407_v46  ;;  %v4457_v31 = vcombine.low %v4430_v60, %v4431_v53  ;;  %v4762_v26 = vcombine.low %v4397_v15, %v4380_v44  ;;  %v4476_v45 = vsel %vm878_vm1, %v4454_v8, 0.0  ;;  %v4432_v16 = vmul.f32 %v7998_v24, %v4397_v15 }
0x14f6   : > { %v4923_v22 = vsel %vm1493_vm6, %v4776_v17, 0  ;;  %v4495_v29 = vsel %vm4479_vm2, %v4434_v52, 0.0  ;;  %v4534_v24 = vadd.s32 4294967288, %v4529_v28  ;;  %v4541_v27 = vadd.s32 4294967280, %v4529_v28 }
0x14f7   : > { %5967 = vmatpush3.bf16.msra.mxu0 %v4829_v0  ;;  %v4489_v41 = vsel %vm878_vm1, %v4457_v31, 0.0  ;;  %v4775_v47 = vpack.c.bf16 %v4762_v26, %v4761_v30  ;;  %v4458_v21 = vcombine.low %v4432_v16, %v4433_v32  ;;  %v4548_v23 = vadd.s32 4294967272, %v4529_v28 }
0x14f8   : > { %4477 = vadd.xlane.f32.xlu0 %v4476_v45  ;;  %5982 = vmatprep.subr.bf16.mxu0 %v6407_v46  ;;  %v4555_v58 = vadd.s32 4294967264, %v4529_v28  ;;  %v8075_v57 = vsub.s32 %v4529_v28, %v8072_v1  ;;  %v8078_v48 = vsub.s32 %v4534_v24, %v8072_v1  ;;  %v8081_v13 = vsub.s32 %v4541_v27, %v8072_v1 }
0x14f9   : > { %4490 = vadd.xlane.f32.xlu1 %v4489_v41  ;;  %5975 = vmatpush3.bf16.msra.mxu1 %v4775_v47  ;;  %v4492_v59 = vsel %vm878_vm1, %v4458_v21, 0.0  ;;  %v8084_v35 = vsub.s32 %v4548_v23, %v8072_v1  ;;  %vm4553_vm6 = vcmask 261312   ;;  %v4596_v16 = vsub.s32 0, %v8072_v1 }
0x14fa   : > { %5976 = vmatprep.subr.bf16.mxu1 %v6407_v46  ;;  %v8087_v2 = vsub.s32 %v4555_v58, %v8072_v1  ;;  %v4600_v41 = vsub.s32 1, %v8072_v1 }
0x14fd   : > { %4493 = vadd.xlane.f32.xlu1 %v4492_v59  ;;  %5977 = vmatpush3.bf16.msra.mxu1 %v4923_v22 }
0x1501   : > { %4496 = vadd.xlane.f32.xlu1 %v4495_v29 }
0x150e   : > { %4505 = vperm.xlu0 %6295, %v5329_v14  }
0x1573   : > { %v4482_v40 = vpop.xlane.xlu0 %4481 }
0x1577   : > { %v4469_v39 = vpop.xlane.xlu0 %4468 }
0x1579   : > { %v4472_v54 = vpop.xlane.xlu1 %4471 }
0x157c   : > { %v4485_v51 = vpop.xlane.xlu0 %4484 }
0x1580   : > { %v4488_v25 = vpop.xlane.xlu1 %4487 }
0x1581   : > { %v4475_v36 = vpop.xlane.xlu0 %4474 }
0x1585   : > { %v4478_v3 = vpop.xlane.xlu0 %4477 }
0x1586   : > { %v4491_v34 = vpop.xlane.xlu1 %4490 }
0x158a   : > { %v4494_v12 = vpop.xlane.xlu1 %4493 }
0x158d   : > { %v4506_v10 = vpop.permute.xlu0 %4505 }
0x158e   : > { %v4508_v38 = vadd.f32 %v4506_v10, %v4469_v39  ;;  %v4509_v5 = vadd.f32 %v4506_v10, %v4472_v54  ;;  %v4510_v37 = vadd.f32 %v4506_v10, %v4475_v36  ;;  %v8089_v19 = vadd.f32 %v4506_v10, %v4478_v3  ;;  %v4497_v63 = vpop.xlane.xlu1 %4496 }
0x158f   : > { %v8091_v62 = vadd.f32 %v4506_v10, %v4482_v40  ;;  %v4513_v20 = vadd.f32 %v4506_v10, %v4485_v51  ;;  %v4514_v6 = vadd.f32 %v4506_v10, %v4488_v25  ;;  %v4515_v43 = vadd.f32 %v4506_v10, %v4491_v34 }
0x1590   : > { %v4516_v33 = vadd.f32 %v4506_v10, %v4494_v12  ;;  %v4533_v7 = vrot.slane %v4508_v38, %v8075_v57  ;;  %v4538_v11 = vrot.slane %v4509_v5, %v8078_v48  ;;  %v4517_v9 = vadd.f32 %v4506_v10, %v4497_v63 }
0x1591   : > { %v4545_v18 = vrot.slane %v4510_v37, %v8081_v13  ;;  %v4565_v49 = vrot.slane %v4513_v20, %v8075_v57  ;;  %v4552_v55 = vrot.slane %v8089_v19, %v8084_v35  ;;  %v4569_v4 = vrot.slane %v4514_v6, %v8078_v48 }
0x1592   : > { %v4540_v44 = vsel %vm4539_vm3, %v4538_v11, %v4533_v7  ;;  %v4574_v56 = vrot.slane %v4515_v43, %v8081_v13  ;;  %v4559_v8 = vrot.slane %v8091_v62, %v8087_v2  ;;  %v4579_v15 = vrot.slane %v4516_v33, %v8084_v35 }
0x1593   : > { %v4547_v50 = vsel %vm4546_vm5, %v4545_v18, %v4540_v44  ;;  %v4570_v53 = vsel %vm4539_vm3, %v4569_v4, %v4565_v49  ;;  %v4584_v32 = vrot.slane %v4517_v9, %v8087_v2 }
0x1594   : > { %v4554_v60 = vsel %vm4553_vm6, %v4552_v55, %v4547_v50  ;;  %v4575_v30 = vsel %vm4546_vm5, %v4574_v56, %v4570_v53 }
0x1595   : > { %v4561_v0 = vsel %vm4560_vm7, %v4559_v8, %v4554_v60  ;;  %v4580_v61 = vsel %vm4553_vm6, %v4579_v15, %v4575_v30 }
0x1596   : > { %v4585_v31 = vsel %vm4560_vm7, %v4584_v32, %v4580_v61 }
0x1597   : > { %v4587_v26 = vsel %vm4586_vm8, %v4585_v31, %v4561_v0 }
0x1598   : > { %v4590_v45 = vsel %vm4589_vm9, %v4587_v26, -inf }
0x1599   : > { %4591 = vmax.xlane.f32.xlu1 %v4590_v45 }
0x1626   : > { %v4592_v47 = vpop.xlane.xlu1 %4591 }
0x1627   : > { %v4597_v21 = vrot.slane %v4592_v47, %v4596_v16  ;;  %v4601_v17 = vrot.slane %v4592_v47, %v4600_v41 }
0x1629   : > { %v4604_v59 = vsub.f32 %v4508_v38, %v4597_v21  ;;  %v4605_v52 = vsub.f32 %v4509_v5, %v4597_v21  ;;  %v4609_v29 = vsub.f32 %v4513_v20, %v4601_v17  ;;  %v4612_v14 = vsub.f32 %v4516_v33, %v4601_v17 }
0x162a   : > { %v4610_v39 = vsub.f32 %v4514_v6, %v4601_v17  ;;  %v4613_v51 = vsub.f32 %v4517_v9, %v4601_v17  ;;  %v4606_v36 = vsub.f32 %v4510_v37, %v4597_v21  ;;  %v4611_v24 = vsub.f32 %v4515_v43, %v4601_v17 }
0x162b   : > { %v4614_v22 = vmul.f32 1.442695, %v4604_v59  ;;  %v4616_v40 = vmul.f32 1.442695, %v4605_v52  ;;  %v4624_v54 = vmul.f32 1.442695, %v4609_v29  ;;  %v4607_v23 = vsub.f32 %v8089_v19, %v4597_v21 }
0x162c   : > { %v4630_v42 = vmul.f32 1.442695, %v4612_v14  ;;  %v4626_v25 = vmul.f32 1.442695, %v4610_v39  ;;  %v4632_v28 = vmul.f32 1.442695, %v4613_v51  ;;  %v4608_v38 = vsub.f32 %v8091_v62, %v4597_v21 }
0x162d   : > { %6317 = vpow2.f32 %v4614_v22  ;;  %v4618_v3 = vmul.f32 1.442695, %v4606_v36  ;;  %v4628_v58 = vmul.f32 1.442695, %v4611_v24  ;;  %v4620_v5 = vmul.f32 1.442695, %v4607_v23 }
0x162e   : > { %6319 = vpow2.f32 %v4616_v40  ;;  %v4622_v19 = vmul.f32 1.442695, %v4608_v38 }
0x162f   : > { %6321 = vpow2.f32 %v4624_v54 }
0x1630   : > { %6323 = vpow2.f32 %v4630_v42 }
0x1631   : > { %6325 = vpow2.f32 %v4626_v25 }
0x1632   : > { %6327 = vpow2.f32 %v4632_v28 }
0x1633   : > { %6329 = vpow2.f32 %v4618_v3 }
0x1634   : > { %6331 = vpow2.f32 %v4628_v58 }
0x1635   : > { %6333 = vpow2.f32 %v4620_v5 }
0x1636   : > { %6335 = vpow2.f32 %v4622_v19 }
0x1637   : > { %v8121_v34 = vpop.eup %6317 }
0x1638   : > { %4645 = vperm.xlu1 %6296, %v8121_v34   ;;  %v8124_v27 = vpop.eup %6319 }
0x1639   : > { %v6322_v12 = vpop.eup %6321 }
0x163a   : > { %v8128_v10 = vpop.eup %6323 }
0x163b   : > { %4669 = vperm.xlu0 %6295, %v8128_v10   ;;  %v6326_v37 = vpop.eup %6325 }
0x163c   : > { %4648 = vperm.xlu1 %6296, %v8124_v27   ;;  %v8132_v20 = vpop.eup %6327 }
0x163d   : > { %v8135_v6 = vpop.eup %6329 }
0x163e   : > { %v6332_v43 = vpop.eup %6331 }
0x163f   : > { %4672 = vperm.xlu0 %6295, %v8132_v20   ;;  %v8138_v63 = vpop.eup %6333 }
0x1640   : > { %4660 = vperm.xlu1 %6296, %v6322_v12   ;;  %v6336_v62 = vpop.eup %6335 }
0x1644   : > { %4663 = vperm.xlu1 %6296, %v6326_v37  }
0x1648   : > { %4651 = vperm.xlu1 %6296, %v8135_v6  }
0x164c   : > { %4666 = vperm.xlu1 %6296, %v6332_v43  }
0x1650   : > { %4654 = vperm.xlu1 %6296, %v8138_v63  }
0x1654   : > { %4657 = vperm.xlu1 %6296, %v6336_v62  }
0x16b7   : > { %v4646_v33 = vpop.permute.xlu1 %4645 }
0x16b8   : > { %v4677_v30 = vrot.slane %v4646_v33, %v8075_v57 }
0x16ba   : > { %v4670_v49 = vpop.permute.xlu0 %4669 }
0x16bb   : > { %v4649_v7 = vpop.permute.xlu1 %4648  ;;  %v4715_v0 = vrot.slane %v4670_v49, %v8084_v35 }
0x16bc   : > { %v4681_v50 = vrot.slane %v4649_v7, %v8078_v48 }
0x16be   : > { %v4673_v32 = vpop.permute.xlu0 %4672  ;;  %v4682_v31 = vsel %vm4539_vm3, %v4681_v50, %v4677_v30 }
0x16bf   : > { %v4661_v11 = vpop.permute.xlu1 %4660  ;;  %v4720_v47 = vrot.slane %v4673_v32, %v8087_v2 }
0x16c0   : > { %v4701_v56 = vrot.slane %v4661_v11, %v8075_v57 }
0x16c3   : > { %v4664_v9 = vpop.permute.xlu1 %4663 }
0x16c4   : > { %v4705_v44 = vrot.slane %v4664_v9, %v8078_v48 }
0x16c6   : > { %v4706_v8 = vsel %vm4539_vm3, %v4705_v44, %v4701_v56 }
0x16c7   : > { %v4652_v18 = vpop.permute.xlu1 %4651 }
0x16c8   : > { %v4686_v53 = vrot.slane %v4652_v18, %v8081_v13 }
0x16ca   : > { %v4687_v21 = vsel %vm4546_vm5, %v4686_v53, %v4682_v31 }
0x16cb   : > { %v4667_v55 = vpop.permute.xlu1 %4666 }
0x16cc   : > { %v4710_v4 = vrot.slane %v4667_v55, %v8081_v13 }
0x16ce   : > { %v4711_v15 = vsel %vm4546_vm5, %v4710_v4, %v4706_v8 }
0x16cf   : > { %v4655_v60 = vpop.permute.xlu1 %4654  ;;  %v4716_v45 = vsel %vm4553_vm6, %v4715_v0, %v4711_v15 }
0x16d0   : > { %v4691_v61 = vrot.slane %v4655_v60, %v8084_v35  ;;  %v4721_v22 = vsel %vm4560_vm7, %v4720_v47, %v4716_v45 }
0x16d2   : > { %v4692_v59 = vsel %vm4553_vm6, %v4691_v61, %v4687_v21 }
0x16d3   : > { %v4658_v26 = vpop.permute.xlu1 %4657 }
0x16d4   : > { %v4696_v17 = vrot.slane %v4658_v26, %v8087_v2 }
0x16d6   : > { %v4697_v52 = vsel %vm4560_vm7, %v4696_v17, %v4692_v59 }
0x16d7   : > { %v4722_v29 = vsel %vm4586_vm8, %v4721_v22, %v4697_v52 }
0x16d8   : > { %v4724_v14 = vsel %vm4589_vm9, %v4722_v29, 0.0 }
0x16d9   : > { %4725 = vadd.xlane.f32.xlu1 %v4724_v14 }
0x1766   : > { %v4726_v40 = vpop.xlane.xlu1 %4725 }
0x1767   : > { %6337 = vrcp.f32 %v4726_v40 }
0x1771   : > { %v6338_v39 = vpop.eup %6337 }
0x1772   : > { %v4732_v54 = vrot.slane %v6338_v39, %v4596_v16  ;;  %v4736_v51 = vrot.slane %v6338_v39, %v4600_v41 }
0x1774   : > { %v4744_v42 = vmul.f32 %v6322_v12, %v4736_v51  ;;  %v4745_v25 = vmul.f32 %v6326_v37, %v4736_v51  ;;  %v4743_v36 = vmul.f32 %v6336_v62, %v4732_v54  ;;  %v4746_v58 = vmul.f32 %v6332_v43, %v4736_v51 }
0x1775   : > { %v4747_v38 = vmul.f32 %v8128_v10, %v4736_v51  ;;  %v4739_v33 = vmul.f32 %v8121_v34, %v4732_v54  ;;  %v4740_v16 = vmul.f32 %v8124_v27, %v4732_v54  ;;  %v4741_v62 = vmul.f32 %v8135_v6, %v4732_v54 }
0x1776   : > { %v4752_v28 = vpack.c.bf16 %v4745_v25, %v4744_v42  ;;  %v4751_v24 = vpack.c.bf16 %v4743_v36, %v4743_v36  ;;  %v4742_v43 = vmul.f32 %v8138_v63, %v4732_v54  ;;  %v4748_v11 = vmul.f32 %v8132_v20, %v4736_v51 }
0x1777   : > { %v4753_v19 = vpack.c.bf16 %v4747_v38, %v4746_v58  ;;  %v4749_v41 = vpack.c.bf16 %v4740_v16, %v4739_v33 }
0x1778   : > { %v4874_v3 = vunpack.c.l.b16 %v4752_v28  ;;  %v4784_v23 = vunpack.c.l.b16 %v4751_v24  ;;  %v4875_v5 = vunpack.c.h.b16 %v4752_v28  ;;  %v4750_v7 = vpack.c.bf16 %v4742_v43, %v4741_v62 }
0x1779   : > { %v4876_v1 = vunpack.c.l.b16 %v4753_v19  ;;  %v4780_v12 = vunpack.c.l.b16 %v4749_v41  ;;  %v4781_v37 = vunpack.c.h.b16 %v4749_v41  ;;  %v4877_v10 = vunpack.c.h.b16 %v4753_v19 }
0x177a   : > { %4880 = vperm.xlu0 %6295, %v4874_v3   ;;  %4798 = vperm.xlu1 %6296, %v4784_v23   ;;  %v4782_v34 = vunpack.c.l.b16 %v4750_v7  ;;  %v4754_v9 = vpack.c.bf16 %v4748_v11, %v4748_v11  ;;  %v4783_v18 = vunpack.c.h.b16 %v4750_v7 }
0x177c   : > { %v4878_v27 = vunpack.c.l.b16 %v4754_v9 }
0x177e   : > { %4883 = vperm.xlu0 %6295, %v4875_v5  }
0x1782   : > { %4886 = vperm.xlu0 %6295, %v4876_v1  }
0x1786   : > { %4786 = vperm.xlu0 %6295, %v4780_v12  }
0x178a   : > { %4789 = vperm.xlu0 %6295, %v4781_v37  }
0x178e   : > { %4889 = vperm.xlu0 %6295, %v4877_v10  }
0x1792   : > { %4792 = vperm.xlu0 %6295, %v4782_v34  }
0x1796   : > { %4892 = vperm.xlu0 %6295, %v4878_v27  }
0x179a   : > { %4795 = vperm.xlu0 %6295, %v4783_v18  }
0x17f9   : > { %v4881_v6 = vpop.permute.xlu0 %4880  ;;  %v4799_v26 = vpop.permute.xlu1 %4798 }
0x17fa   : > { %v4897_v8 = vrot.slane %v4881_v6, %v8075_v57  ;;  %v4822_v22 = vrot.slane %v4799_v26, %v8087_v2 }
0x17fd   : > { %v4884_v63 = vpop.permute.xlu0 %4883 }
0x17fe   : > { %v4901_v4 = vrot.slane %v4884_v63, %v8078_v48 }
0x1800   : > { %v4902_v53 = vsel %vm4539_vm3, %v4901_v4, %v4897_v8 }
0x1801   : > { %v4887_v49 = vpop.permute.xlu0 %4886 }
0x1802   : > { %v4906_v50 = vrot.slane %v4887_v49, %v8081_v13 }
0x1804   : > { %v4907_v0 = vsel %vm4546_vm5, %v4906_v50, %v4902_v53 }
0x1805   : > { %v4787_v44 = vpop.permute.xlu0 %4786 }
0x1806   : > { %v4803_v45 = vrot.slane %v4787_v44, %v8075_v57  ;;  %v6297_v57 = vld [vmem:[%s8299_s22] sm:$0xff]  }
0x1809   : > { %v4790_v20 = vpop.permute.xlu0 %4789 }
0x180a   : > { %v4807_v30 = vrot.slane %v4790_v20, %v8078_v48 }
0x180c   : > { %v4808_v59 = vsel %vm4539_vm3, %v4807_v30, %v4803_v45 }
0x180d   : > { %v4890_v55 = vpop.permute.xlu0 %4889 }
0x180e   : > { %v4911_v60 = vrot.slane %v4890_v55, %v8084_v35 }
0x1810   : > { %v4912_v61 = vsel %vm4553_vm6, %v4911_v60, %v4907_v0 }
0x1811   : > { %v4793_v56 = vpop.permute.xlu0 %4792 }
0x1812   : > { %v4812_v31 = vrot.slane %v4793_v56, %v8081_v13 }
0x1814   : > { %v4813_v48 = vsel %vm4546_vm5, %v4812_v31, %v4808_v59 }
0x1815   : > { %v4893_v15 = vpop.permute.xlu0 %4892 }
0x1816   : > { %v4916_v32 = vrot.slane %v4893_v15, %v8087_v2 }
0x1818   : > { %v4917_v47 = vsel %vm4560_vm7, %v4916_v32, %v4912_v61 }
0x1819   : > { %v4796_v21 = vpop.permute.xlu0 %4795  ;;  %v4918_v17 = vpack.c.b16 %v4917_v47, %v4917_v47 }
0x181a   : > { %v4817_v52 = vrot.slane %v4796_v21, %v8084_v35  ;;  %v6298_v35 = vld [vmem:[%s8299_s22 + $0x8] sm:$0xff]  }
0x181b   : > { %5979 = vmatmul.mubr.msk.bf16.vlgmr.msra.gmra.mrb[0].mxu1 %vm1358_vm4, %v4918_v17 }
0x181c   : > { %v4818_v29 = vsel %vm4553_vm6, %v4817_v52, %v4813_v48 }
0x181d   : > { %v4823_v13 = vsel %vm4560_vm7, %v4822_v22, %v4818_v29 }
0x181e   : > { %v4824_v14 = vpack.c.b16 %v4823_v13, %v4823_v13 }
0x1820   : > { %5969 = vmatmul.mubr.msk.bf16.vlgmr.msra.gmra.mrb[0].mxu0 %vm1358_vm4, %v4824_v14 }
0x1821   : > { %5986 = vmatprep.mubr.msk.bf16.mxu0 %vm6409_vm10, %v6407_v46  ;;  %5983 = vmatpush3.bf16.msra.mxu0 %v6297_v57 }
0x1822   : > { %5984 = vmatprep.subr.bf16.mxu0 %v6407_v46  ;;  %v5332_v46 = vld [vmem:[%s8300_s21] ss:$0 sm:$0xff] }
0x1825   : > { %5985 = vmatpush3.bf16.msra.mxu0 %v6298_v35 }
0x18ee   : > { %v4959_v2 = vpop.f32.mrb[0].mxu1 }
0x18ef   : > { %v4970_v40 = vpack.c.bf16 %v4959_v2, %v4959_v2  ;;  %v5980_v39 = vpop.f32.mrb[1].mxu1 }
0x18f0   : > { %v4962_v54 = vpop.f32.mrb[2].mxu1 }
0x18f1   : > { %v5981_v51 = vpop.f32.mrb[3].mxu1  ;;  %v4981_v42 = vunpack.c.l.b16 %v4970_v40 }
0x18f3   : > { %v4865_v25 = vpop.f32.mrb[0].mxu0  ;;  %v4982_v3 = vrot.slane %v4981_v42, 7 }
0x18f4   : > { %v4969_v36 = vpack.c.bf16 %v4865_v25, %v4865_v25  ;;  %v5970_v28 = vpop.f32.mrb[1].mxu0 }
0x18f5   : > { %v4868_v24 = vpop.f32.mrb[2].mxu0 }
0x18f6   : > { %v4980_v23 = vunpack.c.l.b16 %v4969_v36  ;;  %v5971_v58 = vpop.f32.mrb[3].mxu0 }
0x18f8   : > { %v4983_v38 = vsel %vm4586_vm8, %v4982_v3, %v4980_v23 }
0x18f9   : > { %v4984_v5 = vpack.c.b16 %v4983_v38, %v4983_v38 }
0x18fb   : > { %5987 = vmatmul.mubr.msk.bf16.vlgmr.msra.gmra.mrb[4].mxu0 %vm878_vm1, %v4984_v5 }
0x19ce   : > { %v5034_v19 = vpop.f32.mrb[4].mxu0 }
0x19cf   : > { %v5035_v33 = vadd.f32 %v5332_v46, %v5034_v19  ;;  %v5988_v16 = vpop.f32.mrb[5].mxu0 }
0x19d0   : > { %v5037_v1 = vpop.f32.mrb[6].mxu0 }
0x19d1   : > { %5040 = vst [vmem:[#allocation4] sm:$0x3] %v5035_v33  ;;  %v5989_v41 = vpop.f32.mrb[7].mxu0 }
0x19d2 PF: > { %s8301_s26 = sld [smem:[#allocation8_spill]]  ;;  %s6410_s1 = smov [#allocation4]  }
0x19d3   : > { %s5050_s19 = sshll.u32 %s6410_s1, 4  ;;  %s5051_s19 = int_to_ptr.vmem [resolvable:$true] %s5050_s19 }
0x19d4   : > { %s6339_s17 = scalar_lea.vmem %s5051_s19, 32  ;;  %p6346_p11 = scmp.lt.s32.totalorder %s5051_s19, %s5051_s19 }
0x19d5   : > { %p6340_p8 = scmp.ne.s32.totalorder %s5051_s19, %s6339_s17  ;;  %p6347_p12 = scmp.lt.s32.totalorder %s6339_s17, %s6339_s17 }
0x19d7   : > { %p6348_p13 = por %p6347_p12, %p6346_p11 }
0x19d8   : > { %s8302_s24 = sadd.s32 4294967295, %s8301_s26  }
0x19d9   : > { %p8211_p7 = scmp.eq.s32.totalorder %s8302_s24, 1 }
0x19db   : > { %p6341_p9 = pnand %p6340_p8, %p8211_p7 }
0x19dd   : > { %p6342_p10 = pneg %p6341_p9 }
0x19df   : > { %p6349_p0 = pnand %p6348_p13, %p6342_p10 }
0x19e1   : > { %6352 = shalt.err (!%p6349_p0)
}
0x19e2   : > { %s8304_s3 = sld [smem:[#allocation18_spill]] }
0x19e8   : > { %s6353_s25 = scalar_lea.hbm %s8304_s3, 32 }
0x19e9   : > { %p6354_p1 = scmp.ne.s32.totalorder %s8304_s3, %s6353_s25  ;;  %p6359_p4 = scmp.lt.u32.totalorder %s6353_s25, %s8304_s3 }
0x19eb   : > { %p6355_p2 = pnand %p6354_p1, %p8211_p7 }
0x19ed   : > { %p6356_p3 = pneg %p6355_p2 }
0x19ef   : > { %p6361_p5 = pnand %p6359_p4, %p6356_p3 }
0x19f1   : > { %6364 = shalt.err (!%p6361_p5)
}
0x19f2   : > { %5995 = dma.vmem_to_hbm [thread:$0]  (%p8211_p7), %s5051_s19, 32, %s8304_s3, [#allocation5]  }
0x19f3   : > { %6378 = dma.done.wait (%p8211_p7), [#allocation5], 32  }
0x19f4   : > { %6380 = vsyncadd (%p8211_p7), [#allocation5], 4294967264 }
0x19f5 PF: > { %s8305_s30 = sld [smem:[#allocation8_spill]]  ;;  %s8306_s20 = sld [smem:[#allocation7_spill]] }
0x19f6   : > { %s8307_s21 = sld [smem:[#allocation9_spill]] }
0x19fb   : > { %s32_s1 = sadd.s32 1, %s8305_s30  }
0x19fc   : > { %p29_p6 = scmp.ge.s32.totalorder %s32_s1, 4  }
0x19fe   :  { %31 = sbr.rel (!%p29_p6) target bundleno = 12 (0xc), region = 165 }
0x1a05   :  { %5063 = vsyncpa [#allocation5], 1 }
0x1a06   :  { %5065 = vsyncpa [#allocation5 + $0x1], 1 }

</bundles_post_ra>
